<compile_context>
chip_gen: v7x
topology: tpu7x:2x2x1
jax: 0.10.0
libtpu: 0.0.40
codegen_flags: <defaults>
</compile_context>

<pallas_src>
import functools
import math

import jax
import jax.numpy as jnp
from jax.experimental import pallas as pl
from jax.experimental.pallas import tpu as pltpu

# Make the pure-JAX reference (and in-kernel dots) use full f32 matmuls so the
# tolerance comparison below is meaningful.
jax.config.update("jax_default_matmul_precision", "highest")


def _spatial_block_kernel(x_ref, gs_ref, a1_ref, a2_ref, bias_ref,
                          wqkv_ref, bqkv_ref, wfc_ref, bfc_ref,
                          wmlp_ref, bmlp_ref, w12_ref, b12_ref,
                          w34_ref, b34_ref, o_ref, *, heads, d_v):
    # x_ref/gs_ref : (Mb, H)   Mb = Nb * num_object rows (Nb whole (b,t) groups)
    # a1_ref/a2_ref: (Mb, Mb)  block-diagonal kron(I_Nb, adj)
    # bias_ref     : (Mb, Mb)  0 within a (b,t) group, -1e30 across groups
    # weights      : already transposed to (in, out); biases are (1, out)
    H = wfc_ref.shape[0]

    x = x_ref[...].astype(jnp.float32)                      # (Mb, H)
    gs = gs_ref[...].astype(jnp.float32)

    # ---- spatial multi-head attention (block-diagonal over (b,t) groups) ----
    qkv = jnp.dot(x, wqkv_ref[...].astype(jnp.float32),
                  preferred_element_type=jnp.float32) \
        + bqkv_ref[...].astype(jnp.float32)                  # (Mb, 3H)
    bias = bias_ref[...].astype(jnp.float32)
    scale = 1.0 / math.sqrt(d_v)

    ctx_heads = []
    for h in range(heads):                                   # static unroll
        # Fold the softmax scale into the (Mb, d_v) q slice (cheaper than
        # scaling the (Mb, Mb) score matrix).
        qh = qkv[:, h * d_v:(h + 1) * d_v] * scale
        kh = qkv[:, H + h * d_v:H + (h + 1) * d_v]
        vh = qkv[:, 2 * H + h * d_v:2 * H + (h + 1) * d_v]
        # scores[n, m] = <q_n, k_m>  (NT matmul, contract the d_v lanes)
        s = jax.lax.dot_general(qh, kh, (((1,), (1,)), ((), ())),
                                preferred_element_type=jnp.float32)
        s = s + bias                                          # mask other groups
        s = s - jnp.max(s, axis=-1, keepdims=True)
        p = jnp.exp(s)
        p = p / jnp.sum(p, axis=-1, keepdims=True)
        ctx_heads.append(jnp.dot(p, vh, preferred_element_type=jnp.float32))
    ctx = jnp.concatenate(ctx_heads, axis=-1)                # (Mb, H)
    satt = jnp.dot(ctx, wfc_ref[...].astype(jnp.float32),
                   preferred_element_type=jnp.float32) \
         + bfc_ref[...].astype(jnp.float32)

    # ---- diffusion graph conv (order=2, support=[dist, heading]) ----
    a1 = a1_ref[...].astype(jnp.float32)
    a2 = a2_ref[...].astype(jnp.float32)
    x1a = jnp.dot(a1, x, preferred_element_type=jnp.float32)
    x2a = jnp.dot(a1, x1a, preferred_element_type=jnp.float32)
    x1b = jnp.dot(a2, x, preferred_element_type=jnp.float32)
    x2b = jnp.dot(a2, x1b, preferred_element_type=jnp.float32)
    hcat = jnp.concatenate([x, x1a, x2a, x1b, x2b], axis=-1)  # (Mb, 5H)
    gcn = jnp.dot(hcat, wmlp_ref[...].astype(jnp.float32),
                  preferred_element_type=jnp.float32) \
        + bmlp_ref[...].astype(jnp.float32)
    # TODO(synk): nn.Dropout / F.dropout are identity here (inference).

    # ---- gated fusion ----
    def sigmoid(t):
        return 1.0 / (1.0 + jnp.exp(-t))

    z = sigmoid(jnp.dot(jnp.concatenate([gcn, satt], axis=-1),
                        w12_ref[...].astype(jnp.float32),
                        preferred_element_type=jnp.float32)
                + b12_ref[...].astype(jnp.float32))
    last = z * gcn + (1.0 - z) * satt

    a = sigmoid(jnp.dot(jnp.concatenate([last, gs], axis=-1),
                        w34_ref[...].astype(jnp.float32),
                        preferred_element_type=jnp.float32)
                + b34_ref[...].astype(jnp.float32))
    out = a * last + (1.0 - a) * gs

    o_ref[...] = out.astype(o_ref.dtype)


@functools.partial(jax.jit, static_argnames=("heads", "block_bt"))
def spatial_block_pallas(x, dist_adj, heading_adj, gs_out, params, *,
                         heads, block_bt=8):
    """x, gs_out: (B, T, N, H); dist_adj/heading_adj: (N, N)."""
    B, T, N, H = x.shape
    BT = B * T
    assert BT % block_bt == 0, (BT, block_bt)
    Nb = block_bt
    Mb = Nb * N
    d_v = H // heads

    # Free reshapes only (no transposes, no extra HBM passes).
    x2 = x.reshape(BT * N, H)
    gs2 = gs_out.reshape(BT * N, H)

    # Block-diagonal operators acting within each (b,t) group of N rows.
    eye = jnp.eye(Nb, dtype=jnp.float32)
    abig1 = jnp.kron(eye, dist_adj.astype(jnp.float32))       # (Mb, Mb)
    abig2 = jnp.kron(eye, heading_adj.astype(jnp.float32))    # (Mb, Mb)
    group = jnp.kron(eye, jnp.ones((N, N), jnp.float32))
    attn_bias = (group - 1.0) * 1e30                          # 0 / -1e30

    # Fused weights (all already (in, out)).
    wqkv = jnp.concatenate([params["wq"], params["wk"], params["wv"]], axis=1)
    bqkv = jnp.concatenate([params["bq"], params["bk"], params["bv"]])[None, :]
    wfc, bfc = params["wfc"], params["bfc"][None, :]
    wmlp, bmlp = params["wmlp"], params["bmlp"][None, :]
    w12 = jnp.concatenate([params["w1"], params["w2"]], axis=0)
    b12 = (params["b1"] + params["b2"])[None, :]
    w34 = jnp.concatenate([params["w3"], params["w4"]], axis=0)
    b34 = (params["b3"] + params["b4"])[None, :]

    kern = functools.partial(_spatial_block_kernel, heads=heads, d_v=d_v)
    full = lambda i: (0, 0)

    out = pl.pallas_call(
        kern,
        out_shape=jax.ShapeDtypeStruct((BT * N, H), x.dtype),
        grid_spec=pltpu.PrefetchScalarGridSpec(
            num_scalar_prefetch=0,
            grid=(BT // Nb,),
            in_specs=[
                pl.BlockSpec((Mb, H), lambda i: (i, 0)),        # x
                pl.BlockSpec((Mb, H), lambda i: (i, 0)),        # gs_out
                pl.BlockSpec((Mb, Mb), full),                   # block-diag dist
                pl.BlockSpec((Mb, Mb), full),                   # block-diag heading
                pl.BlockSpec((Mb, Mb), full),                   # attention bias
                pl.BlockSpec((H, 3 * H), full),                 # W_qkv
                pl.BlockSpec((1, 3 * H), full),                 # b_qkv
                pl.BlockSpec((H, H), full),                     # W_fc
                pl.BlockSpec((1, H), full),                     # b_fc
                pl.BlockSpec((5 * H, H), full),                 # W_mlp
                pl.BlockSpec((1, H), full),                     # b_mlp
                pl.BlockSpec((2 * H, H), full),                 # W_fc1|fc2
                pl.BlockSpec((1, H), full),                     # b_fc1+b_fc2
                pl.BlockSpec((2 * H, H), full),                 # W_fc3|fc4
                pl.BlockSpec((1, H), full),                     # b_fc3+b_fc4
            ],
            out_specs=pl.BlockSpec((Mb, H), lambda i: (i, 0)),
        ),
        compiler_params=pltpu.CompilerParams(
            dimension_semantics=("parallel",)),
    )(x2, gs2, abig1, abig2, attn_bias, wqkv, bqkv, wfc, bfc,
      wmlp, bmlp, w12, b12, w34, b34)

    return out.reshape(B, T, N, H)


def spatial_block_reference(x, dist_adj, heading_adj, gs_out, p, *, heads):
    """Pure-JAX mirror of the PyTorch SpatialBlock.forward (for verification)."""
    B, T, N, H = x.shape
    d_v = H // heads

    def lin(t, w, b):
        return jnp.dot(t, w) + b

    # SpatialMultiHeadAttention
    q = lin(x, p["wq"], p["bq"]).reshape(B, T, N, heads, d_v)
    k = lin(x, p["wk"], p["bk"]).reshape(B, T, N, heads, d_v)
    v = lin(x, p["wv"], p["bv"]).reshape(B, T, N, heads, d_v)
    q, k, v = (jnp.swapaxes(t, 2, 3) for t in (q, k, v))      # (B,T,heads,N,d_v)
    att = jnp.einsum("bthnd,bthmd->bthnm", q, k) / math.sqrt(d_v)
    att = jax.nn.softmax(att, axis=-1)
    ctx = jnp.einsum("bthnm,bthmd->bthnd", att, v)
    ctx = jnp.swapaxes(ctx, 2, 3).reshape(B, T, N, H)
    satt = lin(ctx, p["wfc"], p["bfc"])

    # DiffusionConv (order=2, support=[dist, heading]), dropout = identity
    outs = [x]
    for adj in (dist_adj, heading_adj):
        x1 = jnp.einsum("nm,btmh->btnh", adj, x)
        outs.append(x1)
        x2 = jnp.einsum("nm,btmh->btnh", adj, x1)
        outs.append(x2)
    h = jnp.concatenate(outs, axis=-1)
    gcn = lin(h, p["wmlp"], p["bmlp"])

    z = jax.nn.sigmoid(lin(gcn, p["w1"], p["b1"]) + lin(satt, p["w2"], p["b2"]))
    last = z * gcn + (1.0 - z) * satt
    a = jax.nn.sigmoid(lin(last, p["w3"], p["b3"]) + lin(gs_out, p["w4"], p["b4"]))
    return a * last + (1.0 - a) * gs_out


if __name__ == "__main__":
    heads = 4
    hidden_size = 32
    history_frames = 8
    num_object = 4
    B = 2
    H = hidden_size

    key = jax.random.PRNGKey(0)
    keys = iter(jax.random.split(key, 32))

    def linear_params(fan_in, fan_out):
        bound = 1.0 / math.sqrt(fan_in)
        w = jax.random.uniform(next(keys), (fan_in, fan_out), jnp.float32,
                               -bound, bound)
        b = jax.random.uniform(next(keys), (fan_out,), jnp.float32,
                               -bound, bound)
        return w, b

    params = {}
    for name in ("wq", "wk", "wv", "wfc", "w1", "w2", "w3", "w4"):
        w, b = linear_params(H, H)
        params[name] = w
        params["b" + name[1:]] = b
    params["wmlp"], params["bmlp"] = linear_params(5 * H, H)   # (2*2+1)*H -> H

    x = jax.random.normal(next(keys), (B, history_frames, num_object, H),
                          jnp.float32)
    gs_out = jax.random.normal(next(keys), (B, history_frames, num_object, H),
                               jnp.float32)
    da = jax.random.uniform(next(keys), (num_object, num_object), jnp.float32)
    ha = jax.random.uniform(next(keys), (num_object, num_object), jnp.float32)
    dist_adj = da / jnp.sum(da, axis=-1, keepdims=True)
    heading_adj = ha / jnp.sum(ha, axis=-1, keepdims=True)

    out = spatial_block_pallas(x, dist_adj, heading_adj, gs_out, params,
                               heads=heads, block_bt=8)
    out = jax.block_until_ready(out)

    ref = spatial_block_reference(x, dist_adj, heading_adj, gs_out, params,
                                  heads=heads)

    assert out.shape == x.shape, (out.shape, x.shape)
    max_err = float(jnp.max(jnp.abs(out - ref)))
    assert max_err < 2e-4, f"mismatch vs reference: {max_err}"

    print("KERNEL_OK")
</pallas_src>

<mosaic_0001>
module attributes {stable_mosaic.version = 11 : i64} {
  func.func @_spatial_block_kernel(%arg0: i32, %arg1: memref<32x32xf32, #tpu.memory_space<vmem>>, %arg2: memref<32x32xf32, #tpu.memory_space<vmem>>, %arg3: memref<32x32xf32, #tpu.memory_space<vmem>>, %arg4: memref<32x32xf32, #tpu.memory_space<vmem>>, %arg5: memref<32x32xf32, #tpu.memory_space<vmem>>, %arg6: memref<32x96xf32, #tpu.memory_space<vmem>>, %arg7: memref<1x96xf32, #tpu.memory_space<vmem>>, %arg8: memref<32x32xf32, #tpu.memory_space<vmem>>, %arg9: memref<1x32xf32, #tpu.memory_space<vmem>>, %arg10: memref<160x32xf32, #tpu.memory_space<vmem>>, %arg11: memref<1x32xf32, #tpu.memory_space<vmem>>, %arg12: memref<64x32xf32, #tpu.memory_space<vmem>>, %arg13: memref<1x32xf32, #tpu.memory_space<vmem>>, %arg14: memref<64x32xf32, #tpu.memory_space<vmem>>, %arg15: memref<1x32xf32, #tpu.memory_space<vmem>>, %arg16: memref<32x32xf32, #tpu.memory_space<vmem>>) attributes {dimension_semantics = [#tpu.dimension_semantics<parallel>], iteration_bounds = array<i64: 2>, scalar_prefetch = 0 : i64, scratch_operands = 0 : i64, tpu.core_type = #tpu.core_type<tc>, window_params = [{transform_indices = @transform_0, window_bounds = array<i64: 32, 32>}, {transform_indices = @transform_1, window_bounds = array<i64: 32, 32>}, {pipeline_mode = #tpu.pipeline_mode<synchronous>, transform_indices = @transform_2, window_bounds = array<i64: 32, 32>}, {pipeline_mode = #tpu.pipeline_mode<synchronous>, transform_indices = @transform_3, window_bounds = array<i64: 32, 32>}, {pipeline_mode = #tpu.pipeline_mode<synchronous>, transform_indices = @transform_4, window_bounds = array<i64: 32, 32>}, {pipeline_mode = #tpu.pipeline_mode<synchronous>, transform_indices = @transform_5, window_bounds = array<i64: 32, 96>}, {pipeline_mode = #tpu.pipeline_mode<synchronous>, transform_indices = @transform_6, window_bounds = array<i64: 1, 96>}, {pipeline_mode = #tpu.pipeline_mode<synchronous>, transform_indices = @transform_7, window_bounds = array<i64: 32, 32>}, {pipeline_mode = #tpu.pipeline_mode<synchronous>, transform_indices = @transform_8, window_bounds = array<i64: 1, 32>}, {pipeline_mode = #tpu.pipeline_mode<synchronous>, transform_indices = @transform_9, window_bounds = array<i64: 160, 32>}, {pipeline_mode = #tpu.pipeline_mode<synchronous>, transform_indices = @transform_10, window_bounds = array<i64: 1, 32>}, {pipeline_mode = #tpu.pipeline_mode<synchronous>, transform_indices = @transform_11, window_bounds = array<i64: 64, 32>}, {pipeline_mode = #tpu.pipeline_mode<synchronous>, transform_indices = @transform_12, window_bounds = array<i64: 1, 32>}, {pipeline_mode = #tpu.pipeline_mode<synchronous>, transform_indices = @transform_13, window_bounds = array<i64: 64, 32>}, {pipeline_mode = #tpu.pipeline_mode<synchronous>, transform_indices = @transform_14, window_bounds = array<i64: 1, 32>}, {transform_indices = @transform_15, window_bounds = array<i64: 32, 32>}]} {
    %c0 = arith.constant 0 : index
    %c0_0 = arith.constant 0 : index
    %0 = vector.load %arg1[%c0, %c0_0] : memref<32x32xf32, #tpu.memory_space<vmem>>, vector<32x32xf32>
    %c0_1 = arith.constant 0 : index
    %c0_2 = arith.constant 0 : index
    %1 = vector.load %arg2[%c0_1, %c0_2] : memref<32x32xf32, #tpu.memory_space<vmem>>, vector<32x32xf32>
    %c0_3 = arith.constant 0 : index
    %c0_4 = arith.constant 0 : index
    %2 = vector.load %arg6[%c0_3, %c0_4] : memref<32x96xf32, #tpu.memory_space<vmem>>, vector<32x96xf32>
    %cst = arith.constant dense<0.000000e+00> : vector<32x96xf32>
    %3 = tpu.matmul %0, %2, %cst {dimension_numbers = #tpu.dot_dimension_numbers<[1], [0], [0], [1], [0, 0, 1, 1], [], []>, precision = #tpu.contract_precision<fp32>} : vector<32x32xf32>, vector<32x96xf32>, vector<32x96xf32> -> vector<32x96xf32>
    %c0_5 = arith.constant 0 : index
    %c0_6 = arith.constant 0 : index
    %4 = vector.load %arg7[%c0_5, %c0_6] : memref<1x96xf32, #tpu.memory_space<vmem>>, vector<1x96xf32>
    %5 = vector.broadcast %4 : vector<1x96xf32> to vector<32x96xf32>
    %6 = arith.addf %3, %5 : vector<32x96xf32>
    %c0_7 = arith.constant 0 : index
    %c0_8 = arith.constant 0 : index
    %7 = vector.load %arg5[%c0_7, %c0_8] : memref<32x32xf32, #tpu.memory_space<vmem>>, vector<32x32xf32>
    %8 = vector.extract_strided_slice %6 {offsets = [0, 0], sizes = [32, 8], strides = [1, 1]} : vector<32x96xf32> to vector<32x8xf32>
    %cst_9 = arith.constant 0.353553385 : f32
    %9 = vector.broadcast %cst_9 : f32 to vector<32x8xf32>
    %10 = arith.mulf %8, %9 : vector<32x8xf32>
    %11 = vector.extract_strided_slice %6 {offsets = [0, 32], sizes = [32, 8], strides = [1, 1]} : vector<32x96xf32> to vector<32x8xf32>
    %12 = vector.extract_strided_slice %6 {offsets = [0, 64], sizes = [32, 8], strides = [1, 1]} : vector<32x96xf32> to vector<32x8xf32>
    %cst_10 = arith.constant dense<0.000000e+00> : vector<32x32xf32>
    %13 = tpu.matmul %10, %11, %cst_10 {dimension_numbers = #tpu.dot_dimension_numbers<[1], [1], [0], [0], [0, 0, 1, 0], [], []>, precision = #tpu.contract_precision<fp32>} : vector<32x8xf32>, vector<32x8xf32>, vector<32x32xf32> -> vector<32x32xf32>
    %14 = arith.addf %13, %7 : vector<32x32xf32>
    %cst_11 = arith.constant dense<0xFF800000> : vector<32xf32>
    %15 = vector.multi_reduction <maximumf>, %14, %cst_11 [1] : vector<32x32xf32> to vector<32xf32>
    %16 = vector.shape_cast %15 : vector<32xf32> to vector<32x1xf32>
    %17 = vector.broadcast %16 : vector<32x1xf32> to vector<32x32xf32>
    %18 = arith.subf %14, %17 : vector<32x32xf32>
    %19 = math.exp %18 : vector<32x32xf32>
    %cst_12 = arith.constant dense<0.000000e+00> : vector<32xf32>
    %20 = vector.multi_reduction <add>, %19, %cst_12 [1] : vector<32x32xf32> to vector<32xf32>
    %21 = vector.shape_cast %20 : vector<32xf32> to vector<32x1xf32>
    %22 = vector.broadcast %21 : vector<32x1xf32> to vector<32x32xf32>
    %23 = arith.divf %19, %22 : vector<32x32xf32>
    %cst_13 = arith.constant dense<0.000000e+00> : vector<32x8xf32>
    %24 = tpu.matmul %23, %12, %cst_13 {dimension_numbers = #tpu.dot_dimension_numbers<[1], [0], [0], [1], [0, 0, 1, 1], [], []>, precision = #tpu.contract_precision<fp32>} : vector<32x32xf32>, vector<32x8xf32>, vector<32x8xf32> -> vector<32x8xf32>
    %25 = vector.extract_strided_slice %6 {offsets = [0, 8], sizes = [32, 8], strides = [1, 1]} : vector<32x96xf32> to vector<32x8xf32>
    %cst_14 = arith.constant 0.353553385 : f32
    %26 = vector.broadcast %cst_14 : f32 to vector<32x8xf32>
    %27 = arith.mulf %25, %26 : vector<32x8xf32>
    %28 = vector.extract_strided_slice %6 {offsets = [0, 40], sizes = [32, 8], strides = [1, 1]} : vector<32x96xf32> to vector<32x8xf32>
    %29 = vector.extract_strided_slice %6 {offsets = [0, 72], sizes = [32, 8], strides = [1, 1]} : vector<32x96xf32> to vector<32x8xf32>
    %cst_15 = arith.constant dense<0.000000e+00> : vector<32x32xf32>
    %30 = tpu.matmul %27, %28, %cst_15 {dimension_numbers = #tpu.dot_dimension_numbers<[1], [1], [0], [0], [0, 0, 1, 0], [], []>, precision = #tpu.contract_precision<fp32>} : vector<32x8xf32>, vector<32x8xf32>, vector<32x32xf32> -> vector<32x32xf32>
    %31 = arith.addf %30, %7 : vector<32x32xf32>
    %cst_16 = arith.constant dense<0xFF800000> : vector<32xf32>
    %32 = vector.multi_reduction <maximumf>, %31, %cst_16 [1] : vector<32x32xf32> to vector<32xf32>
    %33 = vector.shape_cast %32 : vector<32xf32> to vector<32x1xf32>
    %34 = vector.broadcast %33 : vector<32x1xf32> to vector<32x32xf32>
    %35 = arith.subf %31, %34 : vector<32x32xf32>
    %36 = math.exp %35 : vector<32x32xf32>
    %cst_17 = arith.constant dense<0.000000e+00> : vector<32xf32>
    %37 = vector.multi_reduction <add>, %36, %cst_17 [1] : vector<32x32xf32> to vector<32xf32>
    %38 = vector.shape_cast %37 : vector<32xf32> to vector<32x1xf32>
    %39 = vector.broadcast %38 : vector<32x1xf32> to vector<32x32xf32>
    %40 = arith.divf %36, %39 : vector<32x32xf32>
    %cst_18 = arith.constant dense<0.000000e+00> : vector<32x8xf32>
    %41 = tpu.matmul %40, %29, %cst_18 {dimension_numbers = #tpu.dot_dimension_numbers<[1], [0], [0], [1], [0, 0, 1, 1], [], []>, precision = #tpu.contract_precision<fp32>} : vector<32x32xf32>, vector<32x8xf32>, vector<32x8xf32> -> vector<32x8xf32>
    %42 = vector.extract_strided_slice %6 {offsets = [0, 16], sizes = [32, 8], strides = [1, 1]} : vector<32x96xf32> to vector<32x8xf32>
    %cst_19 = arith.constant 0.353553385 : f32
    %43 = vector.broadcast %cst_19 : f32 to vector<32x8xf32>
    %44 = arith.mulf %42, %43 : vector<32x8xf32>
    %45 = vector.extract_strided_slice %6 {offsets = [0, 48], sizes = [32, 8], strides = [1, 1]} : vector<32x96xf32> to vector<32x8xf32>
    %46 = vector.extract_strided_slice %6 {offsets = [0, 80], sizes = [32, 8], strides = [1, 1]} : vector<32x96xf32> to vector<32x8xf32>
    %cst_20 = arith.constant dense<0.000000e+00> : vector<32x32xf32>
    %47 = tpu.matmul %44, %45, %cst_20 {dimension_numbers = #tpu.dot_dimension_numbers<[1], [1], [0], [0], [0, 0, 1, 0], [], []>, precision = #tpu.contract_precision<fp32>} : vector<32x8xf32>, vector<32x8xf32>, vector<32x32xf32> -> vector<32x32xf32>
    %48 = arith.addf %47, %7 : vector<32x32xf32>
    %cst_21 = arith.constant dense<0xFF800000> : vector<32xf32>
    %49 = vector.multi_reduction <maximumf>, %48, %cst_21 [1] : vector<32x32xf32> to vector<32xf32>
    %50 = vector.shape_cast %49 : vector<32xf32> to vector<32x1xf32>
    %51 = vector.broadcast %50 : vector<32x1xf32> to vector<32x32xf32>
    %52 = arith.subf %48, %51 : vector<32x32xf32>
    %53 = math.exp %52 : vector<32x32xf32>
    %cst_22 = arith.constant dense<0.000000e+00> : vector<32xf32>
    %54 = vector.multi_reduction <add>, %53, %cst_22 [1] : vector<32x32xf32> to vector<32xf32>
    %55 = vector.shape_cast %54 : vector<32xf32> to vector<32x1xf32>
    %56 = vector.broadcast %55 : vector<32x1xf32> to vector<32x32xf32>
    %57 = arith.divf %53, %56 : vector<32x32xf32>
    %cst_23 = arith.constant dense<0.000000e+00> : vector<32x8xf32>
    %58 = tpu.matmul %57, %46, %cst_23 {dimension_numbers = #tpu.dot_dimension_numbers<[1], [0], [0], [1], [0, 0, 1, 1], [], []>, precision = #tpu.contract_precision<fp32>} : vector<32x32xf32>, vector<32x8xf32>, vector<32x8xf32> -> vector<32x8xf32>
    %59 = vector.extract_strided_slice %6 {offsets = [0, 24], sizes = [32, 8], strides = [1, 1]} : vector<32x96xf32> to vector<32x8xf32>
    %cst_24 = arith.constant 0.353553385 : f32
    %60 = vector.broadcast %cst_24 : f32 to vector<32x8xf32>
    %61 = arith.mulf %59, %60 : vector<32x8xf32>
    %62 = vector.extract_strided_slice %6 {offsets = [0, 56], sizes = [32, 8], strides = [1, 1]} : vector<32x96xf32> to vector<32x8xf32>
    %63 = vector.extract_strided_slice %6 {offsets = [0, 88], sizes = [32, 8], strides = [1, 1]} : vector<32x96xf32> to vector<32x8xf32>
    %cst_25 = arith.constant dense<0.000000e+00> : vector<32x32xf32>
    %64 = tpu.matmul %61, %62, %cst_25 {dimension_numbers = #tpu.dot_dimension_numbers<[1], [1], [0], [0], [0, 0, 1, 0], [], []>, precision = #tpu.contract_precision<fp32>} : vector<32x8xf32>, vector<32x8xf32>, vector<32x32xf32> -> vector<32x32xf32>
    %65 = arith.addf %64, %7 : vector<32x32xf32>
    %cst_26 = arith.constant dense<0xFF800000> : vector<32xf32>
    %66 = vector.multi_reduction <maximumf>, %65, %cst_26 [1] : vector<32x32xf32> to vector<32xf32>
    %67 = vector.shape_cast %66 : vector<32xf32> to vector<32x1xf32>
    %68 = vector.broadcast %67 : vector<32x1xf32> to vector<32x32xf32>
    %69 = arith.subf %65, %68 : vector<32x32xf32>
    %70 = math.exp %69 : vector<32x32xf32>
    %cst_27 = arith.constant dense<0.000000e+00> : vector<32xf32>
    %71 = vector.multi_reduction <add>, %70, %cst_27 [1] : vector<32x32xf32> to vector<32xf32>
    %72 = vector.shape_cast %71 : vector<32xf32> to vector<32x1xf32>
    %73 = vector.broadcast %72 : vector<32x1xf32> to vector<32x32xf32>
    %74 = arith.divf %70, %73 : vector<32x32xf32>
    %cst_28 = arith.constant dense<0.000000e+00> : vector<32x8xf32>
    %75 = tpu.matmul %74, %63, %cst_28 {dimension_numbers = #tpu.dot_dimension_numbers<[1], [0], [0], [1], [0, 0, 1, 1], [], []>, precision = #tpu.contract_precision<fp32>} : vector<32x32xf32>, vector<32x8xf32>, vector<32x8xf32> -> vector<32x8xf32>
    %76 = tpu.concatenate %24, %41, %58, %75 in 1 : vector<32x8xf32>, vector<32x8xf32>, vector<32x8xf32>, vector<32x8xf32> -> vector<32x32xf32>
    %c0_29 = arith.constant 0 : index
    %c0_30 = arith.constant 0 : index
    %77 = vector.load %arg8[%c0_29, %c0_30] : memref<32x32xf32, #tpu.memory_space<vmem>>, vector<32x32xf32>
    %cst_31 = arith.constant dense<0.000000e+00> : vector<32x32xf32>
    %78 = tpu.matmul %76, %77, %cst_31 {dimension_numbers = #tpu.dot_dimension_numbers<[1], [0], [0], [1], [0, 0, 1, 1], [], []>, precision = #tpu.contract_precision<fp32>} : vector<32x32xf32>, vector<32x32xf32>, vector<32x32xf32> -> vector<32x32xf32>
    %c0_32 = arith.constant 0 : index
    %c0_33 = arith.constant 0 : index
    %79 = vector.load %arg9[%c0_32, %c0_33] : memref<1x32xf32, #tpu.memory_space<vmem>>, vector<1x32xf32>
    %80 = vector.broadcast %79 : vector<1x32xf32> to vector<32x32xf32>
    %81 = arith.addf %78, %80 : vector<32x32xf32>
    %c0_34 = arith.constant 0 : index
    %c0_35 = arith.constant 0 : index
    %82 = vector.load %arg3[%c0_34, %c0_35] : memref<32x32xf32, #tpu.memory_space<vmem>>, vector<32x32xf32>
    %c0_36 = arith.constant 0 : index
    %c0_37 = arith.constant 0 : index
    %83 = vector.load %arg4[%c0_36, %c0_37] : memref<32x32xf32, #tpu.memory_space<vmem>>, vector<32x32xf32>
    %cst_38 = arith.constant dense<0.000000e+00> : vector<32x32xf32>
    %84 = tpu.matmul %82, %0, %cst_38 {dimension_numbers = #tpu.dot_dimension_numbers<[1], [0], [0], [1], [0, 0, 1, 1], [], []>, precision = #tpu.contract_precision<fp32>} : vector<32x32xf32>, vector<32x32xf32>, vector<32x32xf32> -> vector<32x32xf32>
    %cst_39 = arith.constant dense<0.000000e+00> : vector<32x32xf32>
    %85 = tpu.matmul %82, %84, %cst_39 {dimension_numbers = #tpu.dot_dimension_numbers<[1], [0], [0], [1], [0, 0, 1, 1], [], []>, precision = #tpu.contract_precision<fp32>} : vector<32x32xf32>, vector<32x32xf32>, vector<32x32xf32> -> vector<32x32xf32>
    %cst_40 = arith.constant dense<0.000000e+00> : vector<32x32xf32>
    %86 = tpu.matmul %83, %0, %cst_40 {dimension_numbers = #tpu.dot_dimension_numbers<[1], [0], [0], [1], [0, 0, 1, 1], [], []>, precision = #tpu.contract_precision<fp32>} : vector<32x32xf32>, vector<32x32xf32>, vector<32x32xf32> -> vector<32x32xf32>
    %cst_41 = arith.constant dense<0.000000e+00> : vector<32x32xf32>
    %87 = tpu.matmul %83, %86, %cst_41 {dimension_numbers = #tpu.dot_dimension_numbers<[1], [0], [0], [1], [0, 0, 1, 1], [], []>, precision = #tpu.contract_precision<fp32>} : vector<32x32xf32>, vector<32x32xf32>, vector<32x32xf32> -> vector<32x32xf32>
    %88 = tpu.concatenate %0, %84, %85, %86, %87 in 1 : vector<32x32xf32>, vector<32x32xf32>, vector<32x32xf32>, vector<32x32xf32>, vector<32x32xf32> -> vector<32x160xf32>
    %c0_42 = arith.constant 0 : index
    %c0_43 = arith.constant 0 : index
    %89 = vector.load %arg10[%c0_42, %c0_43] : memref<160x32xf32, #tpu.memory_space<vmem>>, vector<160x32xf32>
    %cst_44 = arith.constant dense<0.000000e+00> : vector<32x32xf32>
    %90 = tpu.matmul %88, %89, %cst_44 {dimension_numbers = #tpu.dot_dimension_numbers<[1], [0], [0], [1], [0, 0, 1, 1], [], []>, precision = #tpu.contract_precision<fp32>} : vector<32x160xf32>, vector<160x32xf32>, vector<32x32xf32> -> vector<32x32xf32>
    %c0_45 = arith.constant 0 : index
    %c0_46 = arith.constant 0 : index
    %91 = vector.load %arg11[%c0_45, %c0_46] : memref<1x32xf32, #tpu.memory_space<vmem>>, vector<1x32xf32>
    %92 = vector.broadcast %91 : vector<1x32xf32> to vector<32x32xf32>
    %93 = arith.addf %90, %92 : vector<32x32xf32>
    %94 = tpu.concatenate %93, %81 in 1 : vector<32x32xf32>, vector<32x32xf32> -> vector<32x64xf32>
    %c0_47 = arith.constant 0 : index
    %c0_48 = arith.constant 0 : index
    %95 = vector.load %arg12[%c0_47, %c0_48] : memref<64x32xf32, #tpu.memory_space<vmem>>, vector<64x32xf32>
    %cst_49 = arith.constant dense<0.000000e+00> : vector<32x32xf32>
    %96 = tpu.matmul %94, %95, %cst_49 {dimension_numbers = #tpu.dot_dimension_numbers<[1], [0], [0], [1], [0, 0, 1, 1], [], []>, precision = #tpu.contract_precision<fp32>} : vector<32x64xf32>, vector<64x32xf32>, vector<32x32xf32> -> vector<32x32xf32>
    %c0_50 = arith.constant 0 : index
    %c0_51 = arith.constant 0 : index
    %97 = vector.load %arg13[%c0_50, %c0_51] : memref<1x32xf32, #tpu.memory_space<vmem>>, vector<1x32xf32>
    %98 = vector.broadcast %97 : vector<1x32xf32> to vector<32x32xf32>
    %99 = arith.addf %96, %98 : vector<32x32xf32>
    %cst_52 = arith.constant 0.000000e+00 : f32
    %100 = vector.broadcast %cst_52 : f32 to vector<32x32xf32>
    %101 = arith.subf %100, %99 : vector<32x32xf32>
    %102 = math.exp %101 : vector<32x32xf32>
    %cst_53 = arith.constant 1.000000e+00 : f32
    %103 = vector.broadcast %cst_53 : f32 to vector<32x32xf32>
    %104 = arith.addf %103, %102 : vector<32x32xf32>
    %cst_54 = arith.constant 1.000000e+00 : f32
    %105 = vector.broadcast %cst_54 : f32 to vector<32x32xf32>
    %106 = arith.divf %105, %104 : vector<32x32xf32>
    %107 = arith.mulf %106, %93 : vector<32x32xf32>
    %cst_55 = arith.constant 1.000000e+00 : f32
    %108 = vector.broadcast %cst_55 : f32 to vector<32x32xf32>
    %109 = arith.subf %108, %106 : vector<32x32xf32>
    %110 = arith.mulf %109, %81 : vector<32x32xf32>
    %111 = arith.addf %107, %110 : vector<32x32xf32>
    %112 = tpu.concatenate %111, %1 in 1 : vector<32x32xf32>, vector<32x32xf32> -> vector<32x64xf32>
    %c0_56 = arith.constant 0 : index
    %c0_57 = arith.constant 0 : index
    %113 = vector.load %arg14[%c0_56, %c0_57] : memref<64x32xf32, #tpu.memory_space<vmem>>, vector<64x32xf32>
    %cst_58 = arith.constant dense<0.000000e+00> : vector<32x32xf32>
    %114 = tpu.matmul %112, %113, %cst_58 {dimension_numbers = #tpu.dot_dimension_numbers<[1], [0], [0], [1], [0, 0, 1, 1], [], []>, precision = #tpu.contract_precision<fp32>} : vector<32x64xf32>, vector<64x32xf32>, vector<32x32xf32> -> vector<32x32xf32>
    %c0_59 = arith.constant 0 : index
    %c0_60 = arith.constant 0 : index
    %115 = vector.load %arg15[%c0_59, %c0_60] : memref<1x32xf32, #tpu.memory_space<vmem>>, vector<1x32xf32>
    %116 = vector.broadcast %115 : vector<1x32xf32> to vector<32x32xf32>
    %117 = arith.addf %114, %116 : vector<32x32xf32>
    %cst_61 = arith.constant 0.000000e+00 : f32
    %118 = vector.broadcast %cst_61 : f32 to vector<32x32xf32>
    %119 = arith.subf %118, %117 : vector<32x32xf32>
    %120 = math.exp %119 : vector<32x32xf32>
    %cst_62 = arith.constant 1.000000e+00 : f32
    %121 = vector.broadcast %cst_62 : f32 to vector<32x32xf32>
    %122 = arith.addf %121, %120 : vector<32x32xf32>
    %cst_63 = arith.constant 1.000000e+00 : f32
    %123 = vector.broadcast %cst_63 : f32 to vector<32x32xf32>
    %124 = arith.divf %123, %122 : vector<32x32xf32>
    %125 = arith.mulf %124, %111 : vector<32x32xf32>
    %cst_64 = arith.constant 1.000000e+00 : f32
    %126 = vector.broadcast %cst_64 : f32 to vector<32x32xf32>
    %127 = arith.subf %126, %124 : vector<32x32xf32>
    %128 = arith.mulf %127, %1 : vector<32x32xf32>
    %129 = arith.addf %125, %128 : vector<32x32xf32>
    %c0_65 = arith.constant 0 : index
    %c0_66 = arith.constant 0 : index
    %130 = vector.load %arg16[%c0_65, %c0_66] : memref<32x32xf32, #tpu.memory_space<vmem>>, vector<32x32xf32>
    tpu.vector_store %arg16[%c0_65, %c0_66], %129 {strides = array<i32>} : memref<32x32xf32, #tpu.memory_space<vmem>>, vector<32x32xf32>,
    return
  }
  func.func @transform_0(%arg0: i32) -> (i32, i32) {
    %c0_i32 = arith.constant 0 : i32
    %c0_i32_0 = arith.constant 0 : i32
    return %arg0, %c0_i32 : i32, i32
  }
  func.func @transform_1(%arg0: i32) -> (i32, i32) {
    %c0_i32 = arith.constant 0 : i32
    %c0_i32_0 = arith.constant 0 : i32
    return %arg0, %c0_i32 : i32, i32
  }
  func.func @transform_2(%arg0: i32) -> (i32, i32) {
    %c0_i32 = arith.constant 0 : i32
    %c0_i32_0 = arith.constant 0 : i32
    %c0_i32_1 = arith.constant 0 : i32
    return %c0_i32, %c0_i32_0 : i32, i32
  }
  func.func @transform_3(%arg0: i32) -> (i32, i32) {
    %c0_i32 = arith.constant 0 : i32
    %c0_i32_0 = arith.constant 0 : i32
    %c0_i32_1 = arith.constant 0 : i32
    return %c0_i32, %c0_i32_0 : i32, i32
  }
  func.func @transform_4(%arg0: i32) -> (i32, i32) {
    %c0_i32 = arith.constant 0 : i32
    %c0_i32_0 = arith.constant 0 : i32
    %c0_i32_1 = arith.constant 0 : i32
    return %c0_i32, %c0_i32_0 : i32, i32
  }
  func.func @transform_5(%arg0: i32) -> (i32, i32) {
    %c0_i32 = arith.constant 0 : i32
    %c0_i32_0 = arith.constant 0 : i32
    %c0_i32_1 = arith.constant 0 : i32
    return %c0_i32, %c0_i32_0 : i32, i32
  }
  func.func @transform_6(%arg0: i32) -> (i32, i32) {
    %c0_i32 = arith.constant 0 : i32
    %c0_i32_0 = arith.constant 0 : i32
    %c0_i32_1 = arith.constant 0 : i32
    return %c0_i32, %c0_i32_0 : i32, i32
  }
  func.func @transform_7(%arg0: i32) -> (i32, i32) {
    %c0_i32 = arith.constant 0 : i32
    %c0_i32_0 = arith.constant 0 : i32
    %c0_i32_1 = arith.constant 0 : i32
    return %c0_i32, %c0_i32_0 : i32, i32
  }
  func.func @transform_8(%arg0: i32) -> (i32, i32) {
    %c0_i32 = arith.constant 0 : i32
    %c0_i32_0 = arith.constant 0 : i32
    %c0_i32_1 = arith.constant 0 : i32
    return %c0_i32, %c0_i32_0 : i32, i32
  }
  func.func @transform_9(%arg0: i32) -> (i32, i32) {
    %c0_i32 = arith.constant 0 : i32
    %c0_i32_0 = arith.constant 0 : i32
    %c0_i32_1 = arith.constant 0 : i32
    return %c0_i32, %c0_i32_0 : i32, i32
  }
  func.func @transform_10(%arg0: i32) -> (i32, i32) {
    %c0_i32 = arith.constant 0 : i32
    %c0_i32_0 = arith.constant 0 : i32
    %c0_i32_1 = arith.constant 0 : i32
    return %c0_i32, %c0_i32_0 : i32, i32
  }
  func.func @transform_11(%arg0: i32) -> (i32, i32) {
    %c0_i32 = arith.constant 0 : i32
    %c0_i32_0 = arith.constant 0 : i32
    %c0_i32_1 = arith.constant 0 : i32
    return %c0_i32, %c0_i32_0 : i32, i32
  }
  func.func @transform_12(%arg0: i32) -> (i32, i32) {
    %c0_i32 = arith.constant 0 : i32
    %c0_i32_0 = arith.constant 0 : i32
    %c0_i32_1 = arith.constant 0 : i32
    return %c0_i32, %c0_i32_0 : i32, i32
  }
  func.func @transform_13(%arg0: i32) -> (i32, i32) {
    %c0_i32 = arith.constant 0 : i32
    %c0_i32_0 = arith.constant 0 : i32
    %c0_i32_1 = arith.constant 0 : i32
    return %c0_i32, %c0_i32_0 : i32, i32
  }
  func.func @transform_14(%arg0: i32) -> (i32, i32) {
    %c0_i32 = arith.constant 0 : i32
    %c0_i32_0 = arith.constant 0 : i32
    %c0_i32_1 = arith.constant 0 : i32
    return %c0_i32, %c0_i32_0 : i32, i32
  }
  func.func @transform_15(%arg0: i32) -> (i32, i32) {
    %c0_i32 = arith.constant 0 : i32
    %c0_i32_0 = arith.constant 0 : i32
    return %arg0, %c0_i32 : i32, i32
  }
}

</mosaic_0001>

<bundles_post_ra>
// kernel: spatial_block_pallas.1
= control target key start
LH: loop header
LB: loop body
LE: loop exit
PB: predicated region body
PF: predicated region fallthrough
CT: control target
= control target key end

     0   :  { %s18988_s0 = inlined_call_operand.vmem [shape: f32[64,32], index: 0, kind: input, shape index: {}]   ;;  %s18989_s1 = inlined_call_operand.vmem [shape: f32[64,32], index: 1, kind: input, shape index: {}]   ;;  %s18990_s2 = inlined_call_operand.vmem [shape: f32[32,32], index: 2, kind: input, shape index: {}]   ;;  %s18991_s3 = inlined_call_operand.vmem [shape: f32[32,32], index: 3, kind: input, shape index: {}]   ;;  %s18992_s4 = inlined_call_operand.vmem [shape: f32[32,32], index: 4, kind: input, shape index: {}]   ;;  %s18993_s5 = inlined_call_operand.vmem [shape: f32[32,96], index: 5, kind: input, shape index: {}]   ;;  %s18994_s6 = inlined_call_operand.vmem [shape: f32[1,96], index: 6, kind: input, shape index: {}]   ;;  %s18995_s7 = inlined_call_operand.vmem [shape: f32[32,32], index: 7, kind: input, shape index: {}]   ;;  %s18996_s8 = inlined_call_operand.vmem [shape: f32[1,32], index: 8, kind: input, shape index: {}]   ;;  %s18997_s9 = inlined_call_operand.vmem [shape: f32[160,32], index: 9, kind: input, shape index: {}]   ;;  %s18998_s10 = inlined_call_operand.vmem [shape: f32[1,32], index: 10, kind: input, shape index: {}]   ;;  %s18999_s11 = inlined_call_operand.vmem [shape: f32[64,32], index: 11, kind: input, shape index: {}]   ;;  %s19000_s12 = inlined_call_operand.vmem [shape: f32[1,32], index: 12, kind: input, shape index: {}]   ;;  %s19001_s13 = inlined_call_operand.vmem [shape: f32[64,32], index: 13, kind: input, shape index: {}]   ;;  %s19002_s14 = inlined_call_operand.vmem [shape: f32[1,32], index: 14, kind: input, shape index: {}]   ;;  %s19003_s15 = inlined_call_operand.hbm [shape: f32[64,32], index: 15, kind: output, shape index: {}]  }
   0x1   :  { %19087 = sst [smem:[#allocation32_spill]] %s18988_s0 }
   0x2   :  { %19088 = sst [smem:[#allocation33_spill]] %s18990_s2 }
   0x3   :  { %19089 = sst [smem:[#allocation34_spill]] %s18991_s3 }
   0x4   :  { %19090 = sst [smem:[#allocation35_spill]] %s18992_s4 }
   0x5   :  { %20 = vsyncpa [#allocation3], 0 }
   0x6   :  { %22 = vsyncpa [#allocation3 + $0x1], 0  ;;  %s16287_s18 = smov 0   ;;  %s16289_s19 = smov 0  }
   0x7   :  { %s16291_s20 = smov 0   ;;  %s16293_s21 = smov 0  }
   0x8 LB: > { %19091 = sst [smem:[#allocation5_spill]] %s16183_s20  ;;  %s16308_s22 = sadd.s32 4294967295, %s16187_s21   ;;  %s16187_s21 = sphi %s16293_s21, %s19216_s21   ;;  %s16183_s20 = sphi %s16291_s20, %s19221_s20   ;;  %s16179_s19 = sphi %s16289_s19, %s19220_s19   ;;  %s16175_s18 = sphi %s16287_s18, %s19219_s18  }
   0x9   : > { %s12245_s23 = sadd.s32 4294967294, %s16187_s21   ;;  %s16312_s24 = sadd.s32 1, %s16187_s21  }
   0xa   : > { %19092 = sst [smem:[#allocation6_spill]] %s16312_s24  ;;  %s360_s25 = sadd.s32 1, %s16183_s20 }
   0xb   : > { %s357_s26 = ssub.s32 %s16187_s21, %s16312_s24  ;;  %p370_p0 = scmp.ne.s32.totalorder %s16183_s20, %s16179_s19 }
   0xc   : > { %p358_p1 = scmp.eq.s32.totalorder %s357_s26, 0  ;;  %p371_p2 = scmp.eq.s32.totalorder %s16308_s22, 1 }
   0xd   : > { %p376_p3 = scmp.ne.s32.totalorder %s16179_s19, %s16175_s18  ;;  %p377_p4 = scmp.eq.s32.totalorder %s12245_s23, 1 }
   0xe   : > { %s16323_s27 = scalar_select %p358_p1, %s16183_s20, %s360_s25  }
   0xf   : > { %p16325_p5 = por %p371_p2, %p370_p0  ;;  %p16329_p6 = por %p377_p4, %p376_p3 }
  0x10   : > { %19093 = sst [smem:[#allocation7_spill]] %s16323_s27  ;;  %p12248_p7 = scmp.ge.s32.totalorder %s16187_s21, 1 }
  0x11   : > { %p452_p8 = scmp.lt.s32.totalorder %s16187_s21, 3 }
  0x13   : > { %p453_p9 = pnand %p12248_p7, %p452_p8 }
  0x15   : > { %456 = sbr.rel (%p453_p9) target bundleno = 5212 (0x145c), region = 80 }
  0x1c   : > { %v526_v0 = vld [vmem:[%s18993_s5] sm:$0xff]  ;;  %v527_v1 = vld [vmem:[%s18993_s5 + $0x8] sm:$0xff]  ;;  %v528_v2 = vld [vmem:[%s18993_s5 + $0x10] sm:$0xff]  ;;  %s12250_s27 = sshll.u32 %s16308_s22, 2  ;;  %vm537_vm0 = vcmask 261120   ;;  %s19096_s0 = sld [smem:[#allocation32_spill]] }
  0x1d   : > { %v551_v3 = vand.u32 4294901760, %v526_v0  ;;  %v554_v4 = vand.u32 4294901760, %v527_v1  ;;  %v529_v5 = vld [vmem:[%s18993_s5 + $0x18] sm:$0xff]  ;;  %v557_v6 = vand.u32 4294901760, %v528_v2  ;;  %p506_p10 = scmp.lt.s32.totalorder %s12250_s27, 7  ;;  %vm1184_vm1 = vcmask 64512  }
  0x1e   : > { %v560_v7 = vand.u32 4294901760, %v529_v5  ;;  %s19011_s25 = smov 96   ;;  %s19097_s4 = sld [smem:[#allocation35_spill]]  ;;  %vm6537_vm2 = vcmask 130048   ;;  %vm6542_vm3 = vcmask 195584   ;;  %vm9724_vm4 = vcmask 523264  }
  0x1f   : > { %v16348_v8 = vpack.c.bf16 %v554_v4, %v551_v3  ;;  %v16350_v9 = vsub.f32 %v526_v0, %v551_v3  ;;  %v16352_v10 = vsub.f32 %v527_v1, %v554_v4  ;;  %v16354_v11 = vsub.f32 %v528_v2, %v557_v6  ;;  %s19223_s27 = smov (!%p506_p10, %s12250_s27), 7  ;;  %v12254_v0 = vld [vmem:[%s18994_s6] ss:$0 sm:$0xff]  ;;  %s16191_s30 = smov 88  }
  0x20   : > { %v16358_v12 = vsub.f32 %v529_v5, %v560_v7  ;;  %v16362_v15 = vpack.c.bf16 %v560_v7, %v557_v6  ;;  %s19007_s20 = sshll.u32 %s19223_s27, 3  ;;  %s16192_s17 = smov 120   ;;  %vm9729_vm5 = vcmask 785408  }
  0x21   : > { %v662_v13 = vand.u32 4294901760, %v16350_v9  ;;  %v669_v14 = vand.u32 4294901760, %v16352_v10  ;;  %v676_v16 = vand.u32 4294901760, %v16354_v11  ;;  %14522 = vmatprep.subr.bf16.mxu1 %v16348_v8  ;;  %v14537_v44 = vpack.c.bf16 %v16352_v10, %v16350_v9  ;;  %s16193_s23 = smov 56   ;;  %s16194_s26 = smov 80  }
  0x22   : > { %v683_v17 = vand.u32 4294901760, %v16358_v12  ;;  %s16373_s16 = scalar_lea.vmem %s19096_s0, %s19007_s20  ;;  %14524 = vmatpush3.bf16.msra.mxu1 %v16348_v8  ;;  %v14541_v52 = vpack.c.bf16 %v16358_v12, %v16354_v11  ;;  %s19009_s20 = smov 64  }
  0x23   : > { %v663_v18 = vsub.f32 %v16350_v9, %v662_v13  ;;  %v670_v19 = vsub.f32 %v16352_v10, %v669_v14  ;;  %v677_v20 = vsub.f32 %v16354_v11, %v676_v16  ;;  %v518_v21 = vld [vmem:[%s16373_s16] sm:$0xff]  ;;  %v519_v22 = vld [vmem:[%s16373_s16 + $0x8] sm:$0xff]  ;;  %v520_v23 = vld [vmem:[%s16373_s16 + $0x10] sm:$0xff]  ;;  %14526 = vmatprep.subr.bf16.mxu1 %v16362_v15  ;;  %v14553_v58 = vpack.c.bf16 %v669_v14, %v662_v13  ;;  %s16195_s24 = smov 112   ;;  %s19099_s2 = sld [smem:[#allocation33_spill]] }
  0x24   : > { %v684_v24 = vsub.f32 %v16358_v12, %v683_v17  ;;  %v539_v25 = vsel %vm537_vm0, %v518_v21, 0  ;;  %v542_v26 = vsel %vm537_vm0, %v519_v22, 0  ;;  %v521_v27 = vld [vmem:[%s16373_s16 + $0x18] sm:$0xff]  ;;  %v545_v34 = vsel %vm537_vm0, %v520_v23, 0  ;;  %s19100_s3 = sld [smem:[#allocation34_spill]] }
  0x25   : > { %v664_v28 = vand.u32 4294901760, %v663_v18  ;;  %v671_v29 = vand.u32 4294901760, %v670_v19  ;;  %v678_v30 = vand.u32 4294901760, %v677_v20  ;;  %v16395_v31 = vand.u32 4294901760, %v539_v25 }
  0x26   : > { %v685_v32 = vand.u32 4294901760, %v684_v24  ;;  %v16397_v33 = vand.u32 4294901760, %v542_v26  ;;  %14528 = vmatpush3.bf16.msra.mxu1 %v16362_v15  ;;  %v16402_v36 = vand.u32 4294901760, %v545_v34  ;;  %v548_v37 = vsel %vm537_vm0, %v521_v27, 0 }
  0x27   : > { %v14529_v35 = vpack.c.bf16 %v671_v29, %v664_v28  ;;  %13103 = vmatprep.mubr.f32.mxu0 %v16395_v31  ;;  %v649_v40 = vand.u32 4294901760, %v548_v37  ;;  %v620_v41 = vsub.f32 %v539_v25, %v16395_v31  ;;  %v14557_v59 = vpack.c.bf16 %v683_v17, %v676_v16 }
  0x28   : > { %v14533_v38 = vpack.c.bf16 %v685_v32, %v678_v30  ;;  %v630_v39 = vsub.f32 %v542_v26, %v16397_v33  ;;  %v640_v42 = vsub.f32 %v545_v34, %v16402_v36 }
  0x29   : > { %14530 = vmatprep.subr.bf16.mxu0 %v14529_v35  ;;  %v650_v45 = vsub.f32 %v548_v37, %v649_v40  ;;  %v621_v46 = vand.u32 4294901760, %v620_v41 }
  0x2a   : > { %14532 = vmatpush3.bf16.msra.mxu0 %v14529_v35  ;;  %v631_v43 = vand.u32 4294901760, %v630_v39  ;;  %v641_v47 = vand.u32 4294901760, %v640_v42 }
  0x2b   : > { %14534 = vmatprep.subr.bf16.mxu0 %v14533_v38  ;;  %v651_v49 = vand.u32 4294901760, %v650_v45  ;;  %v622_v50 = vsub.f32 %v620_v41, %v621_v46 }
  0x2c   : > { %v632_v48 = vsub.f32 %v630_v39, %v631_v43  ;;  %v642_v51 = vsub.f32 %v640_v42, %v641_v47 }
  0x2d   : > { %v623_v53 = vand.u32 4294901760, %v622_v50  ;;  %v652_v55 = vsub.f32 %v650_v45, %v651_v49 }
  0x2e   : > { %14536 = vmatpush3.bf16.msra.mxu0 %v14533_v38  ;;  %v633_v54 = vand.u32 4294901760, %v632_v48  ;;  %v643_v56 = vand.u32 4294901760, %v642_v51 }
  0x2f   : > { %14538 = vmatprep.subr.bf16.mxu0 %v14537_v44  ;;  %13089 = vmatprep.mubr.f32.mxu1 %v623_v53  ;;  %v653_v57 = vand.u32 4294901760, %v652_v55 }
  0x30   : > { %13090 = vmatmul.mubr.f32.vlgmr.msra.gmra.mrb[0].mxu1 %v633_v54 }
  0x31   : > { %13104 = vmatmul.mubr.f32.vlgmr.msra.gmra.mrb[0].mxu0 %v16397_v33  ;;  %13092 = vmatprep.mubr.f32.mxu1 %v643_v56 }
  0x32   : > { %14540 = vmatpush3.bf16.msra.mxu0 %v14537_v44  ;;  %13106 = vmatprep.mubr.f32.mxu0 %v16402_v36 }
  0x33   : > { %14542 = vmatprep.subr.bf16.mxu0 %v14541_v52 }
  0x34   : > { %13093 = vmatmul.mubr.f32.gmra.mrb[2].mxu1 %v653_v57 }
  0x35   : > { %13107 = vmatmul.mubr.f32.gmra.mrb[2].mxu0 %v649_v40 }
  0x36   : > { %14544 = vmatpush3.bf16.msra.mxu0 %v14541_v52  ;;  %13117 = vmatprep.mubr.f32.mxu0 %v620_v41 }
  0x37   : > { %14546 = vmatprep.subr.bf16.mxu0 %v16348_v8 }
  0x39   : > { %13118 = vmatmul.mubr.f32.vlgmr.msra.gmra.mrb[0].mxu0 %v630_v39 }
  0x3a   : > { %14548 = vmatpush3.bf16.msra.mxu0 %v16348_v8  ;;  %13120 = vmatprep.mubr.f32.mxu0 %v640_v42 }
  0x3b   : > { %14550 = vmatprep.subr.bf16.mxu0 %v16362_v15 }
  0x3d   : > { %13121 = vmatmul.mubr.f32.gmra.mrb[2].mxu0 %v650_v45 }
  0x3e   : > { %14552 = vmatpush3.bf16.msra.mxu0 %v16362_v15  ;;  %13131 = vmatprep.mubr.f32.mxu0 %v621_v46 }
  0x3f   : > { %14554 = vmatprep.subr.bf16.mxu0 %v14553_v58 }
  0x41   : > { %13132 = vmatmul.mubr.f32.vlgmr.msra.gmra.mrb[0].mxu0 %v631_v43 }
  0x42   : > { %14556 = vmatpush3.bf16.msra.mxu0 %v14553_v58  ;;  %13134 = vmatprep.mubr.f32.mxu0 %v641_v47 }
  0x43   : > { %14558 = vmatprep.subr.bf16.mxu0 %v14557_v59 }
  0x45   : > { %13135 = vmatmul.mubr.f32.gmra.mrb[2].mxu0 %v651_v49 }
  0x46   : > { %14560 = vmatpush3.bf16.msra.mxu0 %v14557_v59  ;;  %13145 = vmatprep.mubr.f32.mxu0 %v16395_v31 }
  0x47   : > { %14562 = vmatprep.subr.bf16.mxu0 %v16348_v8 }
  0x49   : > { %13146 = vmatmul.mubr.f32.vlgmr.msra.gmra.mrb[0].mxu0 %v16397_v33 }
  0x4a   : > { %14564 = vmatpush3.bf16.msra.mxu0 %v16348_v8  ;;  %13148 = vmatprep.mubr.f32.mxu0 %v16402_v36 }
  0x4b   : > { %14566 = vmatprep.subr.bf16.mxu0 %v16362_v15 }
  0x4d   : > { %13149 = vmatmul.mubr.f32.gmra.mrb[2].mxu0 %v649_v40 }
  0x4e   : > { %14568 = vmatpush3.bf16.msra.mxu0 %v16362_v15  ;;  %13159 = vmatprep.mubr.f32.mxu0 %v16395_v31 }
  0x51   : > { %13160 = vmatmul.mubr.f32.vlgmr.msra.gmra.mrb[0].mxu0 %v16397_v33 }
  0x52   : > { %13162 = vmatprep.mubr.f32.mxu0 %v16402_v36 }
  0x55   : > { %13163 = vmatmul.mubr.f32.gmra.mrb[2].mxu0 %v649_v40 }
 0x103   : > { %v13091_v60 = vpop.f32.mrb[0].mxu1 }
 0x104   : > { %v625_v61 = vpop.f32.mrb[1].mxu1  ;;  %v636_v1 = vadd.f32 %v13091_v60, %v12254_v0 }
 0x105   : > { %v626_v2 = vadd.f32 %v12254_v0, %v625_v61 }
 0x107   : > { %v13094_v62 = vpop.f32.mrb[2].mxu1 }
 0x108   : > { %v645_v63 = vpop.f32.mrb[3].mxu1  ;;  %v656_v6 = vadd.f32 %v13094_v62, %v12254_v0 }
 0x109   : > { %v646_v8 = vadd.f32 %v12254_v0, %v645_v63 }
 0x124   : > { %v13161_v3 = vpop.f32.mrb[0].mxu0 }
 0x125   : > { %v16439_v4 = vadd.f32 %v13161_v3, %v636_v1  ;;  %v1142_v5 = vpop.f32.mrb[1].mxu0 }
 0x126   : > { %v16441_v7 = vadd.f32 %v1142_v5, %v626_v2 }
 0x127   : > { %v16470_v21 = vmul.f32 0.35355338, %v16439_v4 }
 0x128   : > { %v13164_v9 = vpop.f32.mrb[2].mxu0  ;;  %1176 = vrot.lane.b32.xlu0 %v16441_v7, %s19011_s25  ;;  %v16446_v10 = vmul.f32 0.35355338, %v16441_v7 }
 0x129   : > { %v16448_v11 = vadd.f32 %v13164_v9, %v656_v6  ;;  %v1154_v12 = vpop.f32.mrb[3].mxu0  ;;  %v1189_v28 = vsel %vm1184_vm1, %v16470_v21, 0 }
 0x12a   : > { %v16450_v13 = vadd.f32 %v1154_v12, %v646_v8  ;;  %v1186_v14 = vsel %vm1184_vm1, %v16446_v10, 0  ;;  %v16487_v35 = vand.u32 4294901760, %v1189_v28 }
 0x12b   : > { %v16454_v15 = vand.u32 4294901760, %v1186_v14  ;;  %v16481_v29 = vmul.f32 0.35355338, %v16448_v11 }
 0x12c   : > { %1180 = vrot.lane.b32.xlu1 %v16450_v13, %s19011_s25  ;;  %1178 = vrot.lane.b32.xlu0 %v16439_v4, %s19011_s25  ;;  %v16474_v24 = vmul.f32 0.35355338, %v16450_v13  ;;  %v1285_v46 = vsub.f32 %v1189_v28, %v16487_v35 }
 0x12d   : > { %v16461_v16 = vsub.f32 %v1186_v14, %v16454_v15  ;;  %v1195_v40 = vsel %vm1184_vm1, %v16481_v29, 0 }
 0x12e   : > { %v1192_v33 = vsel %vm1184_vm1, %v16474_v24, 0  ;;  %v16503_v47 = vand.u32 4294901760, %v1195_v40  ;;  %v1286_v57 = vand.u32 4294901760, %v1285_v46 }
 0x12f   : > { %v1276_v17 = vand.u32 4294901760, %v16461_v16  ;;  %v16497_v42 = vand.u32 4294901760, %v1192_v33 }
 0x130   : > { %1182 = vrot.lane.b32.xlu1 %v16448_v11, %s19011_s25  ;;  %v1305_v58 = vsub.f32 %v1195_v40, %v16503_v47  ;;  %v1287_v62 = vsub.f32 %v1285_v46, %v1286_v57  ;;  %s16202_s25 = smov 24  }
 0x131   : > { %v1277_v18 = vsub.f32 %v16461_v16, %v1276_v17  ;;  %v1295_v52 = vsub.f32 %v1192_v33, %v16497_v42 }
 0x132   : > { %v1306_v0 = vand.u32 4294901760, %v1305_v58  ;;  %v1288_v3 = vand.u32 4294901760, %v1287_v62 }
 0x133   : > { %v1278_v19 = vand.u32 4294901760, %v1277_v18  ;;  %v1296_v59 = vand.u32 4294901760, %v1295_v52 }
 0x134   : > { %v1307_v6 = vsub.f32 %v1305_v58, %v1306_v0 }
 0x135   : > { %13173 = vmatprep.mubr.f32.mxu1 %v1278_v19  ;;  %v1297_v1 = vsub.f32 %v1295_v52, %v1296_v59 }
 0x136   : > { %v1308_v12 = vand.u32 4294901760, %v1307_v6 }
 0x137   : > { %v1298_v8 = vand.u32 4294901760, %v1297_v1 }
 0x19a   : > { %v1177_v20 = vpop.permute.xlu0 %1176 }
 0x19b   : > { %v1197_v22 = vsel %vm1184_vm1, %v1177_v20, 0 }
 0x19c   : > { %v1206_v23 = vand.u32 4294901760, %v1197_v22 }
 0x19e   : > { %v16476_v25 = vsub.f32 %v1197_v22, %v1206_v23  ;;  %v1181_v26 = vpop.permute.xlu1 %1180  ;;  %v1179_v27 = vpop.permute.xlu0 %1178 }
 0x19f   : > { %v1201_v30 = vsel %vm1184_vm1, %v1181_v26, 0  ;;  %v1199_v31 = vsel %vm1184_vm1, %v1179_v27, 0  ;;  %v16558_v27 = vld [vmem:[%s19097_s4 + $0x10] sm:$0xff] }
 0x1a0   : > { %v1209_v32 = vand.u32 4294901760, %v1199_v31  ;;  %v1212_v34 = vand.u32 4294901760, %v1201_v30  ;;  %v1317_v36 = vand.u32 4294901760, %v16476_v25 }
 0x1a2   : > { %v16490_v37 = vpack.c.bf16 %v1209_v32, %v1206_v23  ;;  %v16492_v38 = vsub.f32 %v1199_v31, %v1209_v32  ;;  %v1183_v39 = vpop.permute.xlu1 %1182  ;;  %v1330_v45 = vsub.f32 %v1201_v30, %v1212_v34  ;;  %v1318_v50 = vsub.f32 %v16476_v25, %v1317_v36  ;;  %v16564_v31 = vld [vmem:[%s19097_s4 + $0x18] sm:$0xff] }
 0x1a3   : > { %v1203_v41 = vsel %vm1184_vm1, %v1183_v39, 0 }
 0x1a4   : > { %v1324_v43 = vand.u32 4294901760, %v16492_v38  ;;  %v1215_v44 = vand.u32 4294901760, %v1203_v41  ;;  %14570 = vmatprep.subr.bf16.mxu1 %v16490_v37  ;;  %v1331_v55 = vand.u32 4294901760, %v1330_v45  ;;  %v1319_v56 = vand.u32 4294901760, %v1318_v50 }
 0x1a5   : > { %14572 = vmatpush3.bf16.xpose.msra.mxu1 %v16490_v37  ;;  %v14585_v14 = vpack.c.bf16 %v16492_v38, %v16476_v25 }
 0x1a6   : > { %v16505_v48 = vpack.c.bf16 %v1215_v44, %v1212_v34  ;;  %v1337_v49 = vsub.f32 %v1203_v41, %v1215_v44  ;;  %v1325_v51 = vsub.f32 %v16492_v38, %v1324_v43  ;;  %v1332_v63 = vsub.f32 %v1330_v45, %v1331_v55 }
 0x1a7   : > { %v14601_v19 = vpack.c.bf16 %v1324_v43, %v1317_v36 }
 0x1a8   : > { %v1338_v53 = vand.u32 4294901760, %v1337_v49  ;;  %14574 = vmatprep.subr.bf16.mxu1 %v16505_v48  ;;  %v1326_v54 = vand.u32 4294901760, %v1325_v51  ;;  %v1333_v5 = vand.u32 4294901760, %v1332_v63  ;;  %v14589_v18 = vpack.c.bf16 %v1337_v49, %v1330_v45 }
 0x1aa   : > { %v14577_v60 = vpack.c.bf16 %v1326_v54, %v1319_v56  ;;  %v1339_v61 = vsub.f32 %v1337_v49, %v1338_v53  ;;  %v14605_v20 = vpack.c.bf16 %v1338_v53, %v1331_v55 }
 0x1ac   : > { %v1340_v2 = vand.u32 4294901760, %v1339_v61 }
 0x1ad   : > { %14576 = vmatpush3.bf16.xpose.msra.mxu1 %v16505_v48 }
 0x1ae   : > { %14578 = vmatprep.subr.bf16.mxu1 %v14577_v60  ;;  %v14581_v9 = vpack.c.bf16 %v1340_v2, %v1333_v5 }
 0x1b4   : > { %13174 = vmatmul.mubr.f32.vlgmr.msra.gmra.mrb[4].mxu1 %v1288_v3 }
 0x1b5   : > { %13176 = vmatprep.mubr.f32.mxu1 %v1298_v8  ;;  %14580 = vmatpush3.bf16.xpose.msra.mxu1 %v14577_v60 }
 0x1b6   : > { %14582 = vmatprep.subr.bf16.mxu1 %v14581_v9 }
 0x1b8   : > { %13177 = vmatmul.mubr.f32.gmra.mrb[6].mxu1 %v1308_v12 }
 0x1b9   : > { %13187 = vmatprep.mubr.f32.mxu1 %v16454_v15 }
 0x1bd   : > { %14584 = vmatpush3.bf16.xpose.msra.mxu1 %v14581_v9 }
 0x1be   : > { %14586 = vmatprep.subr.bf16.mxu1 %v14585_v14 }
 0x1c4   : > { %13188 = vmatmul.mubr.f32.vlgmr.msra.gmra.mrb[4].mxu1 %v16487_v35 }
 0x1c5   : > { %13190 = vmatprep.mubr.f32.mxu1 %v16497_v42  ;;  %14588 = vmatpush3.bf16.xpose.msra.mxu1 %v14585_v14 }
 0x1c6   : > { %14590 = vmatprep.subr.bf16.mxu1 %v14589_v18 }
 0x1c8   : > { %13191 = vmatmul.mubr.f32.gmra.mrb[6].mxu1 %v16503_v47 }
 0x1c9   : > { %13201 = vmatprep.mubr.f32.mxu1 %v16461_v16  ;;  %v16545_v16 = vld [vmem:[%s19097_s4 + $0x8] sm:$0xff] }
 0x1cd   : > { %14592 = vmatpush3.bf16.xpose.msra.mxu1 %v14589_v18 }
 0x1ce   : > { %14594 = vmatprep.subr.bf16.mxu1 %v16490_v37 }
 0x1d4   : > { %13202 = vmatmul.mubr.f32.vlgmr.msra.gmra.mrb[4].mxu1 %v1285_v46 }
 0x1d5   : > { %13204 = vmatprep.mubr.f32.mxu1 %v1295_v52  ;;  %14596 = vmatpush3.bf16.xpose.msra.mxu1 %v16490_v37 }
 0x1d6   : > { %14598 = vmatprep.subr.bf16.mxu1 %v16505_v48 }
 0x1d8   : > { %13205 = vmatmul.mubr.f32.gmra.mrb[6].mxu1 %v1305_v58 }
 0x1d9   : > { %13215 = vmatprep.mubr.f32.mxu1 %v1276_v17  ;;  %v16550_v17 = vld [vmem:[%s19097_s4] sm:$0xff] }
 0x1dd   : > { %14600 = vmatpush3.bf16.xpose.msra.mxu1 %v16505_v48 }
 0x1de   : > { %14602 = vmatprep.subr.bf16.mxu1 %v14601_v19 }
 0x1e4   : > { %13216 = vmatmul.mubr.f32.vlgmr.msra.gmra.mrb[4].mxu1 %v1286_v57 }
 0x1e5   : > { %13218 = vmatprep.mubr.f32.mxu1 %v1296_v59  ;;  %14604 = vmatpush3.bf16.xpose.msra.mxu1 %v14601_v19 }
 0x1e6   : > { %14606 = vmatprep.subr.bf16.mxu1 %v14605_v20 }
 0x1e8   : > { %13219 = vmatmul.mubr.f32.gmra.mrb[6].mxu1 %v1306_v0 }
 0x1e9   : > { %13229 = vmatprep.mubr.f32.mxu1 %v16454_v15 }
 0x1ed   : > { %14608 = vmatpush3.bf16.xpose.msra.mxu1 %v14605_v20 }
 0x1ee   : > { %14610 = vmatprep.subr.bf16.mxu1 %v16490_v37 }
 0x1f4   : > { %13230 = vmatmul.mubr.f32.vlgmr.msra.gmra.mrb[4].mxu1 %v16487_v35 }
 0x1f5   : > { %13232 = vmatprep.mubr.f32.mxu1 %v16497_v42  ;;  %14612 = vmatpush3.bf16.xpose.msra.mxu1 %v16490_v37 }
 0x1f6   : > { %14614 = vmatprep.subr.bf16.mxu1 %v16505_v48 }
 0x1f8   : > { %13233 = vmatmul.mubr.f32.gmra.mrb[6].mxu1 %v16503_v47 }
 0x1f9   : > { %13243 = vmatprep.mubr.f32.mxu1 %v16454_v15 }
 0x1fd   : > { %14616 = vmatpush3.bf16.xpose.msra.mxu1 %v16505_v48 }
 0x204   : > { %13244 = vmatmul.mubr.f32.vlgmr.msra.gmra.mrb[4].mxu1 %v16487_v35 }
 0x205   : > { %13246 = vmatprep.mubr.f32.mxu1 %v16497_v42 }
 0x208   : > { %13247 = vmatmul.mubr.f32.gmra.mrb[6].mxu1 %v16503_v47 }
 0x2d7   : > { %v13245_v22 = vpop.f32.mrb[4].mxu1 }
 0x2d8   : > { %v15573_v15 = vadd.f32 %v13245_v22, %v16545_v16  ;;  %v1797_v23 = vpop.f32.mrb[5].mxu1 }
 0x2d9   : > { %v15574_v25 = vadd.f32 %v1797_v23, %v16550_v17 }
 0x2da   : > { %v1822_v26 = vsel %vm537_vm0, %v15573_v15, -inf }
 0x2db   : > { %1823 = vmax.xlane.f32.xlu1 %v1822_v26  ;;  %v13248_v28 = vpop.f32.mrb[6].mxu1  ;;  %v1819_v30 = vsel %vm537_vm0, %v15574_v25, -inf }
 0x2dc   : > { %v1809_v32 = vpop.f32.mrb[7].mxu1  ;;  %1820 = vmax.xlane.f32.xlu0 %v1819_v30  ;;  %v15575_v34 = vadd.f32 %v13248_v28, %v16564_v31 }
 0x2dd   : > { %v15576_v33 = vadd.f32 %v1809_v32, %v16558_v27 }
 0x2de   : > { %v1828_v36 = vsel %vm537_vm0, %v15575_v34, -inf }
 0x2df   : > { %v1825_v35 = vsel %vm537_vm0, %v15576_v33, -inf }
 0x2e0   : > { %1826 = vmax.xlane.f32.xlu0 %v1825_v35 }
 0x2e4   : > { %1829 = vmax.xlane.f32.xlu0 %v1828_v36 }
 0x2ec   : > { %1863 = vrot.lane.b32.xlu1 %v16441_v7, %s19009_s20 }
 0x368   : > { %v1824_v37 = vpop.xlane.xlu1 %1823 }
 0x369   : > { %v1832_v38 = vsub.f32 %v15573_v15, %v1824_v37  ;;  %v1821_v39 = vpop.xlane.xlu0 %1820 }
 0x36a   : > { %v1831_v40 = vsub.f32 %v15574_v25, %v1821_v39 }
 0x36b   : > { %v1837_v41 = vmul.f32 1.442695, %v1832_v38 }
 0x36c   : > { %v1835_v42 = vmul.f32 1.442695, %v1831_v40  ;;  %v1864_v57 = vpop.permute.xlu1 %1863 }
 0x36d   : > { %16017 = vpow2.f32 %v1837_v41  ;;  %v1827_v43 = vpop.xlane.xlu0 %1826  ;;  %v1888_v0 = vand.u32 4294901760, %v1864_v57 }
 0x36e   : > { %16019 = vpow2.f32 %v1835_v42  ;;  %v1833_v53 = vsub.f32 %v15576_v33, %v1827_v43 }
 0x370   : > { %v1839_v54 = vmul.f32 1.442695, %v1833_v53 }
 0x371   : > { %v1830_v44 = vpop.xlane.xlu0 %1829 }
 0x372   : > { %v1834_v45 = vsub.f32 %v15575_v34, %v1830_v44  ;;  %v16623_v34 = vsub.f32 %v1864_v57, %v1888_v0 }
 0x374   : > { %v1841_v46 = vmul.f32 1.442695, %v1834_v45  ;;  %v1999_v40 = vand.u32 4294901760, %v16623_v34 }
 0x376   : > { %16021 = vpow2.f32 %v1841_v46  ;;  %v2000_v46 = vsub.f32 %v16623_v34, %v1999_v40 }
 0x377   : > { %v16018_v47 = vpop.eup %16017  ;;  %16023 = vpow2.f32 %v1839_v54 }
 0x378   : > { %v16020_v48 = vpop.eup %16019  ;;  %v1846_v49 = vsel %vm537_vm0, %v16018_v47, 0.0  ;;  %v2001_v54 = vand.u32 4294901760, %v2000_v46 }
 0x379   : > { %1847 = vadd.xlane.f32.xlu0 %v1846_v49  ;;  %v1843_v50 = vsel %vm537_vm0, %v16020_v48, 0.0 }
 0x37a   : > { %1844 = vadd.xlane.f32.xlu1 %v1843_v50 }
 0x380   : > { %v16574_v51 = vpop.eup %16021 }
 0x381   : > { %v1852_v52 = vsel %vm537_vm0, %v16574_v51, 0.0  ;;  %v16586_v55 = vpop.eup %16023 }
 0x382   : > { %1853 = vadd.xlane.f32.xlu0 %v1852_v52  ;;  %v1849_v56 = vsel %vm537_vm0, %v16586_v55, 0.0 }
 0x38b   : > { %1867 = vrot.lane.b32.xlu1 %v16450_v13, %s19009_s20 }
 0x398   : > { %1865 = vrot.lane.b32.xlu0 %v16439_v4, %s19009_s20 }
 0x39c   : > { %2509 = vrot.lane.b32.xlu0 %v16441_v7, %s16191_s30 }
 0x3a0   : > { %2513 = vrot.lane.b32.xlu0 %v16450_v13, %s16191_s30 }
 0x3a4   : > { %2501 = vrot.lane.b32.xlu0 %v16446_v10, %s16192_s17 }
 0x3a8   : > { %2505 = vrot.lane.b32.xlu0 %v16474_v24, %s16192_s17 }
 0x3af   : > { %1850 = vadd.xlane.f32.xlu1 %v1849_v56 }
 0x3c0   : > { %1869 = vrot.lane.b32.xlu1 %v16448_v11, %s19009_s20  ;;  %s19047_s20 = smov 32  }
 0x3c4   : > { %2511 = vrot.lane.b32.xlu1 %v16439_v4, %s16191_s30 }
 0x3c8   : > { %2515 = vrot.lane.b32.xlu1 %v16448_v11, %s16191_s30  ;;  %s16198_s30 = smov 104  }
 0x3cc   : > { %2503 = vrot.lane.b32.xlu1 %v16470_v21, %s16192_s17 }
 0x3d0   : > { %2507 = vrot.lane.b32.xlu1 %v16481_v29, %s16192_s17  ;;  %s16199_s17 = smov 40  }
 0x406   : > { %v1848_v59 = vpop.xlane.xlu0 %1847 }
 0x407   : > { %v1845_v58 = vpop.xlane.xlu1 %1844 }
 0x408   : > { %16025 = vrcp.f32 %v1845_v58 }
 0x409   : > { %16027 = vrcp.f32 %v1848_v59 }
 0x40b   : > { %v1868_v35 = vpop.permute.xlu1 %1867 }
 0x40c   : > { %v1894_v37 = vand.u32 4294901760, %v1868_v35 }
 0x40e   : > { %v16632_v43 = vsub.f32 %v1868_v35, %v1894_v37 }
 0x40f   : > { %v1854_v60 = vpop.xlane.xlu0 %1853 }
 0x410   : > { %16029 = vrcp.f32 %v1854_v60  ;;  %v2013_v49 = vand.u32 4294901760, %v16632_v43 }
 0x412   : > { %v16026_v61 = vpop.eup %16025 }
 0x413   : > { %v1866_v62 = vpop.permute.xlu0 %1865  ;;  %v1856_v63 = vmul.f32 %v16026_v61, %v16020_v48  ;;  %v16028_v28 = vpop.eup %16027 }
 0x414   : > { %v1891_v1 = vand.u32 4294901760, %v1866_v62  ;;  %v1858_v30 = vmul.f32 %v16028_v28, %v16018_v47 }
 0x415   : > { %v1876_v2 = vsel %vm537_vm0, %v1856_v63, 0 }
 0x416   : > { %v16597_v3 = vpack.c.bf16 %v1891_v1, %v1888_v0  ;;  %v16599_v5 = vand.u32 4294901760, %v1876_v2  ;;  %v1879_v32 = vsel %vm537_vm0, %v1858_v30, 0  ;;  %v16621_v33 = vsub.f32 %v1866_v62, %v1891_v1 }
 0x417   : > { %v2510_v6 = vpop.permute.xlu0 %2509  ;;  %v16625_v36 = vand.u32 4294901760, %v1879_v32  ;;  %v2014_v62 = vsub.f32 %v16632_v43, %v2013_v49 }
 0x418   : > { %14618 = vmatprep.subr.bf16.mxu0 %v16597_v3  ;;  %v16603_v8 = vsub.f32 %v1876_v2, %v16599_v5  ;;  %v2006_v38 = vand.u32 4294901760, %v16621_v33 }
 0x419   : > { %14620 = vmatpush3.bf16.msra.mxu0 %v16597_v3  ;;  %v16630_v41 = vsub.f32 %v1879_v32, %v16625_v36  ;;  %v2015_v35 = vand.u32 4294901760, %v2014_v62 }
 0x41a   : > { %v1958_v9 = vand.u32 4294901760, %v16603_v8  ;;  %v16030_v39 = vpop.eup %16029  ;;  %v2007_v45 = vsub.f32 %v16621_v33, %v2006_v38 }
 0x41b   : > { %v2514_v12 = vpop.permute.xlu0 %2513  ;;  %v1862_v44 = vmul.f32 %v16030_v39, %v16574_v51  ;;  %v1968_v47 = vand.u32 4294901760, %v16630_v41  ;;  %v16645_v51 = vsel %vm1184_vm1, %v2510_v6, 0 }
 0x41c   : > { %v1959_v14 = vsub.f32 %v16603_v8, %v1958_v9  ;;  %v2008_v52 = vand.u32 4294901760, %v2007_v45  ;;  %v2534_v2 = vand.u32 4294901760, %v16645_v51 }
 0x41d   : > { %v1885_v53 = vsel %vm537_vm0, %v1862_v44, 0  ;;  %v1969_v58 = vsub.f32 %v16630_v41, %v1968_v47 }
 0x41e   : > { %v1960_v18 = vand.u32 4294901760, %v1959_v14  ;;  %v16654_v61 = vand.u32 4294901760, %v1885_v53  ;;  %v14625_v1 = vpack.c.bf16 %v2008_v52, %v2001_v54  ;;  %v14633_v54 = vpack.c.bf16 %v16621_v33, %v16623_v34 }
 0x41f   : > { %v2502_v19 = vpop.permute.xlu0 %2501 }
 0x420   : > { %v2517_v20 = vsel %vm1184_vm1, %v2502_v19, 0  ;;  %13257 = vmatprep.mubr.f32.mxu0 %v1960_v18  ;;  %v16668_v18 = vsel %vm1184_vm1, %v2514_v12, 0  ;;  %v16682_v12 = vsub.f32 %v1885_v53, %v16654_v61 }
 0x421   : > { %v16611_v22 = vand.u32 4294901760, %v2517_v20  ;;  %v2540_v39 = vand.u32 4294901760, %v16668_v18 }
 0x422   : > { %v1988_v52 = vand.u32 4294901760, %v16682_v12 }
 0x423   : > { %v16614_v15 = vsub.f32 %v2517_v20, %v16611_v22  ;;  %v2506_v59 = vpop.permute.xlu0 %2505 }
 0x424   : > { %v2521_v19 = vsel %vm1184_vm1, %v2506_v59, 0 }
 0x425   : > { %v19008_v23 = vand.u32 4294901760, %v16614_v15 }
 0x427   : > { %v2605_v25 = vsub.f32 %v16614_v15, %v19008_v23 }
 0x429   : > { %v2606_v26 = vand.u32 4294901760, %v2605_v25  ;;  %v1970_v25 = vand.u32 4294901760, %v1969_v58 }
 0x42b   : > { %13341 = vmatprep.mubr.f32.mxu1 %v2606_v26 }
 0x43c   : > { %v1851_v42 = vpop.xlane.xlu1 %1850 }
 0x43d   : > { %16031 = vrcp.f32 %v1851_v42  ;;  %v16688_v42 = vand.u32 4294901760, %v2521_v19 }
 0x43f   : > { %v16708_v59 = vsub.f32 %v2521_v19, %v16688_v42 }
 0x440   : > { %v1870_v48 = vpop.permute.xlu1 %1869 }
 0x441   : > { %v1897_v50 = vand.u32 4294901760, %v1870_v48  ;;  %v2624_v19 = vand.u32 4294901760, %v16708_v59 }
 0x443   : > { %v16647_v56 = vpack.c.bf16 %v1897_v50, %v1894_v37  ;;  %v16649_v57 = vsub.f32 %v1870_v48, %v1897_v50 }
 0x444   : > { %v2512_v60 = vpop.permute.xlu1 %2511 }
 0x445   : > { %v2020_v63 = vand.u32 4294901760, %v16649_v57  ;;  %v16661_v0 = vsel %vm1184_vm1, %v2512_v60, 0  ;;  %14622 = vmatprep.subr.bf16.mxu0 %v16647_v56 }
 0x446   : > { %v2537_v6 = vand.u32 4294901760, %v16661_v0  ;;  %14624 = vmatpush3.bf16.msra.mxu0 %v16647_v56 }
 0x447   : > { %v16032_v14 = vpop.eup %16031  ;;  %v2021_v20 = vsub.f32 %v16649_v57, %v2020_v63  ;;  %14626 = vmatprep.subr.bf16.mxu0 %v14625_v1  ;;  %v14653_v33 = vpack.c.bf16 %v2020_v63, %v2013_v49 }
 0x448   : > { %v1860_v26 = vmul.f32 %v16032_v14, %v16586_v55  ;;  %v16679_v28 = vpack.c.bf16 %v2537_v6, %v2534_v2  ;;  %v2516_v30 = vpop.permute.xlu1 %2515 }
 0x449   : > { %v16685_v32 = vsel %vm1184_vm1, %v2516_v30, 0  ;;  %13258 = vmatmul.mubr.f32.vlgmr.msra.gmra.mrb[4].mxu0 %v1970_v25  ;;  %v2022_v37 = vand.u32 4294901760, %v2021_v20  ;;  %v1989_v20 = vsub.f32 %v16682_v12, %v1988_v52 }
 0x44a   : > { %v2543_v55 = vand.u32 4294901760, %v16685_v32  ;;  %14628 = vmatpush3.bf16.msra.mxu0 %v14625_v1  ;;  %14666 = vmatprep.subr.bf16.mxu1 %v16679_v28  ;;  %v1882_v44 = vsel %vm537_vm0, %v1860_v26, 0 }
 0x44b   : > { %14668 = vmatpush3.bf16.xpose.msra.mxu1 %v16679_v28  ;;  %v14629_v45 = vpack.c.bf16 %v2022_v37, %v2015_v35  ;;  %v16694_v46 = vand.u32 4294901760, %v1882_v44 }
 0x44c   : > { %v16700_v48 = vpack.c.bf16 %v2543_v55, %v2540_v39  ;;  %v2504_v50 = vpop.permute.xlu1 %2503 }
 0x44d   : > { %v2519_v53 = vsel %vm1184_vm1, %v2504_v50, 0  ;;  %14630 = vmatprep.subr.bf16.mxu0 %v14629_v45  ;;  %v1977_v58 = vsub.f32 %v1882_v44, %v16694_v46  ;;  %v1990_v50 = vand.u32 4294901760, %v1989_v20  ;;  %v14637_v20 = vpack.c.bf16 %v16649_v57, %v16632_v43 }
 0x44e   : > { %v16710_v60 = vand.u32 4294901760, %v2519_v53  ;;  %14632 = vmatpush3.bf16.msra.mxu0 %v14629_v45  ;;  %14670 = vmatprep.subr.bf16.mxu1 %v16700_v48 }
 0x44f   : > { %14634 = vmatprep.subr.bf16.mxu0 %v14633_v54  ;;  %v1978_v62 = vand.u32 4294901760, %v1977_v58 }
 0x450   : > { %v16714_v1 = vsub.f32 %v2519_v53, %v16710_v60  ;;  %v2508_v14 = vpop.permute.xlu1 %2507 }
 0x451   : > { %v2523_v25 = vsel %vm1184_vm1, %v2508_v14, 0  ;;  %v1979_v26 = vsub.f32 %v1977_v58, %v1978_v62  ;;  %v2625_v14 = vsub.f32 %v16708_v59, %v2624_v19 }
 0x452   : > { %v2614_v30 = vand.u32 4294901760, %v16714_v1  ;;  %v16722_v35 = vand.u32 4294901760, %v2523_v25 }
 0x453   : > { %14672 = vmatpush3.bf16.xpose.msra.mxu1 %v16700_v48  ;;  %v1980_v37 = vand.u32 4294901760, %v1979_v26 }
 0x454   : > { %v2615_v44 = vsub.f32 %v16714_v1, %v2614_v30  ;;  %v16729_v45 = vsub.f32 %v2523_v25, %v16722_v35  ;;  %v2626_v25 = vand.u32 4294901760, %v2625_v14 }
 0x455   : > { %13260 = vmatprep.mubr.f32.mxu0 %v1980_v37 }
 0x456   : > { %v2634_v53 = vand.u32 4294901760, %v16729_v45  ;;  %13261 = vmatmul.mubr.f32.gmra.mrb[6].mxu0 %v1990_v50  ;;  %v2616_v23 = vand.u32 4294901760, %v2615_v44 }
 0x457   : > { %13271 = vmatprep.mubr.f32.mxu0 %v16599_v5 }
 0x458   : > { %v2635_v26 = vsub.f32 %v16729_v45, %v2634_v53 }
 0x45a   : > { %13272 = vmatmul.mubr.f32.vlgmr.msra.gmra.mrb[4].mxu0 %v16625_v36  ;;  %13342 = vmatmul.mubr.f32.vlgmr.msra.gmra.mrb[8].mxu1 %v2616_v23  ;;  %v2636_v37 = vand.u32 4294901760, %v2635_v26  ;;  %v16752_v23 = vsub.f32 %v16661_v0, %v2537_v6 }
 0x45b   : > { %14636 = vmatpush3.bf16.msra.mxu0 %v14633_v54  ;;  %13274 = vmatprep.mubr.f32.mxu0 %v16694_v46  ;;  %v14649_v54 = vpack.c.bf16 %v2006_v38, %v1999_v40  ;;  %v2658_v40 = vsub.f32 %v16668_v18, %v2540_v39 }
 0x45c   : > { %14638 = vmatprep.subr.bf16.mxu0 %v14637_v20  ;;  %13344 = vmatprep.mubr.f32.mxu1 %v2626_v25  ;;  %v2652_v0 = vand.u32 4294901760, %v16752_v23 }
 0x45d   : > { %v2659_v49 = vand.u32 4294901760, %v2658_v40 }
 0x45e   : > { %13275 = vmatmul.mubr.f32.gmra.mrb[6].mxu0 %v16654_v61  ;;  %13345 = vmatmul.mubr.f32.gmra.mrb[10].mxu1 %v2636_v37 }
 0x45f   : > { %14640 = vmatpush3.bf16.msra.mxu0 %v14637_v20  ;;  %13285 = vmatprep.mubr.f32.mxu0 %v16603_v8  ;;  %v2653_v8 = vsub.f32 %v16752_v23, %v2652_v0  ;;  %v2660_v63 = vsub.f32 %v2658_v40, %v2659_v49 }
 0x460   : > { %14642 = vmatprep.subr.bf16.mxu0 %v16597_v3 }
 0x462   : > { %13286 = vmatmul.mubr.f32.vlgmr.msra.gmra.mrb[4].mxu0 %v16630_v41  ;;  %v2654_v41 = vand.u32 4294901760, %v2653_v8 }
 0x463   : > { %14644 = vmatpush3.bf16.msra.mxu0 %v16597_v3  ;;  %13288 = vmatprep.mubr.f32.mxu0 %v1977_v58  ;;  %v2644_v58 = vsub.f32 %v16645_v51, %v2534_v2  ;;  %v2661_v2 = vand.u32 4294901760, %v2660_v63 }
 0x464   : > { %14646 = vmatprep.subr.bf16.mxu0 %v16647_v56 }
 0x465   : > { %v2645_v34 = vand.u32 4294901760, %v2644_v58  ;;  %v14681_v18 = vpack.c.bf16 %v16752_v23, %v2644_v58 }
 0x466   : > { %13289 = vmatmul.mubr.f32.gmra.mrb[6].mxu0 %v16682_v12 }
 0x467   : > { %14648 = vmatpush3.bf16.msra.mxu0 %v16647_v56  ;;  %13299 = vmatprep.mubr.f32.mxu0 %v1958_v9  ;;  %v2665_v9 = vsub.f32 %v16685_v32, %v2543_v55  ;;  %v2646_v38 = vsub.f32 %v2644_v58, %v2645_v34 }
 0x468   : > { %14650 = vmatprep.subr.bf16.mxu0 %v14649_v54 }
 0x469   : > { %v2666_v43 = vand.u32 4294901760, %v2665_v9 }
 0x46a   : > { %13300 = vmatmul.mubr.f32.vlgmr.msra.gmra.mrb[4].mxu0 %v1968_v47  ;;  %v2647_v47 = vand.u32 4294901760, %v2646_v38 }
 0x46b   : > { %14652 = vmatpush3.bf16.msra.mxu0 %v14649_v54  ;;  %13302 = vmatprep.mubr.f32.mxu0 %v1978_v62  ;;  %v2667_v57 = vsub.f32 %v2665_v9, %v2666_v43 }
 0x46c   : > { %14654 = vmatprep.subr.bf16.mxu0 %v14653_v33  ;;  %v14673_v51 = vpack.c.bf16 %v2654_v41, %v2647_v47 }
 0x46e   : > { %13303 = vmatmul.mubr.f32.gmra.mrb[6].mxu0 %v1988_v52 }
 0x46f   : > { %14656 = vmatpush3.bf16.msra.mxu0 %v14653_v33  ;;  %13313 = vmatprep.mubr.f32.mxu0 %v16599_v5 }
 0x470   : > { %14658 = vmatprep.subr.bf16.mxu0 %v16597_v3 }
 0x472   : > { %13314 = vmatmul.mubr.f32.vlgmr.msra.gmra.mrb[4].mxu0 %v16625_v36 }
 0x473   : > { %14660 = vmatpush3.bf16.msra.mxu0 %v16597_v3  ;;  %13316 = vmatprep.mubr.f32.mxu0 %v16694_v46  ;;  %v2668_v3 = vand.u32 4294901760, %v2667_v57 }
 0x474   : > { %14662 = vmatprep.subr.bf16.mxu0 %v16647_v56 }
 0x475   : > { %v14677_v6 = vpack.c.bf16 %v2668_v3, %v2661_v2 }
 0x476   : > { %13317 = vmatmul.mubr.f32.gmra.mrb[6].mxu0 %v16654_v61 }
 0x477   : > { %14664 = vmatpush3.bf16.msra.mxu0 %v16647_v56  ;;  %13327 = vmatprep.mubr.f32.mxu0 %v16599_v5  ;;  %v14685_v5 = vpack.c.bf16 %v2665_v9, %v2658_v40  ;;  %v14697_v56 = vpack.c.bf16 %v2652_v0, %v2645_v34 }
 0x478   : > { %14674 = vmatprep.subr.bf16.mxu0 %v14673_v51 }
 0x47a   : > { %13328 = vmatmul.mubr.f32.vlgmr.msra.gmra.mrb[4].mxu0 %v16625_v36  ;;  %v19098_v36 = vand.u32 4294901760, %v16614_v15 }
 0x47b   : > { %13330 = vmatprep.mubr.f32.mxu0 %v16694_v46 }
 0x47e   : > { %13331 = vmatmul.mubr.f32.gmra.mrb[6].mxu0 %v16654_v61  ;;  %v14701_v61 = vpack.c.bf16 %v2666_v43, %v2659_v49 }
 0x47f   : > { %13355 = vmatprep.mubr.f32.mxu0 %v16611_v22 }
 0x480   : > { %14676 = vmatpush3.bf16.xpose.msra.mxu0 %v14673_v51 }
 0x481   : > { %14678 = vmatprep.subr.bf16.mxu0 %v14677_v6 }
 0x488   : > { %14680 = vmatpush3.bf16.xpose.msra.mxu0 %v14677_v6 }
 0x489   : > { %14682 = vmatprep.subr.bf16.mxu0 %v14681_v18 }
 0x48f   : > { %13356 = vmatmul.mubr.f32.vlgmr.msra.gmra.mrb[8].mxu0 %v16710_v60 }
 0x490   : > { %13358 = vmatprep.mubr.f32.mxu0 %v16688_v42  ;;  %14684 = vmatpush3.bf16.xpose.msra.mxu0 %v14681_v18 }
 0x491   : > { %14686 = vmatprep.subr.bf16.mxu0 %v14685_v5 }
 0x493   : > { %13359 = vmatmul.mubr.f32.gmra.mrb[10].mxu0 %v16722_v35 }
 0x494   : > { %13369 = vmatprep.mubr.f32.mxu0 %v16614_v15 }
 0x498   : > { %14688 = vmatpush3.bf16.xpose.msra.mxu0 %v14685_v5 }
 0x499   : > { %14690 = vmatprep.subr.bf16.mxu0 %v16679_v28 }
 0x49f   : > { %13370 = vmatmul.mubr.f32.vlgmr.msra.gmra.mrb[8].mxu0 %v16714_v1 }
 0x4a0   : > { %13372 = vmatprep.mubr.f32.mxu0 %v16708_v59  ;;  %14692 = vmatpush3.bf16.xpose.msra.mxu0 %v16679_v28 }
 0x4a1   : > { %14694 = vmatprep.subr.bf16.mxu0 %v16700_v48 }
 0x4a3   : > { %13373 = vmatmul.mubr.f32.gmra.mrb[10].mxu0 %v16729_v45 }
 0x4a4   : > { %13383 = vmatprep.mubr.f32.mxu0 %v19098_v36 }
 0x4a8   : > { %14696 = vmatpush3.bf16.xpose.msra.mxu0 %v16700_v48 }
 0x4a9   : > { %14698 = vmatprep.subr.bf16.mxu0 %v14697_v56 }
 0x4af   : > { %13384 = vmatmul.mubr.f32.vlgmr.msra.gmra.mrb[8].mxu0 %v2614_v30 }
 0x4b0   : > { %13386 = vmatprep.mubr.f32.mxu0 %v2624_v19  ;;  %14700 = vmatpush3.bf16.xpose.msra.mxu0 %v14697_v56 }
 0x4b1   : > { %14702 = vmatprep.subr.bf16.mxu0 %v14701_v61 }
 0x4b3   : > { %13387 = vmatmul.mubr.f32.gmra.mrb[10].mxu0 %v2634_v53 }
 0x4b4   : > { %13397 = vmatprep.mubr.f32.mxu0 %v16611_v22 }
 0x4b8   : > { %14704 = vmatpush3.bf16.xpose.msra.mxu0 %v14701_v61 }
 0x4b9   : > { %14706 = vmatprep.subr.bf16.mxu0 %v16679_v28 }
 0x4bf   : > { %13398 = vmatmul.mubr.f32.vlgmr.msra.gmra.mrb[8].mxu0 %v16710_v60 }
 0x4c0   : > { %13400 = vmatprep.mubr.f32.mxu0 %v16688_v42  ;;  %14708 = vmatpush3.bf16.xpose.msra.mxu0 %v16679_v28 }
 0x4c1   : > { %14710 = vmatprep.subr.bf16.mxu0 %v16700_v48 }
 0x4c3   : > { %13401 = vmatmul.mubr.f32.gmra.mrb[10].mxu0 %v16722_v35 }
 0x4c4   : > { %13411 = vmatprep.mubr.f32.mxu0 %v16611_v22 }
 0x4c8   : > { %14712 = vmatpush3.bf16.xpose.msra.mxu0 %v16700_v48 }
 0x4cf   : > { %13412 = vmatmul.mubr.f32.vlgmr.msra.gmra.mrb[8].mxu0 %v16710_v60 }
 0x4d0   : > { %13414 = vmatprep.mubr.f32.mxu0 %v16688_v42 }
 0x4d3   : > { %13415 = vmatmul.mubr.f32.gmra.mrb[10].mxu0 %v16722_v35 }
 0x52d   : > { %v13343_v15 = vpop.f32.mrb[8].mxu1 }
 0x52e   : > { %v2608_v12 = vpop.f32.mrb[9].mxu1  ;;  %v2619_v22 = vadd.f32 %v13343_v15, %v16545_v16 }
 0x52f   : > { %v2609_v48 = vadd.f32 %v2608_v12, %v16550_v17 }
 0x531   : > { %v13346_v32 = vpop.f32.mrb[10].mxu1 }
 0x532   : > { %v2628_v39 = vpop.f32.mrb[11].mxu1  ;;  %v2639_v1 = vadd.f32 %v13346_v32, %v16564_v31 }
 0x533   : > { %v2629_v30 = vadd.f32 %v2628_v39, %v16558_v27 }
 0x54d   : > { %v16826_v55 = vpop.f32.mrb[4].mxu0 }
 0x54e   : > { %v16828_v28 = vpop.f32.mrb[5].mxu0 }
 0x551   : > { %v16830_v46 = vpop.f32.mrb[6].mxu0 }
 0x552   : > { %v16832_v52 = vpop.f32.mrb[7].mxu0 }
 0x5a2   : > { %v13413_v59 = vpop.f32.mrb[8].mxu0 }
 0x5a3   : > { %v15578_v42 = vadd.f32 %v13413_v59, %v2619_v22  ;;  %v3125_v60 = vpop.f32.mrb[9].mxu0 }
 0x5a4   : > { %v15580_v62 = vadd.f32 %v3125_v60, %v2609_v48 }
 0x5a5   : > { %v3150_v19 = vsel %vm537_vm0, %v15578_v42, -inf }
 0x5a6   : > { %3151 = vmax.xlane.f32.xlu1 %v3150_v19  ;;  %v13416_v35 = vpop.f32.mrb[10].mxu0  ;;  %v3147_v44 = vsel %vm537_vm0, %v15580_v62, -inf }
 0x5a7   : > { %v15582_v45 = vadd.f32 %v13416_v35, %v2639_v1  ;;  %v3137_v50 = vpop.f32.mrb[11].mxu0  ;;  %3148 = vmax.xlane.f32.xlu0 %v3147_v44 }
 0x5a8   : > { %v15584_v16 = vadd.f32 %v3137_v50, %v2629_v30 }
 0x5a9   : > { %v3156_v53 = vsel %vm537_vm0, %v15582_v45, -inf }
 0x5aa   : > { %v3153_v17 = vsel %vm537_vm0, %v15584_v16, -inf }
 0x5ab   : > { %3154 = vmax.xlane.f32.xlu0 %v3153_v17 }
 0x5af   : > { %3157 = vmax.xlane.f32.xlu0 %v3156_v53 }
 0x5b7   : > { %3191 = vrot.lane.b32.xlu1 %v16441_v7, %s16193_s23 }
 0x633   : > { %v3152_v31 = vpop.xlane.xlu1 %3151 }
 0x634   : > { %v3160_v27 = vsub.f32 %v15578_v42, %v3152_v31  ;;  %v3149_v14 = vpop.xlane.xlu0 %3148 }
 0x635   : > { %v3159_v26 = vsub.f32 %v15580_v62, %v3149_v14 }
 0x636   : > { %v3165_v20 = vmul.f32 1.442695, %v3160_v27 }
 0x637   : > { %v3163_v25 = vmul.f32 1.442695, %v3159_v26  ;;  %v3192_v49 = vpop.permute.xlu1 %3191 }
 0x638   : > { %16033 = vpow2.f32 %v3165_v20  ;;  %v3155_v37 = vpop.xlane.xlu0 %3154  ;;  %v3216_v18 = vand.u32 4294901760, %v3192_v49 }
 0x639   : > { %16035 = vpow2.f32 %v3163_v25  ;;  %v3161_v40 = vsub.f32 %v15584_v16, %v3155_v37 }
 0x63a   : > { %v16882_v62 = vsub.f32 %v3192_v49, %v3216_v18 }
 0x63b   : > { %v3167_v41 = vmul.f32 1.442695, %v3161_v40 }
 0x63c   : > { %v3158_v23 = vpop.xlane.xlu0 %3157  ;;  %v3327_v44 = vand.u32 4294901760, %v16882_v62 }
 0x63d   : > { %v3162_v54 = vsub.f32 %v15582_v45, %v3158_v23 }
 0x63e   : > { %v3328_v31 = vsub.f32 %v16882_v62, %v3327_v44 }
 0x63f   : > { %v3169_v58 = vmul.f32 1.442695, %v3162_v54 }
 0x641   : > { %16037 = vpow2.f32 %v3169_v58  ;;  %v3329_v58 = vand.u32 4294901760, %v3328_v31 }
 0x642   : > { %v16034_v0 = vpop.eup %16033  ;;  %16039 = vpow2.f32 %v3167_v41 }
 0x643   : > { %v16036_v33 = vpop.eup %16035  ;;  %v3174_v34 = vsel %vm537_vm0, %v16034_v0, 0.0 }
 0x644   : > { %3175 = vadd.xlane.f32.xlu0 %v3174_v34  ;;  %v3171_v8 = vsel %vm537_vm0, %v16036_v33, 0.0 }
 0x645   : > { %3172 = vadd.xlane.f32.xlu1 %v3171_v8 }
 0x64b   : > { %v16038_v9 = vpop.eup %16037 }
 0x64c   : > { %v3180_v38 = vsel %vm537_vm0, %v16038_v9, 0.0  ;;  %v16855_v43 = vpop.eup %16039 }
 0x64d   : > { %3181 = vadd.xlane.f32.xlu0 %v3180_v38  ;;  %v3177_v47 = vsel %vm537_vm0, %v16855_v43, 0.0 }
 0x656   : > { %3195 = vrot.lane.b32.xlu1 %v16450_v13, %s16193_s23 }
 0x663   : > { %3193 = vrot.lane.b32.xlu0 %v16439_v4, %s16193_s23 }
 0x667   : > { %3837 = vrot.lane.b32.xlu0 %v16441_v7, %s16194_s26 }
 0x66b   : > { %3841 = vrot.lane.b32.xlu0 %v16450_v13, %s16194_s26 }
 0x66f   : > { %3829 = vrot.lane.b32.xlu0 %v16446_v10, %s16195_s24 }
 0x673   : > { %3833 = vrot.lane.b32.xlu0 %v16474_v24, %s16195_s24 }
 0x67a   : > { %3178 = vadd.xlane.f32.xlu1 %v3177_v47 }
 0x68b   : > { %3197 = vrot.lane.b32.xlu1 %v16448_v11, %s16193_s23  ;;  %s19046_s23 = smov 8  }
 0x68f   : > { %3839 = vrot.lane.b32.xlu1 %v16439_v4, %s16194_s26 }
 0x693   : > { %3843 = vrot.lane.b32.xlu1 %v16448_v11, %s16194_s26  ;;  %s16196_s26 = smov 48  }
 0x697   : > { %3831 = vrot.lane.b32.xlu1 %v16470_v21, %s16195_s24 }
 0x69b   : > { %3835 = vrot.lane.b32.xlu1 %v16481_v29, %s16195_s24  ;;  %s16197_s24 = smov 72  }
 0x6d1   : > { %v3176_v57 = vpop.xlane.xlu0 %3175 }
 0x6d2   : > { %v3173_v51 = vpop.xlane.xlu1 %3172 }
 0x6d3   : > { %16041 = vrcp.f32 %v3173_v51 }
 0x6d4   : > { %16043 = vrcp.f32 %v3176_v57 }
 0x6d6   : > { %v3196_v60 = vpop.permute.xlu1 %3195 }
 0x6d7   : > { %v3222_v19 = vand.u32 4294901760, %v3196_v60 }
 0x6d9   : > { %v16891_v16 = vsub.f32 %v3196_v60, %v3222_v19 }
 0x6da   : > { %v3182_v63 = vpop.xlane.xlu0 %3181 }
 0x6db   : > { %16045 = vrcp.f32 %v3182_v63  ;;  %v3341_v26 = vand.u32 4294901760, %v16891_v16 }
 0x6dd   : > { %v16042_v3 = vpop.eup %16041  ;;  %v3342_v34 = vsub.f32 %v16891_v16, %v3341_v26 }
 0x6de   : > { %v3184_v2 = vmul.f32 %v16042_v3, %v16036_v33  ;;  %v3194_v6 = vpop.permute.xlu0 %3193  ;;  %v16044_v22 = vpop.eup %16043 }
 0x6df   : > { %v3219_v5 = vand.u32 4294901760, %v3194_v6  ;;  %v3186_v48 = vmul.f32 %v16044_v22, %v16034_v0  ;;  %v3343_v51 = vand.u32 4294901760, %v3342_v34 }
 0x6e0   : > { %v3204_v36 = vsel %vm537_vm0, %v3184_v2, 0 }
 0x6e1   : > { %v16866_v56 = vpack.c.bf16 %v3219_v5, %v3216_v18  ;;  %v16868_v61 = vand.u32 4294901760, %v3204_v36  ;;  %v3207_v59 = vsel %vm537_vm0, %v3186_v48, 0  ;;  %v16880_v42 = vsub.f32 %v3194_v6, %v3219_v5 }
 0x6e2   : > { %v16884_v1 = vand.u32 4294901760, %v3207_v59 }
 0x6e3   : > { %14714 = vmatprep.subr.bf16.mxu1 %v16866_v56  ;;  %v16872_v15 = vsub.f32 %v3204_v36, %v16868_v61  ;;  %v3334_v30 = vand.u32 4294901760, %v16880_v42  ;;  %v14729_v18 = vpack.c.bf16 %v16880_v42, %v16882_v62 }
 0x6e4   : > { %14716 = vmatpush3.bf16.msra.mxu1 %v16866_v56  ;;  %v16889_v45 = vsub.f32 %v3207_v59, %v16884_v1  ;;  %v3838_v59 = vpop.permute.xlu0 %3837 }
 0x6e5   : > { %v3286_v12 = vand.u32 4294901760, %v16872_v15  ;;  %v16046_v35 = vpop.eup %16045  ;;  %v3335_v53 = vsub.f32 %v16880_v42, %v3334_v30 }
 0x6e6   : > { %v3190_v17 = vmul.f32 %v16046_v35, %v16038_v9  ;;  %v3296_v27 = vand.u32 4294901760, %v16889_v45 }
 0x6e7   : > { %v3287_v32 = vsub.f32 %v16872_v15, %v3286_v12  ;;  %v3336_v25 = vand.u32 4294901760, %v3335_v53 }
 0x6e8   : > { %v3213_v37 = vsel %vm537_vm0, %v3190_v17, 0  ;;  %v3297_v0 = vsub.f32 %v16889_v45, %v3296_v27  ;;  %v3842_v60 = vpop.permute.xlu0 %3841 }
 0x6e9   : > { %v3288_v39 = vand.u32 4294901760, %v3287_v32  ;;  %v16907_v33 = vand.u32 4294901760, %v3213_v37  ;;  %v14721_v9 = vpack.c.bf16 %v3336_v25, %v3329_v58 }
 0x6ea   : > { %v3298_v41 = vand.u32 4294901760, %v3297_v0 }
 0x6eb   : > { %13425 = vmatprep.mubr.f32.mxu1 %v3288_v39  ;;  %v3315_v49 = vsub.f32 %v3213_v37, %v16907_v33  ;;  %v3857_v37 = vsel %vm1184_vm1, %v3842_v60, 0 }
 0x6ec   : > { %v3830_v35 = vpop.permute.xlu0 %3829 }
 0x6ed   : > { %v3316_v6 = vand.u32 4294901760, %v3315_v49  ;;  %v3845_v17 = vsel %vm1184_vm1, %v3830_v35, 0 }
 0x6ee   : > { %v16944_v42 = vand.u32 4294901760, %v3845_v17 }
 0x6ef   : > { %v3317_v36 = vsub.f32 %v3315_v49, %v3316_v6 }
 0x6f1   : > { %v3318_v22 = vand.u32 4294901760, %v3317_v36 }
 0x707   : > { %v3179_v50 = vpop.xlane.xlu1 %3178 }
 0x708   : > { %16047 = vrcp.f32 %v3179_v50 }
 0x70b   : > { %v3198_v14 = vpop.permute.xlu1 %3197 }
 0x70c   : > { %v3225_v20 = vand.u32 4294901760, %v3198_v14 }
 0x70e   : > { %v16902_v23 = vpack.c.bf16 %v3225_v20, %v3222_v19  ;;  %v3347_v54 = vsub.f32 %v3198_v14, %v3225_v20  ;;  %v14745_v19 = vpack.c.bf16 %v3334_v30, %v3327_v44  ;;  %v16951_v30 = vsub.f32 %v3845_v17, %v16944_v42 }
 0x70f   : > { %v3840_v50 = vpop.permute.xlu1 %3839 }
 0x710   : > { %v3348_v8 = vand.u32 4294901760, %v3347_v54  ;;  %14718 = vmatprep.subr.bf16.mxu1 %v16902_v23  ;;  %v14733_v48 = vpack.c.bf16 %v3347_v54, %v16891_v16  ;;  %v3855_v62 = vsel %vm1184_vm1, %v3840_v50, 0  ;;  %v3932_v16 = vand.u32 4294901760, %v16951_v30 }
 0x711   : > { %14720 = vmatpush3.bf16.msra.mxu1 %v16902_v23  ;;  %v3865_v44 = vand.u32 4294901760, %v3855_v62 }
 0x712   : > { %v16048_v38 = vpop.eup %16047  ;;  %v3349_v40 = vsub.f32 %v3347_v54, %v3348_v8  ;;  %14722 = vmatprep.subr.bf16.mxu1 %v14721_v9  ;;  %v14749_v53 = vpack.c.bf16 %v3348_v8, %v3341_v26  ;;  %v3834_v26 = vpop.permute.xlu0 %3833  ;;  %v3933_v25 = vsub.f32 %v16951_v30, %v3932_v16  ;;  %v3868_v8 = vand.u32 4294901760, %v3857_v37 }
 0x713   : > { %v3188_v47 = vmul.f32 %v16048_v38, %v16855_v43  ;;  %v16961_v14 = vsub.f32 %v3855_v62, %v3865_v44 }
 0x714   : > { %13426 = vmatmul.mubr.f32.vlgmr.msra.gmra.mrb[12].mxu1 %v3298_v41  ;;  %v3350_v57 = vand.u32 4294901760, %v3349_v40  ;;  %v3934_v38 = vand.u32 4294901760, %v3933_v25 }
 0x715   : > { %14724 = vmatpush3.bf16.msra.mxu1 %v14721_v9  ;;  %v3210_v63 = vsel %vm537_vm0, %v3188_v47, 0 }
 0x716   : > { %v14725_v3 = vpack.c.bf16 %v3350_v57, %v3343_v51  ;;  %v16917_v2 = vand.u32 4294901760, %v3210_v63  ;;  %v3986_v57 = vsub.f32 %v3857_v37, %v3868_v8  ;;  %v17047_v37 = vld [vmem:[%s19097_s4] sm:$0xff] }
 0x718   : > { %14726 = vmatprep.subr.bf16.mxu1 %v14725_v3  ;;  %v3305_v5 = vsub.f32 %v3210_v63, %v16917_v2 }
 0x719   : > { %14728 = vmatpush3.bf16.msra.mxu1 %v14725_v3 }
 0x71a   : > { %14730 = vmatprep.subr.bf16.mxu1 %v14729_v18  ;;  %v3306_v43 = vand.u32 4294901760, %v3305_v5 }
 0x71c   : > { %v3307_v32 = vsub.f32 %v3305_v5, %v3306_v43 }
 0x71e   : > { %v3308_v39 = vand.u32 4294901760, %v3307_v32 }
 0x720   : > { %13428 = vmatprep.mubr.f32.mxu1 %v3308_v39 }
 0x721   : > { %13429 = vmatmul.mubr.f32.gmra.mrb[14].mxu1 %v3318_v22 }
 0x722   : > { %13439 = vmatprep.mubr.f32.mxu1 %v16868_v61 }
 0x725   : > { %13440 = vmatmul.mubr.f32.vlgmr.msra.gmra.mrb[12].mxu1 %v16884_v1 }
 0x726   : > { %14732 = vmatpush3.bf16.msra.mxu1 %v14729_v18  ;;  %13442 = vmatprep.mubr.f32.mxu1 %v16917_v2  ;;  %v3987_v18 = vand.u32 4294901760, %v3986_v57 }
 0x727   : > { %14734 = vmatprep.subr.bf16.mxu1 %v14733_v48 }
 0x729   : > { %13443 = vmatmul.mubr.f32.gmra.mrb[14].mxu1 %v16907_v33 }
 0x72a   : > { %14736 = vmatpush3.bf16.msra.mxu1 %v14733_v48  ;;  %13453 = vmatprep.mubr.f32.mxu1 %v16872_v15  ;;  %v3844_v15 = vpop.permute.xlu1 %3843  ;;  %v3988_v48 = vsub.f32 %v3986_v57, %v3987_v18 }
 0x72b   : > { %14738 = vmatprep.subr.bf16.mxu1 %v16866_v56 }
 0x72c   : > { %v3989_v17 = vand.u32 4294901760, %v3988_v48 }
 0x72d   : > { %13454 = vmatmul.mubr.f32.vlgmr.msra.gmra.mrb[12].mxu1 %v16889_v45 }
 0x72e   : > { %14740 = vmatpush3.bf16.msra.mxu1 %v16866_v56  ;;  %13456 = vmatprep.mubr.f32.mxu1 %v3305_v5  ;;  %v3832_v31 = vpop.permute.xlu1 %3831 }
 0x72f   : > { %14742 = vmatprep.subr.bf16.mxu1 %v16902_v23  ;;  %v3847_v54 = vsel %vm1184_vm1, %v3832_v31, 0 }
 0x730   : > { %v16979_v9 = vand.u32 4294901760, %v3847_v54 }
 0x731   : > { %13457 = vmatmul.mubr.f32.gmra.mrb[14].mxu1 %v3315_v49 }
 0x732   : > { %14744 = vmatpush3.bf16.msra.mxu1 %v16902_v23  ;;  %13467 = vmatprep.mubr.f32.mxu1 %v3286_v12  ;;  %v3853_v12 = vsel %vm1184_vm1, %v3838_v59, 0  ;;  %v3836_v0 = vpop.permute.xlu1 %3835  ;;  %v3941_v63 = vsub.f32 %v3847_v54, %v16979_v9 }
 0x733   : > { %14746 = vmatprep.subr.bf16.mxu1 %v14745_v19  ;;  %v3862_v45 = vand.u32 4294901760, %v3853_v12  ;;  %v3851_v41 = vsel %vm1184_vm1, %v3836_v0, 0 }
 0x734   : > { %v16995_v3 = vand.u32 4294901760, %v3851_v41  ;;  %v3942_v5 = vand.u32 4294901760, %v3941_v63 }
 0x735   : > { %13468 = vmatmul.mubr.f32.vlgmr.msra.gmra.mrb[12].mxu1 %v3296_v27  ;;  %v16958_v27 = vpack.c.bf16 %v3865_v44, %v3862_v45  ;;  %v16967_v20 = vsub.f32 %v3853_v12, %v3862_v45 }
 0x736   : > { %14748 = vmatpush3.bf16.msra.mxu1 %v14745_v19  ;;  %13470 = vmatprep.mubr.f32.mxu1 %v3306_v43  ;;  %v3961_v43 = vsub.f32 %v3851_v41, %v16995_v3  ;;  %v3943_v59 = vsub.f32 %v3941_v63, %v3942_v5 }
 0x737   : > { %14750 = vmatprep.subr.bf16.mxu1 %v14749_v53  ;;  %v3973_v34 = vand.u32 4294901760, %v16967_v20  ;;  %v14777_v44 = vpack.c.bf16 %v16961_v14, %v16967_v20 }
 0x738   : > { %v3962_v60 = vand.u32 4294901760, %v3961_v43  ;;  %v3944_v50 = vand.u32 4294901760, %v3943_v59 }
 0x739   : > { %13471 = vmatmul.mubr.f32.gmra.mrb[14].mxu1 %v3316_v6  ;;  %v3974_v51 = vsub.f32 %v16967_v20, %v3973_v34 }
 0x73a   : > { %14752 = vmatpush3.bf16.msra.mxu1 %v14749_v53  ;;  %13481 = vmatprep.mubr.f32.mxu1 %v16868_v61  ;;  %v3963_v53 = vsub.f32 %v3961_v43, %v3962_v60 }
 0x73b   : > { %14754 = vmatprep.subr.bf16.mxu1 %v16866_v56  ;;  %v3975_v36 = vand.u32 4294901760, %v3974_v51 }
 0x73c   : > { %v3964_v12 = vand.u32 4294901760, %v3963_v53 }
 0x73d   : > { %13482 = vmatmul.mubr.f32.vlgmr.msra.gmra.mrb[12].mxu1 %v16884_v1 }
 0x73e   : > { %14756 = vmatpush3.bf16.msra.mxu1 %v16866_v56  ;;  %13484 = vmatprep.mubr.f32.mxu1 %v16917_v2  ;;  %v3859_v56 = vsel %vm1184_vm1, %v3844_v15, 0 }
 0x73f   : > { %14758 = vmatprep.subr.bf16.mxu1 %v16902_v23  ;;  %v3871_v58 = vand.u32 4294901760, %v3859_v56 }
 0x741   : > { %13485 = vmatmul.mubr.f32.gmra.mrb[14].mxu1 %v16907_v33  ;;  %v16988_v47 = vpack.c.bf16 %v3871_v58, %v3868_v8  ;;  %v3993_v49 = vsub.f32 %v3859_v56, %v3871_v58 }
 0x742   : > { %14760 = vmatpush3.bf16.msra.mxu1 %v16902_v23  ;;  %13495 = vmatprep.mubr.f32.mxu1 %v16868_v61  ;;  %v3849_v23 = vsel %vm1184_vm1, %v3834_v26, 0  ;;  %v3980_v61 = vand.u32 4294901760, %v16961_v14 }
 0x743   : > { %14762 = vmatprep.subr.bf16.mxu1 %v16958_v27  ;;  %v16981_v40 = vand.u32 4294901760, %v3849_v23  ;;  %v14781_v45 = vpack.c.bf16 %v3993_v49, %v3986_v57 }
 0x744   : > { %v14793_v31 = vpack.c.bf16 %v3980_v61, %v3973_v34  ;;  %v17055_v34 = vld [vmem:[%s19097_s4 + $0x10] sm:$0xff] }
 0x745   : > { %13496 = vmatmul.mubr.f32.vlgmr.msra.gmra.mrb[12].mxu1 %v16884_v1  ;;  %v3981_v1 = vsub.f32 %v16961_v14, %v3980_v61 }
 0x746   : > { %13498 = vmatprep.mubr.f32.mxu1 %v16917_v2  ;;  %v3994_v2 = vand.u32 4294901760, %v3993_v49 }
 0x747   : > { %v3982_v6 = vand.u32 4294901760, %v3981_v1 }
 0x748   : > { %v3995_v39 = vsub.f32 %v3993_v49, %v3994_v2  ;;  %v14797_v26 = vpack.c.bf16 %v3994_v2, %v3987_v18 }
 0x749   : > { %13499 = vmatmul.mubr.f32.gmra.mrb[14].mxu1 %v16907_v33  ;;  %v3951_v33 = vsub.f32 %v3849_v23, %v16981_v40  ;;  %v14769_v22 = vpack.c.bf16 %v3982_v6, %v3975_v36 }
 0x74a   : > { %13509 = vmatprep.mubr.f32.mxu1 %v3934_v38  ;;  %v3996_v35 = vand.u32 4294901760, %v3995_v39 }
 0x74b   : > { %14764 = vmatpush3.bf16.xpose.msra.mxu1 %v16958_v27  ;;  %v3952_v32 = vand.u32 4294901760, %v3951_v33 }
 0x74c   : > { %14766 = vmatprep.subr.bf16.mxu1 %v16988_v47  ;;  %v14773_v15 = vpack.c.bf16 %v3996_v35, %v3989_v17 }
 0x74d   : > { %v3953_v19 = vsub.f32 %v3951_v33, %v3952_v32 }
 0x74f   : > { %v3954_v62 = vand.u32 4294901760, %v3953_v19 }
 0x753   : > { %14768 = vmatpush3.bf16.xpose.msra.mxu1 %v16988_v47 }
 0x754   : > { %14770 = vmatprep.subr.bf16.mxu1 %v14769_v22 }
 0x75a   : > { %13510 = vmatmul.mubr.f32.vlgmr.msra.gmra.mrb[16].mxu1 %v3944_v50 }
 0x75b   : > { %13512 = vmatprep.mubr.f32.mxu1 %v3954_v62  ;;  %14772 = vmatpush3.bf16.xpose.msra.mxu1 %v14769_v22 }
 0x75c   : > { %14774 = vmatprep.subr.bf16.mxu1 %v14773_v15 }
 0x75e   : > { %13513 = vmatmul.mubr.f32.gmra.mrb[18].mxu1 %v3964_v12 }
 0x75f   : > { %13523 = vmatprep.mubr.f32.mxu1 %v16944_v42 }
 0x763   : > { %14776 = vmatpush3.bf16.xpose.msra.mxu1 %v14773_v15 }
 0x764   : > { %14778 = vmatprep.subr.bf16.mxu1 %v14777_v44 }
 0x76a   : > { %13524 = vmatmul.mubr.f32.vlgmr.msra.gmra.mrb[16].mxu1 %v16979_v9 }
 0x76b   : > { %13526 = vmatprep.mubr.f32.mxu1 %v16981_v40  ;;  %14780 = vmatpush3.bf16.xpose.msra.mxu1 %v14777_v44 }
 0x76c   : > { %14782 = vmatprep.subr.bf16.mxu1 %v14781_v45 }
 0x76e   : > { %13527 = vmatmul.mubr.f32.gmra.mrb[18].mxu1 %v16995_v3 }
 0x76f   : > { %13537 = vmatprep.mubr.f32.mxu1 %v16951_v30 }
 0x773   : > { %14784 = vmatpush3.bf16.xpose.msra.mxu1 %v14781_v45 }
 0x774   : > { %14786 = vmatprep.subr.bf16.mxu1 %v16958_v27 }
 0x77a   : > { %13538 = vmatmul.mubr.f32.vlgmr.msra.gmra.mrb[16].mxu1 %v3941_v63 }
 0x77b   : > { %13540 = vmatprep.mubr.f32.mxu1 %v3951_v33  ;;  %14788 = vmatpush3.bf16.xpose.msra.mxu1 %v16958_v27 }
 0x77c   : > { %14790 = vmatprep.subr.bf16.mxu1 %v16988_v47 }
 0x77e   : > { %13541 = vmatmul.mubr.f32.gmra.mrb[18].mxu1 %v3961_v43 }
 0x77f   : > { %13551 = vmatprep.mubr.f32.mxu1 %v3932_v16 }
 0x783   : > { %14792 = vmatpush3.bf16.xpose.msra.mxu1 %v16988_v47 }
 0x784   : > { %14794 = vmatprep.subr.bf16.mxu1 %v14793_v31 }
 0x78a   : > { %13552 = vmatmul.mubr.f32.vlgmr.msra.gmra.mrb[16].mxu1 %v3942_v5 }
 0x78b   : > { %13554 = vmatprep.mubr.f32.mxu1 %v3952_v32  ;;  %14796 = vmatpush3.bf16.xpose.msra.mxu1 %v14793_v31 }
 0x78c   : > { %14798 = vmatprep.subr.bf16.mxu1 %v14797_v26 }
 0x78e   : > { %13555 = vmatmul.mubr.f32.gmra.mrb[18].mxu1 %v3962_v60 }
 0x78f   : > { %13565 = vmatprep.mubr.f32.mxu1 %v16944_v42 }
 0x793   : > { %14800 = vmatpush3.bf16.xpose.msra.mxu1 %v14797_v26 }
 0x794   : > { %14802 = vmatprep.subr.bf16.mxu1 %v16958_v27 }
 0x79a   : > { %13566 = vmatmul.mubr.f32.vlgmr.msra.gmra.mrb[16].mxu1 %v16979_v9 }
 0x79b   : > { %13568 = vmatprep.mubr.f32.mxu1 %v16981_v40  ;;  %14804 = vmatpush3.bf16.xpose.msra.mxu1 %v16958_v27 }
 0x79c   : > { %14806 = vmatprep.subr.bf16.mxu1 %v16988_v47 }
 0x79e   : > { %13569 = vmatmul.mubr.f32.gmra.mrb[18].mxu1 %v16995_v3 }
 0x79f   : > { %13579 = vmatprep.mubr.f32.mxu1 %v16944_v42  ;;  %v17041_v42 = vld [vmem:[%s19097_s4 + $0x8] sm:$0xff] }
 0x7a3   : > { %14808 = vmatpush3.bf16.xpose.msra.mxu1 %v16988_v47 }
 0x7aa   : > { %13580 = vmatmul.mubr.f32.vlgmr.msra.gmra.mrb[16].mxu1 %v16979_v9  ;;  %v17061_v9 = vld [vmem:[%s19097_s4 + $0x18] sm:$0xff] }
 0x7ab   : > { %13582 = vmatprep.mubr.f32.mxu1 %v16981_v40 }
 0x7ae   : > { %13583 = vmatmul.mubr.f32.gmra.mrb[18].mxu1 %v16995_v3 }
 0x818   : > { %v17030_v30 = vpop.f32.mrb[12].mxu1 }
 0x819   : > { %v17032_v16 = vpop.f32.mrb[13].mxu1 }
 0x81c   : > { %v17034_v14 = vpop.f32.mrb[14].mxu1 }
 0x81d   : > { %v17036_v27 = vpop.f32.mrb[15].mxu1 }
 0x87d   : > { %v13581_v56 = vpop.f32.mrb[16].mxu1 }
 0x87e   : > { %v15585_v20 = vadd.f32 %v17041_v42, %v13581_v56  ;;  %v4453_v25 = vpop.f32.mrb[17].mxu1 }
 0x87f   : > { %v15586_v54 = vadd.f32 %v17047_v37, %v4453_v25 }
 0x880   : > { %v4478_v23 = vsel %vm537_vm0, %v15585_v20, -inf }
 0x881   : > { %4479 = vmax.xlane.f32.xlu1 %v4478_v23  ;;  %v13584_v61 = vpop.f32.mrb[18].mxu1  ;;  %v4475_v58 = vsel %vm537_vm0, %v15586_v54, -inf }
 0x882   : > { %v4465_v0 = vpop.f32.mrb[19].mxu1  ;;  %4476 = vmax.xlane.f32.xlu0 %v4475_v58  ;;  %v15587_v38 = vadd.f32 %v17061_v9, %v13584_v61 }
 0x883   : > { %v15588_v8 = vadd.f32 %v17055_v34, %v4465_v0 }
 0x884   : > { %v4484_v41 = vsel %vm537_vm0, %v15587_v38, -inf }
 0x885   : > { %v4481_v40 = vsel %vm537_vm0, %v15588_v8, -inf }
 0x886   : > { %4482 = vmax.xlane.f32.xlu0 %v4481_v40 }
 0x88a   : > { %4485 = vmax.xlane.f32.xlu0 %v4484_v41 }
 0x892   : > { %4519 = vrot.lane.b32.xlu1 %v16441_v7, %s16196_s26 }
 0x90e   : > { %v4480_v1 = vpop.xlane.xlu1 %4479 }
 0x90f   : > { %v4488_v47 = vsub.f32 %v15585_v20, %v4480_v1  ;;  %v4477_v49 = vpop.xlane.xlu0 %4476 }
 0x910   : > { %v4487_v51 = vsub.f32 %v15586_v54, %v4477_v49 }
 0x911   : > { %v4493_v57 = vmul.f32 1.442695, %v4488_v47 }
 0x912   : > { %v4491_v63 = vmul.f32 1.442695, %v4487_v51 }
 0x913   : > { %16049 = vpow2.f32 %v4493_v57  ;;  %v4483_v3 = vpop.xlane.xlu0 %4482 }
 0x914   : > { %16051 = vpow2.f32 %v4491_v63  ;;  %v4489_v22 = vsub.f32 %v15588_v8, %v4483_v3 }
 0x916   : > { %v4495_v48 = vmul.f32 1.442695, %v4489_v22 }
 0x917   : > { %v4486_v33 = vpop.xlane.xlu0 %4485 }
 0x918   : > { %v4490_v2 = vsub.f32 %v15587_v38, %v4486_v33 }
 0x91a   : > { %v4497_v6 = vmul.f32 1.442695, %v4490_v2 }
 0x91c   : > { %16053 = vpow2.f32 %v4497_v6 }
 0x91d   : > { %v16050_v18 = vpop.eup %16049  ;;  %16055 = vpow2.f32 %v4495_v48 }
 0x91e   : > { %v16052_v5 = vpop.eup %16051  ;;  %v4502_v43 = vsel %vm537_vm0, %v16050_v18, 0.0 }
 0x91f   : > { %4503 = vadd.xlane.f32.xlu0 %v4502_v43  ;;  %v4499_v36 = vsel %vm537_vm0, %v16052_v5, 0.0 }
 0x920   : > { %4500 = vadd.xlane.f32.xlu1 %v4499_v36 }
 0x926   : > { %v16054_v32 = vpop.eup %16053 }
 0x927   : > { %v4508_v39 = vsel %vm537_vm0, %v16054_v32, 0.0  ;;  %v17079_v59 = vpop.eup %16055 }
 0x928   : > { %4509 = vadd.xlane.f32.xlu0 %v4508_v39  ;;  %v4505_v60 = vsel %vm537_vm0, %v17079_v59, 0.0 }
 0x931   : > { %4523 = vrot.lane.b32.xlu1 %v16450_v13, %s16196_s26 }
 0x93e   : > { %4521 = vrot.lane.b32.xlu0 %v16439_v4, %s16196_s26 }
 0x942   : > { %5165 = vrot.lane.b32.xlu0 %v16441_v7, %s16197_s24 }
 0x946   : > { %5169 = vrot.lane.b32.xlu0 %v16450_v13, %s16197_s24 }
 0x94a   : > { %5157 = vrot.lane.b32.xlu0 %v16446_v10, %s16198_s30  ;;  %v4520_v10 = vpop.permute.xlu1 %4519 }
 0x94b   : > { %v4544_v62 = vand.u32 4294901760, %v4520_v10 }
 0x94d   : > { %v17106_v61 = vsub.f32 %v4520_v10, %v4544_v62 }
 0x94e   : > { %5161 = vrot.lane.b32.xlu0 %v16474_v24, %s16198_s30 }
 0x94f   : > { %v4655_v40 = vand.u32 4294901760, %v17106_v61 }
 0x951   : > { %v4656_v57 = vsub.f32 %v17106_v61, %v4655_v40 }
 0x953   : > { %v4657_v36 = vand.u32 4294901760, %v4656_v57 }
 0x955   : > { %4506 = vadd.xlane.f32.xlu1 %v4505_v60 }
 0x966   : > { %4525 = vrot.lane.b32.xlu1 %v16448_v11, %s16196_s26  ;;  %s16201_s26 = smov 16  }
 0x96a   : > { %5167 = vrot.lane.b32.xlu1 %v16439_v4, %s16197_s24 }
 0x96e   : > { %5171 = vrot.lane.b32.xlu1 %v16448_v11, %s16197_s24  ;;  %s19128_s24 = smov 96  }
 0x972   : > { %5159 = vrot.lane.b32.xlu1 %v16470_v21, %s16198_s30 }
 0x976   : > { %5163 = vrot.lane.b32.xlu1 %v16481_v29, %s16198_s30 }
 0x9ac   : > { %v4504_v24 = vpop.xlane.xlu0 %4503 }
 0x9ad   : > { %v4501_v19 = vpop.xlane.xlu1 %4500 }
 0x9ae   : > { %16057 = vrcp.f32 %v4501_v19 }
 0x9af   : > { %16059 = vrcp.f32 %v4504_v24 }
 0x9b1   : > { %v4524_v23 = vpop.permute.xlu1 %4523 }
 0x9b2   : > { %v4550_v0 = vand.u32 4294901760, %v4524_v23 }
 0x9b4   : > { %v17115_v47 = vsub.f32 %v4524_v23, %v4550_v0 }
 0x9b5   : > { %v4510_v35 = vpop.xlane.xlu0 %4509 }
 0x9b6   : > { %16061 = vrcp.f32 %v4510_v35  ;;  %v4669_v33 = vand.u32 4294901760, %v17115_v47 }
 0x9b8   : > { %v16058_v50 = vpop.eup %16057  ;;  %v4670_v22 = vsub.f32 %v17115_v47, %v4669_v33 }
 0x9b9   : > { %v4512_v17 = vmul.f32 %v16058_v50, %v16052_v5  ;;  %v4522_v53 = vpop.permute.xlu0 %4521  ;;  %v16060_v56 = vpop.eup %16059 }
 0x9ba   : > { %v4547_v15 = vand.u32 4294901760, %v4522_v53  ;;  %v4514_v20 = vmul.f32 %v16060_v56, %v16050_v18 }
 0x9bb   : > { %v4532_v12 = vsel %vm537_vm0, %v4512_v17, 0  ;;  %v4671_v17 = vand.u32 4294901760, %v4670_v22 }
 0x9bc   : > { %v17090_v44 = vpack.c.bf16 %v4547_v15, %v4544_v62  ;;  %v17092_v45 = vand.u32 4294901760, %v4532_v12  ;;  %v4535_v25 = vsel %vm537_vm0, %v4514_v20, 0  ;;  %v17104_v54 = vsub.f32 %v4522_v53, %v4547_v15 }
 0x9bd   : > { %v17108_v58 = vand.u32 4294901760, %v4535_v25 }
 0x9be   : > { %14810 = vmatprep.subr.bf16.mxu0 %v17090_v44  ;;  %v17096_v21 = vsub.f32 %v4532_v12, %v17092_v45  ;;  %v4662_v8 = vand.u32 4294901760, %v17104_v54 }
 0x9bf   : > { %14812 = vmatpush3.bf16.msra.mxu0 %v17090_v44  ;;  %v17113_v41 = vsub.f32 %v4535_v25, %v17108_v58 }
 0x9c0   : > { %v4614_v29 = vand.u32 4294901760, %v17096_v21  ;;  %v16062_v38 = vpop.eup %16061  ;;  %v4663_v51 = vsub.f32 %v17104_v54, %v4662_v8 }
 0x9c1   : > { %v4518_v49 = vmul.f32 %v16062_v38, %v16054_v32  ;;  %v4624_v63 = vand.u32 4294901760, %v17113_v41 }
 0x9c2   : > { %v4615_v31 = vsub.f32 %v17096_v21, %v4614_v29  ;;  %v4664_v6 = vand.u32 4294901760, %v4663_v51  ;;  %v14841_v51 = vpack.c.bf16 %v4662_v8, %v4655_v40 }
 0x9c3   : > { %v4541_v18 = vsel %vm537_vm0, %v4518_v49, 0  ;;  %v4625_v32 = vsub.f32 %v17113_v41, %v4624_v63 }
 0x9c4   : > { %v4616_v26 = vand.u32 4294901760, %v4615_v31  ;;  %v17131_v39 = vand.u32 4294901760, %v4541_v18  ;;  %v14817_v60 = vpack.c.bf16 %v4664_v6, %v4657_v36 }
 0x9c5   : > { %v4626_v24 = vand.u32 4294901760, %v4625_v32 }
 0x9c6   : > { %13593 = vmatprep.mubr.f32.mxu0 %v4616_v26  ;;  %v4643_v50 = vsub.f32 %v4541_v18, %v17131_v39  ;;  %v14825_v26 = vpack.c.bf16 %v17104_v54, %v17106_v61 }
 0x9c8   : > { %v4644_v31 = vand.u32 4294901760, %v4643_v50 }
 0x9ca   : > { %v4645_v20 = vsub.f32 %v4643_v50, %v4644_v31 }
 0x9e2   : > { %v4507_v1 = vpop.xlane.xlu1 %4506 }
 0x9e3   : > { %16063 = vrcp.f32 %v4507_v1  ;;  %v5166_v1 = vpop.permute.xlu0 %5165 }
 0x9e6   : > { %v4526_v3 = vpop.permute.xlu1 %4525 }
 0x9e7   : > { %v4553_v2 = vand.u32 4294901760, %v4526_v3  ;;  %v5170_v49 = vpop.permute.xlu0 %5169 }
 0x9e8   : > { %v5185_v22 = vsel %vm1184_vm1, %v5170_v49, 0 }
 0x9e9   : > { %v17126_v5 = vpack.c.bf16 %v4553_v2, %v4550_v0  ;;  %v4675_v43 = vsub.f32 %v4526_v3, %v4553_v2  ;;  %v4646_v0 = vand.u32 4294901760, %v4645_v20 }
 0x9ea   : > { %v5168_v3 = vpop.permute.xlu1 %5167 }
 0x9eb   : > { %v4676_v48 = vand.u32 4294901760, %v4675_v43  ;;  %14814 = vmatprep.subr.bf16.mxu0 %v17126_v5  ;;  %v14829_v38 = vpack.c.bf16 %v4675_v43, %v17115_v47  ;;  %v5158_v57 = vpop.permute.xlu0 %5157  ;;  %v5183_v61 = vsel %vm1184_vm1, %v5168_v3, 0 }
 0x9ec   : > { %14816 = vmatpush3.bf16.msra.mxu0 %v17126_v5  ;;  %v5173_v2 = vsel %vm1184_vm1, %v5158_v57, 0  ;;  %v5193_v40 = vand.u32 4294901760, %v5183_v61 }
 0x9ed   : > { %v16064_v10 = vpop.eup %16063  ;;  %v4677_v19 = vsub.f32 %v4675_v43, %v4676_v48  ;;  %14818 = vmatprep.subr.bf16.mxu0 %v14817_v60  ;;  %v14845_v6 = vpack.c.bf16 %v4676_v48, %v4669_v33  ;;  %v17168_v54 = vand.u32 4294901760, %v5173_v2 }
 0x9ee   : > { %v4516_v35 = vmul.f32 %v16064_v10, %v17079_v59  ;;  %v17185_v18 = vsub.f32 %v5183_v61, %v5193_v40 }
 0x9ef   : > { %13594 = vmatmul.mubr.f32.vlgmr.msra.gmra.mrb[12].mxu0 %v4626_v24  ;;  %v4678_v53 = vand.u32 4294901760, %v4677_v19  ;;  %v17175_v8 = vsub.f32 %v5173_v2, %v17168_v54  ;;  %v5162_v43 = vpop.permute.xlu0 %5161  ;;  %v5196_v24 = vand.u32 4294901760, %v5185_v22 }
 0x9f0   : > { %14820 = vmatpush3.bf16.msra.mxu0 %v14817_v60  ;;  %v4538_v62 = vsel %vm537_vm0, %v4516_v35, 0 }
 0x9f1   : > { %v14821_v15 = vpack.c.bf16 %v4678_v53, %v4671_v17  ;;  %v17141_v12 = vand.u32 4294901760, %v4538_v62  ;;  %v5260_v47 = vand.u32 4294901760, %v17175_v8 }
 0x9f3   : > { %14822 = vmatprep.subr.bf16.mxu0 %v14821_v15  ;;  %v4633_v56 = vsub.f32 %v4538_v62, %v17141_v12  ;;  %v5261_v32 = vsub.f32 %v17175_v8, %v5260_v47 }
 0x9f4   : > { %14824 = vmatpush3.bf16.msra.mxu0 %v14821_v15 }
 0x9f5   : > { %14826 = vmatprep.subr.bf16.mxu0 %v14825_v26  ;;  %v4634_v59 = vand.u32 4294901760, %v4633_v56 }
 0x9f7   : > { %v4635_v25 = vsub.f32 %v4633_v56, %v4634_v59 }
 0x9f9   : > { %v4636_v23 = vand.u32 4294901760, %v4635_v25 }
 0x9fb   : > { %13596 = vmatprep.mubr.f32.mxu0 %v4636_v23 }
 0x9fc   : > { %13597 = vmatmul.mubr.f32.gmra.mrb[14].mxu0 %v4646_v0 }
 0x9fd   : > { %13607 = vmatprep.mubr.f32.mxu0 %v17092_v45 }
 0xa00   : > { %13608 = vmatmul.mubr.f32.vlgmr.msra.gmra.mrb[12].mxu0 %v17108_v58 }
 0xa01   : > { %14828 = vmatpush3.bf16.msra.mxu0 %v14825_v26  ;;  %13610 = vmatprep.mubr.f32.mxu0 %v17141_v12 }
 0xa02   : > { %14830 = vmatprep.subr.bf16.mxu0 %v14829_v38 }
 0xa04   : > { %13611 = vmatmul.mubr.f32.gmra.mrb[14].mxu0 %v17131_v39 }
 0xa05   : > { %14832 = vmatpush3.bf16.msra.mxu0 %v14829_v38  ;;  %13621 = vmatprep.mubr.f32.mxu0 %v17096_v21  ;;  %v5172_v21 = vpop.permute.xlu1 %5171 }
 0xa06   : > { %14834 = vmatprep.subr.bf16.mxu0 %v17090_v44 }
 0xa08   : > { %13622 = vmatmul.mubr.f32.vlgmr.msra.gmra.mrb[12].mxu0 %v17113_v41 }
 0xa09   : > { %14836 = vmatpush3.bf16.msra.mxu0 %v17090_v44  ;;  %13624 = vmatprep.mubr.f32.mxu0 %v4633_v56 }
 0xa0a   : > { %14838 = vmatprep.subr.bf16.mxu0 %v17126_v5 }
 0xa0c   : > { %13625 = vmatmul.mubr.f32.gmra.mrb[14].mxu0 %v4643_v50  ;;  %v5262_v50 = vand.u32 4294901760, %v5261_v32 }
 0xa0d   : > { %14840 = vmatpush3.bf16.msra.mxu0 %v17126_v5  ;;  %13635 = vmatprep.mubr.f32.mxu0 %v4614_v29  ;;  %v5181_v29 = vsel %vm1184_vm1, %v5166_v1, 0 }
 0xa0e   : > { %14842 = vmatprep.subr.bf16.mxu0 %v14841_v51  ;;  %v5190_v41 = vand.u32 4294901760, %v5181_v29 }
 0xa10   : > { %13636 = vmatmul.mubr.f32.vlgmr.msra.gmra.mrb[12].mxu0 %v4624_v63  ;;  %v5160_v63 = vpop.permute.xlu1 %5159  ;;  %v17182_v33 = vpack.c.bf16 %v5193_v40, %v5190_v41  ;;  %v17191_v36 = vsub.f32 %v5181_v29, %v5190_v41 }
 0xa11   : > { %14844 = vmatpush3.bf16.msra.mxu0 %v14841_v51  ;;  %13638 = vmatprep.mubr.f32.mxu0 %v4634_v59  ;;  %v5175_v48 = vsel %vm1184_vm1, %v5160_v63, 0 }
 0xa12   : > { %14846 = vmatprep.subr.bf16.mxu0 %v14845_v6  ;;  %v5301_v19 = vand.u32 4294901760, %v17191_v36  ;;  %v17203_v35 = vand.u32 4294901760, %v5175_v48 }
 0xa14   : > { %13639 = vmatmul.mubr.f32.gmra.mrb[14].mxu0 %v4644_v31  ;;  %v5164_v10 = vpop.permute.xlu1 %5163  ;;  %v5314_v31 = vsub.f32 %v5185_v22, %v5196_v24  ;;  %v5269_v26 = vsub.f32 %v5175_v48, %v17203_v35 }
 0xa15   : > { %14848 = vmatpush3.bf16.msra.mxu0 %v14845_v6  ;;  %13649 = vmatprep.mubr.f32.mxu0 %v17092_v45  ;;  %v5179_v53 = vsel %vm1184_vm1, %v5164_v10, 0 }
 0xa16   : > { %14850 = vmatprep.subr.bf16.mxu0 %v17090_v44  ;;  %v17219_v56 = vand.u32 4294901760, %v5179_v53  ;;  %v5315_v25 = vand.u32 4294901760, %v5314_v31  ;;  %v5270_v23 = vand.u32 4294901760, %v5269_v26 }
 0xa18   : > { %13650 = vmatmul.mubr.f32.vlgmr.msra.gmra.mrb[12].mxu0 %v17108_v58  ;;  %v5289_v0 = vsub.f32 %v5179_v53, %v17219_v56  ;;  %v5316_v57 = vsub.f32 %v5314_v31, %v5315_v25  ;;  %v5271_v3 = vsub.f32 %v5269_v26, %v5270_v23 }
 0xa19   : > { %14852 = vmatpush3.bf16.msra.mxu0 %v17090_v44  ;;  %13652 = vmatprep.mubr.f32.mxu0 %v17141_v12  ;;  %v5187_v44 = vsel %vm1184_vm1, %v5172_v21, 0 }
 0xa1a   : > { %14854 = vmatprep.subr.bf16.mxu0 %v17126_v5  ;;  %v5199_v60 = vand.u32 4294901760, %v5187_v44  ;;  %v5290_v2 = vand.u32 4294901760, %v5289_v0  ;;  %v5272_v21 = vand.u32 4294901760, %v5271_v3  ;;  %v5317_v29 = vand.u32 4294901760, %v5316_v57 }
 0xa1c   : > { %13653 = vmatmul.mubr.f32.gmra.mrb[14].mxu0 %v17131_v39  ;;  %v17212_v62 = vpack.c.bf16 %v5199_v60, %v5196_v24  ;;  %v5321_v15 = vsub.f32 %v5187_v44, %v5199_v60  ;;  %v5291_v40 = vsub.f32 %v5289_v0, %v5290_v2  ;;  %v14873_v44 = vpack.c.bf16 %v17185_v18, %v17191_v36  ;;  %v17270_v60 = vld [vmem:[%s16373_s16 + $0x18] sm:$0xff] }
 0xa1d   : > { %14856 = vmatpush3.bf16.msra.mxu0 %v17126_v5  ;;  %13663 = vmatprep.mubr.f32.mxu0 %v17092_v45  ;;  %v5177_v5 = vsel %vm1184_vm1, %v5162_v43, 0  ;;  %v5308_v45 = vand.u32 4294901760, %v17185_v18  ;;  %v7214_v10 = vand.u32 4294901760, %v17270_v60 }
 0xa1e   : > { %14858 = vmatprep.subr.bf16.mxu0 %v17182_v33  ;;  %v17205_v17 = vand.u32 4294901760, %v5177_v5  ;;  %v5322_v59 = vand.u32 4294901760, %v5321_v15  ;;  %v5292_v43 = vand.u32 4294901760, %v5291_v40  ;;  %v14877_v32 = vpack.c.bf16 %v5321_v15, %v5314_v31 }
 0xa1f   : > { %v14889_v22 = vpack.c.bf16 %v5308_v45, %v5301_v19  ;;  %v17353_v40 = vsub.f32 %v17270_v60, %v7214_v10 }
 0xa20   : > { %13664 = vmatmul.mubr.f32.vlgmr.msra.gmra.mrb[12].mxu0 %v17108_v58  ;;  %v5309_v58 = vsub.f32 %v17185_v18, %v5308_v45  ;;  %v5323_v49 = vsub.f32 %v5321_v15, %v5322_v59  ;;  %v14893_v48 = vpack.c.bf16 %v5322_v59, %v5315_v25  ;;  %v17252_v18 = vld [vmem:[%s16373_s16 + $0x8] sm:$0xff] }
 0xa21   : > { %13666 = vmatprep.mubr.f32.mxu0 %v17141_v12  ;;  %v5302_v12 = vsub.f32 %v17191_v36, %v5301_v19  ;;  %v7208_v36 = vand.u32 4294901760, %v17252_v18 }
 0xa22   : > { %v5310_v20 = vand.u32 4294901760, %v5309_v58  ;;  %v5324_v61 = vand.u32 4294901760, %v5323_v49 }
 0xa23   : > { %v5303_v38 = vand.u32 4294901760, %v5302_v12 }
 0xa24   : > { %13667 = vmatmul.mubr.f32.gmra.mrb[14].mxu0 %v17131_v39  ;;  %v5279_v39 = vsub.f32 %v5177_v5, %v17205_v17  ;;  %v14869_v63 = vpack.c.bf16 %v5324_v61, %v5317_v29 }
 0xa25   : > { %13677 = vmatprep.mubr.f32.mxu0 %v5262_v50  ;;  %v14865_v51 = vpack.c.bf16 %v5310_v20, %v5303_v38 }
 0xa26   : > { %14860 = vmatpush3.bf16.xpose.msra.mxu0 %v17182_v33  ;;  %v5280_v1 = vand.u32 4294901760, %v5279_v39 }
 0xa27   : > { %14862 = vmatprep.subr.bf16.mxu0 %v17212_v62 }
 0xa28   : > { %v5281_v6 = vsub.f32 %v5279_v39, %v5280_v1 }
 0xa2a   : > { %v5282_v41 = vand.u32 4294901760, %v5281_v6 }
 0xa2e   : > { %14864 = vmatpush3.bf16.xpose.msra.mxu0 %v17212_v62 }
 0xa2f   : > { %14866 = vmatprep.subr.bf16.mxu0 %v14865_v51 }
 0xa35   : > { %13678 = vmatmul.mubr.f32.vlgmr.msra.gmra.mrb[16].mxu0 %v5272_v21 }
 0xa36   : > { %13680 = vmatprep.mubr.f32.mxu0 %v5282_v41  ;;  %14868 = vmatpush3.bf16.xpose.msra.mxu0 %v14865_v51 }
 0xa37   : > { %14870 = vmatprep.subr.bf16.mxu0 %v14869_v63 }
 0xa39   : > { %13681 = vmatmul.mubr.f32.gmra.mrb[18].mxu0 %v5292_v43 }
 0xa3a   : > { %13691 = vmatprep.mubr.f32.mxu0 %v17168_v54 }
 0xa3e   : > { %14872 = vmatpush3.bf16.xpose.msra.mxu0 %v14869_v63 }
 0xa3f   : > { %14874 = vmatprep.subr.bf16.mxu0 %v14873_v44 }
 0xa45   : > { %13692 = vmatmul.mubr.f32.vlgmr.msra.gmra.mrb[16].mxu0 %v17203_v35 }
 0xa46   : > { %13694 = vmatprep.mubr.f32.mxu0 %v17205_v17  ;;  %14876 = vmatpush3.bf16.xpose.msra.mxu0 %v14873_v44  ;;  %v7187_v44 = vld [vmem:[%s19099_s2 + $0x18] sm:$0xff] }
 0xa47   : > { %14878 = vmatprep.subr.bf16.mxu0 %v14877_v32 }
 0xa49   : > { %13695 = vmatmul.mubr.f32.gmra.mrb[18].mxu0 %v17219_v56 }
 0xa4a   : > { %13705 = vmatprep.mubr.f32.mxu0 %v17175_v8  ;;  %v17248_v8 = vld [vmem:[%s16373_s16] sm:$0xff] }
 0xa4e   : > { %14880 = vmatpush3.bf16.xpose.msra.mxu0 %v14877_v32 }
 0xa4f   : > { %14882 = vmatprep.subr.bf16.mxu0 %v17182_v33 }
 0xa55   : > { %13706 = vmatmul.mubr.f32.vlgmr.msra.gmra.mrb[16].mxu0 %v5269_v26 }
 0xa56   : > { %13708 = vmatprep.mubr.f32.mxu0 %v5279_v39  ;;  %14884 = vmatpush3.bf16.xpose.msra.mxu0 %v17182_v33 }
 0xa57   : > { %14886 = vmatprep.subr.bf16.mxu0 %v17212_v62 }
 0xa59   : > { %13709 = vmatmul.mubr.f32.gmra.mrb[18].mxu0 %v5289_v0 }
 0xa5a   : > { %13719 = vmatprep.mubr.f32.mxu0 %v5260_v47  ;;  %v7205_v47 = vand.u32 4294901760, %v17248_v8 }
 0xa5c   : > { %v17262_v5 = vpack.c.bf16 %v7208_v36, %v7205_v47 }
 0xa5e   : > { %14888 = vmatpush3.bf16.xpose.msra.mxu0 %v17212_v62 }
 0xa5f   : > { %14890 = vmatprep.subr.bf16.mxu0 %v14889_v22 }
 0xa65   : > { %13720 = vmatmul.mubr.f32.vlgmr.msra.gmra.mrb[16].mxu0 %v5270_v23 }
 0xa66   : > { %13722 = vmatprep.mubr.f32.mxu0 %v5280_v1  ;;  %14892 = vmatpush3.bf16.xpose.msra.mxu0 %v14889_v22 }
 0xa67   : > { %14894 = vmatprep.subr.bf16.mxu0 %v14893_v48 }
 0xa69   : > { %13723 = vmatmul.mubr.f32.gmra.mrb[18].mxu0 %v5290_v2 }
 0xa6a   : > { %13733 = vmatprep.mubr.f32.mxu0 %v17168_v54 }
 0xa6e   : > { %14896 = vmatpush3.bf16.xpose.msra.mxu0 %v14893_v48 }
 0xa6f   : > { %14898 = vmatprep.subr.bf16.mxu0 %v17182_v33 }
 0xa75   : > { %13734 = vmatmul.mubr.f32.vlgmr.msra.gmra.mrb[16].mxu0 %v17203_v35 }
 0xa76   : > { %13736 = vmatprep.mubr.f32.mxu0 %v17205_v17  ;;  %14900 = vmatpush3.bf16.xpose.msra.mxu0 %v17182_v33  ;;  %v17266_v33 = vld [vmem:[%s16373_s16 + $0x10] sm:$0xff] }
 0xa77   : > { %14902 = vmatprep.subr.bf16.mxu0 %v17212_v62  ;;  %v7211_v45 = vand.u32 4294901760, %v17266_v33 }
 0xa79   : > { %13737 = vmatmul.mubr.f32.gmra.mrb[18].mxu0 %v17219_v56 }
 0xa7a   : > { %13747 = vmatprep.mubr.f32.mxu0 %v17168_v54  ;;  %v17278_v54 = vpack.c.bf16 %v7214_v10, %v7211_v45 }
 0xa7e   : > { %14904 = vmatpush3.bf16.xpose.msra.mxu0 %v17212_v62 }
 0xa7f   : > { %15002 = vmatprep.subr.bf16.mxu0 %v17262_v5 }
 0xa85   : > { %13748 = vmatmul.mubr.f32.vlgmr.msra.gmra.mrb[16].mxu0 %v17203_v35 }
 0xa86   : > { %13750 = vmatprep.mubr.f32.mxu0 %v17205_v17  ;;  %15004 = vmatpush3.bf16.msra.mxu0 %v17262_v5 }
 0xa87   : > { %15006 = vmatprep.subr.bf16.mxu0 %v17278_v54 }
 0xa89   : > { %13751 = vmatmul.mubr.f32.gmra.mrb[18].mxu0 %v17219_v56 }
 0xa8a   : > { %15008 = vmatpush3.bf16.msra.mxu0 %v17278_v54 }
 0xaf3   : > { %v13665_v19 = vpop.f32.mrb[12].mxu0 }
 0xaf4   : > { %v5135_v24 = vpop.f32.mrb[13].mxu0 }
 0xaf7   : > { %v13668_v50 = vpop.f32.mrb[14].mxu0 }
 0xaf8   : > { %v5147_v53 = vpop.f32.mrb[15].mxu0 }
 0xb58   : > { %v13749_v58 = vpop.f32.mrb[16].mxu0 }
 0xb59   : > { %v15589_v62 = vadd.f32 %v17041_v42, %v13749_v58  ;;  %v5781_v15 = vpop.f32.mrb[17].mxu0 }
 0xb5a   : > { %v15590_v35 = vadd.f32 %v17047_v37, %v5781_v15 }
 0xb5b   : > { %v5806_v17 = vsel %vm537_vm0, %v15589_v62, -inf }
 0xb5c   : > { %5807 = vmax.xlane.f32.xlu1 %v5806_v17  ;;  %v13752_v12 = vpop.f32.mrb[18].mxu0  ;;  %v5803_v31 = vsel %vm537_vm0, %v15590_v35, -inf }
 0xb5d   : > { %v5793_v26 = vpop.f32.mrb[19].mxu0  ;;  %5804 = vmax.xlane.f32.xlu0 %v5803_v31  ;;  %v15591_v39 = vadd.f32 %v17061_v9, %v13752_v12 }
 0xb5e   : > { %v15592_v56 = vadd.f32 %v17055_v34, %v5793_v26 }
 0xb5f   : > { %v5812_v42 = vsel %vm537_vm0, %v15591_v39, -inf }
 0xb60   : > { %v5809_v59 = vsel %vm537_vm0, %v15592_v56, -inf }
 0xb61   : > { %5810 = vmax.xlane.f32.xlu0 %v5809_v59 }
 0xb65   : > { %5813 = vmax.xlane.f32.xlu0 %v5812_v42 }
 0xb6d   : > { %5847 = vrot.lane.b32.xlu1 %v16441_v7, %s16199_s17 }
 0xbe9   : > { %v5808_v37 = vpop.xlane.xlu1 %5807 }
 0xbea   : > { %v5816_v20 = vsub.f32 %v15589_v62, %v5808_v37  ;;  %v5805_v25 = vpop.xlane.xlu0 %5804 }
 0xbeb   : > { %v5815_v23 = vsub.f32 %v15590_v35, %v5805_v25 }
 0xbec   : > { %v5821_v0 = vmul.f32 1.442695, %v5816_v20 }
 0xbed   : > { %v5819_v38 = vmul.f32 1.442695, %v5815_v23 }
 0xbee   : > { %16065 = vpow2.f32 %v5821_v0  ;;  %v5811_v34 = vpop.xlane.xlu0 %5810 }
 0xbef   : > { %16067 = vpow2.f32 %v5819_v38  ;;  %v5817_v61 = vsub.f32 %v15592_v56, %v5811_v34 }
 0xbf1   : > { %v5823_v21 = vmul.f32 1.442695, %v5817_v61 }
 0xbf2   : > { %v5814_v9 = vpop.xlane.xlu0 %5813 }
 0xbf3   : > { %v5818_v1 = vsub.f32 %v15591_v39, %v5814_v9 }
 0xbf5   : > { %v5825_v49 = vmul.f32 1.442695, %v5818_v1 }
 0xbf7   : > { %16069 = vpow2.f32 %v5825_v49 }
 0xbf8   : > { %v17296_v51 = vpop.eup %16065  ;;  %16071 = vpow2.f32 %v5823_v21 }
 0xbf9   : > { %v17298_v57 = vpop.eup %16067  ;;  %v5830_v7 = vsel %vm537_vm0, %v17296_v51, 0.0 }
 0xbfa   : > { %5831 = vadd.xlane.f32.xlu0 %v5830_v7  ;;  %v5827_v3 = vsel %vm537_vm0, %v17298_v57, 0.0 }
 0xbfb   : > { %5828 = vadd.xlane.f32.xlu1 %v5827_v3 }
 0xc01   : > { %v17304_v2 = vpop.eup %16069 }
 0xc02   : > { %v5836_v6 = vsel %vm537_vm0, %v17304_v2, 0.0  ;;  %v17316_v29 = vpop.eup %16071 }
 0xc03   : > { %5837 = vadd.xlane.f32.xlu0 %v5836_v6 }
 0xc0c   : > { %5851 = vrot.lane.b32.xlu1 %v16450_v13, %s16199_s17  ;;  %v5833_v13 = vsel %vm537_vm0, %v17316_v29, 0.0 }
 0xc19   : > { %5849 = vrot.lane.b32.xlu0 %v16439_v4, %s16199_s17  ;;  %v7184_v4 = vld [vmem:[%s19099_s2] sm:$0xff] }
 0xc1a   : > { %v7193_v41 = vsel %vm537_vm0, %v7184_v4, 0 }
 0xc1b   : > { %v17361_v32 = vand.u32 4294901760, %v7193_v41 }
 0xc1d   : > { %6489 = vrot.lane.b32.xlu0 %v17032_v16, %s19046_s23  ;;  %v7185_v16 = vld [vmem:[%s19099_s2 + $0x8] sm:$0xff] }
 0xc1e   : > { %v7196_v63 = vsel %vm537_vm0, %v7185_v16, 0 }
 0xc1f   : > { %v17363_v22 = vand.u32 4294901760, %v7196_v63 }
 0xc21   : > { %6505 = vrot.lane.b32.xlu0 %v5135_v24, %s16201_s26  ;;  %v17376_v60 = vsub.f32 %v7196_v63, %v17363_v22  ;;  %v17384_v24 = vpop.permute.xlu1 %5847 }
 0xc22   : > { %v5872_v16 = vand.u32 4294901760, %v17384_v24 }
 0xc23   : > { %v17401_v35 = vand.u32 4294901760, %v17376_v60 }
 0xc25   : > { %6493 = vrot.lane.b32.xlu0 %v17036_v27, %s19046_s23  ;;  %v17348_v27 = vsub.f32 %v17266_v33, %v7211_v45  ;;  %v7337_v33 = vand.u32 4294901760, %v17353_v40  ;;  %v17373_v45 = vsub.f32 %v7193_v41, %v17361_v32  ;;  %v7286_v42 = vsub.f32 %v17376_v60, %v17401_v35 }
 0xc27   : > { %v7338_v62 = vsub.f32 %v17353_v40, %v7337_v33  ;;  %v17398_v15 = vand.u32 4294901760, %v17373_v45  ;;  %v17422_v38 = vand.u32 4294901760, %v7286_v42  ;;  %v17450_v61 = vpack.c.bf16 %v17353_v40, %v17348_v27 }
 0xc29   : > { %6509 = vrot.lane.b32.xlu0 %v5147_v53, %s16201_s26  ;;  %v7339_v39 = vand.u32 4294901760, %v7338_v62  ;;  %v7276_v59 = vsub.f32 %v17373_v45, %v17398_v15 }
 0xc2b   : > { %v17420_v0 = vand.u32 4294901760, %v7276_v59 }
 0xc2d   : > { %13929 = vmatprep.mubr.f32.mxu0 %v17420_v0 }
 0xc2e   : > { %13930 = vmatmul.mubr.f32.vlgmr.msra.gmra.mrb[20].mxu0 %v17422_v38 }
 0xc30   : > { %5834 = vadd.xlane.f32.xlu1 %v5833_v13 }
 0xc41   : > { %5853 = vrot.lane.b32.xlu1 %v16448_v11, %s16199_s17  ;;  %v17335_v11 = vsub.f32 %v17248_v8, %v7205_v47  ;;  %s12264_s17 = sshll.u32 %s16308_s22, 9 }
 0xc42   : > { %s18938_s22 = scalar_lea.hbm %s19003_s15, %s12264_s17 }
 0xc43   : > { %v7316_v48 = vand.u32 4294901760, %v17335_v11 }
 0xc45   : > { %6491 = vrot.lane.b32.xlu1 %v17030_v30, %s19046_s23  ;;  %v17340_v30 = vsub.f32 %v17252_v18, %v7208_v36  ;;  %v7202_v18 = vsel %vm537_vm0, %v7187_v44, 0  ;;  %v7330_v36 = vand.u32 4294901760, %v17348_v27  ;;  %v7317_v10 = vsub.f32 %v17335_v11, %v7316_v48 }
 0xc46   : > { %v17389_v53 = vand.u32 4294901760, %v7202_v18 }
 0xc47   : > { %v7323_v8 = vand.u32 4294901760, %v17340_v30  ;;  %v7331_v58 = vsub.f32 %v17348_v27, %v7330_v36  ;;  %v7318_v17 = vand.u32 4294901760, %v7317_v10  ;;  %v17440_v3 = vpack.c.bf16 %v17340_v30, %v17335_v11 }
 0xc48   : > { %v17407_v26 = vsub.f32 %v7202_v18, %v17389_v53  ;;  %v17504_v11 = vpack.c.bf16 %v7337_v33, %v7330_v36  ;;  %v7191_v33 = vld [vmem:[%s19100_s3 + $0x18] sm:$0xff] }
 0xc49   : > { %6507 = vrot.lane.b32.xlu1 %v13665_v19, %s16201_s26  ;;  %v7324_v19 = vsub.f32 %v17340_v30, %v7323_v8  ;;  %v7332_v56 = vand.u32 4294901760, %v7331_v58  ;;  %v17491_v10 = vpack.c.bf16 %v7323_v8, %v7316_v48  ;;  %v7188_v58 = vld [vmem:[%s19100_s3] sm:$0xff]  ;;  %v7189_v48 = vld [vmem:[%s19100_s3 + $0x8] sm:$0xff]  ;;  %v7190_v8 = vld [vmem:[%s19100_s3 + $0x10] sm:$0xff] }
 0xc4a   : > { %v17418_v23 = vand.u32 4294901760, %v17407_v26  ;;  %v8433_v30 = vsel %vm537_vm0, %v7188_v58, 0  ;;  %v8436_v40 = vsel %vm537_vm0, %v7189_v48, 0  ;;  %v8439_v36 = vsel %vm537_vm0, %v7190_v8, 0 }
 0xc4b   : > { %v7325_v12 = vand.u32 4294901760, %v7324_v19  ;;  %v17429_v1 = vpack.c.bf16 %v7339_v39, %v7332_v56  ;;  %v17516_v27 = vand.u32 4294901760, %v8433_v30  ;;  %v17525_v62 = vand.u32 4294901760, %v8436_v40 }
 0xc4c   : > { %v7306_v9 = vsub.f32 %v17407_v26, %v17418_v23  ;;  %v8442_v56 = vsel %vm537_vm0, %v7191_v33, 0  ;;  %v17590_v8 = vsub.f32 %v17384_v24, %v5872_v16 }
 0xc4d   : > { %6495 = vrot.lane.b32.xlu1 %v17034_v14, %s19046_s23  ;;  %v7186_v14 = vld [vmem:[%s19099_s2 + $0x10] sm:$0xff]  ;;  %v17413_v37 = vpack.c.bf16 %v7325_v12, %v7318_v17  ;;  %19101 = vst [vmem:[#allocation8_spill] sm:$0xff] %v17516_v27  ;;  %19102 = vst [vmem:[#allocation9_spill] sm:$0xff] %v17525_v62  ;;  %v17530_v17 = vsub.f32 %v8433_v30, %v17516_v27  ;;  %v17532_v12 = vand.u32 4294901760, %v8439_v36  ;;  %v17540_v59 = vand.u32 4294901760, %v8442_v56  ;;  %s19210_s2 = sshll.u32 %s19223_s27, 3 }
 0xc4e   : > { %v7199_v43 = vsel %vm537_vm0, %v7186_v14, 0  ;;  %v17433_v7 = vand.u32 4294901760, %v7306_v9  ;;  %v17538_v39 = vsub.f32 %v8436_v40, %v17525_v62 }
 0xc4f   : > { %v17367_v47 = vand.u32 4294901760, %v7199_v43  ;;  %15010 = vmatprep.subr.bf16.mxu0 %v17413_v37  ;;  %19103 = vst [vmem:[#allocation10_spill] sm:$0xff] %v17530_v17  ;;  %19104 = vst [vmem:[#allocation11_spill] sm:$0xff] %v17532_v12  ;;  %v17545_v42 = vand.u32 4294901760, %v17530_v17 }
 0xc50   : > { %15012 = vmatpush3.bf16.msra.mxu0 %v17413_v37  ;;  %19105 = vst [vmem:[#allocation12_spill] sm:$0xff] %v17538_v39  ;;  %19106 = vst [vmem:[#allocation13_spill] sm:$0xff] %v17540_v59  ;;  %v17553_v9 = vand.u32 4294901760, %v17538_v39 }
 0xc51   : > { %6511 = vrot.lane.b32.xlu1 %v13668_v50, %s16201_s26  ;;  %v17387_v50 = vsub.f32 %v7199_v43, %v17367_v47  ;;  %15014 = vmatprep.subr.bf16.mxu0 %v17429_v1  ;;  %19107 = vst [vmem:[#allocation14_spill] sm:$0xff] %v17545_v42  ;;  %s19155_s26 = smov 64  }
 0xc52   : > { %19109 = vst [vmem:[#allocation16_spill] sm:$0xff] %v17553_v9 }
 0xc53   : > { %v17404_v31 = vand.u32 4294901760, %v17387_v50 }
 0xc54   : > { %15016 = vmatpush3.bf16.msra.mxu0 %v17429_v1 }
 0xc55   : > { %v7296_v25 = vsub.f32 %v17387_v50, %v17404_v31  ;;  %15018 = vmatprep.subr.bf16.mxu0 %v17440_v3 }
 0xc57   : > { %v17425_v34 = vand.u32 4294901760, %v7296_v25 }
 0xc59   : > { %13932 = vmatprep.mubr.f32.mxu0 %v17425_v34 }
 0xc5a   : > { %13933 = vmatmul.mubr.f32.gmra.mrb[22].mxu0 %v17433_v7 }
 0xc5b   : > { %13943 = vmatprep.mubr.f32.mxu0 %v17361_v32 }
 0xc5e   : > { %13944 = vmatmul.mubr.f32.vlgmr.msra.gmra.mrb[20].mxu0 %v17363_v22 }
 0xc5f   : > { %15020 = vmatpush3.bf16.msra.mxu0 %v17440_v3  ;;  %13946 = vmatprep.mubr.f32.mxu0 %v17367_v47 }
 0xc60   : > { %15022 = vmatprep.subr.bf16.mxu0 %v17450_v61 }
 0xc62   : > { %13947 = vmatmul.mubr.f32.gmra.mrb[22].mxu0 %v17389_v53 }
 0xc63   : > { %15024 = vmatpush3.bf16.msra.mxu0 %v17450_v61  ;;  %13957 = vmatprep.mubr.f32.mxu0 %v17373_v45 }
 0xc64   : > { %15026 = vmatprep.subr.bf16.mxu0 %v17262_v5 }
 0xc66   : > { %13958 = vmatmul.mubr.f32.vlgmr.msra.gmra.mrb[20].mxu0 %v17376_v60 }
 0xc67   : > { %15028 = vmatpush3.bf16.msra.mxu0 %v17262_v5  ;;  %13960 = vmatprep.mubr.f32.mxu0 %v17387_v50 }
 0xc68   : > { %15030 = vmatprep.subr.bf16.mxu0 %v17278_v54 }
 0xc6a   : > { %13961 = vmatmul.mubr.f32.gmra.mrb[22].mxu0 %v17407_v26 }
 0xc6b   : > { %15032 = vmatpush3.bf16.msra.mxu0 %v17278_v54  ;;  %13971 = vmatprep.mubr.f32.mxu0 %v17398_v15 }
 0xc6c   : > { %15034 = vmatprep.subr.bf16.mxu0 %v17491_v10 }
 0xc6e   : > { %13972 = vmatmul.mubr.f32.vlgmr.msra.gmra.mrb[20].mxu0 %v17401_v35 }
 0xc6f   : > { %15036 = vmatpush3.bf16.msra.mxu0 %v17491_v10  ;;  %13974 = vmatprep.mubr.f32.mxu0 %v17404_v31 }
 0xc70   : > { %15038 = vmatprep.subr.bf16.mxu0 %v17504_v11 }
 0xc72   : > { %13975 = vmatmul.mubr.f32.gmra.mrb[22].mxu0 %v17418_v23 }
 0xc73   : > { %15040 = vmatpush3.bf16.msra.mxu0 %v17504_v11  ;;  %13985 = vmatprep.mubr.f32.mxu0 %v17361_v32 }
 0xc74   : > { %15042 = vmatprep.subr.bf16.mxu0 %v17262_v5 }
 0xc76   : > { %13986 = vmatmul.mubr.f32.vlgmr.msra.gmra.mrb[20].mxu0 %v17363_v22 }
 0xc77   : > { %15044 = vmatpush3.bf16.msra.mxu0 %v17262_v5  ;;  %13988 = vmatprep.mubr.f32.mxu0 %v17367_v47 }
 0xc78   : > { %15046 = vmatprep.subr.bf16.mxu0 %v17278_v54 }
 0xc7a   : > { %13989 = vmatmul.mubr.f32.gmra.mrb[22].mxu0 %v17389_v53 }
 0xc7b   : > { %15048 = vmatpush3.bf16.msra.mxu0 %v17278_v54  ;;  %13999 = vmatprep.mubr.f32.mxu0 %v17361_v32 }
 0xc7c   : > { %15098 = vmatprep.subr.bf16.mxu0 %v17262_v5 }
 0xc7e   : > { %14000 = vmatmul.mubr.f32.vlgmr.msra.gmra.mrb[20].mxu0 %v17363_v22 }
 0xc7f   : > { %14002 = vmatprep.mubr.f32.mxu0 %v17367_v47  ;;  %15100 = vmatpush3.bf16.msra.mxu0 %v17262_v5 }
 0xc80   : > { %15102 = vmatprep.subr.bf16.mxu0 %v17278_v54 }
 0xc82   : > { %14003 = vmatmul.mubr.f32.gmra.mrb[22].mxu0 %v17389_v53 }
 0xc83   : > { %15104 = vmatpush3.bf16.msra.mxu0 %v17278_v54 }
 0xc84   : > { %15106 = vmatprep.subr.bf16.mxu0 %v17413_v37 }
 0xc87   : > { %v5832_v49 = vpop.xlane.xlu0 %5831 }
 0xc88   : > { %v5829_v20 = vpop.xlane.xlu1 %5828 }
 0xc89   : > { %16073 = vrcp.f32 %v5829_v20  ;;  %v17548_v20 = vsub.f32 %v8439_v36, %v17532_v12 }
 0xc8a   : > { %16075 = vrcp.f32 %v5832_v49  ;;  %v17556_v49 = vsub.f32 %v8442_v56, %v17540_v59 }
 0xc8b   : > { %19108 = vst [vmem:[#allocation15_spill] sm:$0xff] %v17548_v20 }
 0xc8c   : > { %19110 = vst [vmem:[#allocation17_spill] sm:$0xff] %v17556_v49  ;;  %v5852_v48 = vpop.permute.xlu1 %5851 }
 0xc90   : > { %v17442_v6 = vpop.xlane.xlu0 %5837 }
 0xc91   : > { %16077 = vrcp.f32 %v17442_v6 }
 0xc93   : > { %v16074_v21 = vpop.eup %16073 }
 0xc94   : > { %v5840_v13 = vmul.f32 %v16074_v21, %v17298_v57  ;;  %v17453_v4 = vpop.permute.xlu0 %5849  ;;  %v16076_v25 = vpop.eup %16075 }
 0xc95   : > { %v5875_v14 = vand.u32 4294901760, %v17453_v4  ;;  %v5842_v21 = vmul.f32 %v16076_v25, %v17296_v51  ;;  %v17572_v51 = vand.u32 4294901760, %v17556_v49 }
 0xc96   : > { %v5860_v41 = vsel %vm537_vm0, %v5840_v13, 0  ;;  %v8516_v13 = vsub.f32 %v17530_v17, %v17545_v42 }
 0xc97   : > { %v17466_v57 = vpack.c.bf16 %v5875_v14, %v5872_v16  ;;  %v17468_v63 = vand.u32 4294901760, %v5860_v41  ;;  %19112 = vst [vmem:[#allocation19_spill] sm:$0xff] %v17572_v51  ;;  %v5863_v6 = vsel %vm537_vm0, %v5842_v21, 0  ;;  %v17584_v30 = vsub.f32 %v17453_v4, %v5875_v14 }
 0xc98   : > { %v17592_v40 = vand.u32 4294901760, %v5863_v6  ;;  %v8546_v33 = vsub.f32 %v17556_v49, %v17572_v51  ;;  %v5878_v14 = vand.u32 4294901760, %v5852_v48  ;;  %v19015_v16 = vand.u32 4294901760, %v17590_v8 }
 0xc99   : > { %14906 = vmatprep.subr.bf16.mxu1 %v17466_v57  ;;  %v17473_v43 = vsub.f32 %v5860_v41, %v17468_v63  ;;  %v17565_v41 = vand.u32 4294901760, %v17548_v20  ;;  %v19014_v56 = vand.u32 4294901760, %v17584_v30 }
 0xc9a   : > { %14908 = vmatpush3.bf16.msra.mxu1 %v17466_v57  ;;  %v17607_v25 = vsub.f32 %v5863_v6, %v17592_v40  ;;  %v17610_v21 = vand.u32 4294901760, %v8546_v33  ;;  %v5984_v6 = vsub.f32 %v17590_v8, %v19015_v16 }
 0xc9b   : > { %v19013_v44 = vand.u32 4294901760, %v17473_v43  ;;  %19111 = vst [vmem:[#allocation18_spill] sm:$0xff] %v17565_v41  ;;  %v8536_v58 = vsub.f32 %v17548_v20, %v17565_v41  ;;  %v16078_v24 = vpop.eup %16077 }
 0xc9c   : > { %19116 = vst [vmem:[#allocation23_spill] sm:$0xff] %v17610_v21  ;;  %v5985_v33 = vand.u32 4294901760, %v5984_v6 }
 0xc9d   : > { %v5943_v18 = vsub.f32 %v17473_v43, %v19013_v44  ;;  %v17601_v4 = vand.u32 4294901760, %v8536_v58  ;;  %v5846_v58 = vmul.f32 %v16078_v24, %v17304_v2  ;;  %v5991_v44 = vsub.f32 %v17584_v30, %v19014_v56 }
 0xc9f   : > { %v5944_v19 = vand.u32 4294901760, %v5943_v18  ;;  %v8526_v18 = vsub.f32 %v17538_v39, %v17553_v9  ;;  %19115 = vst [vmem:[#allocation22_spill] sm:$0xff] %v17601_v4  ;;  %v5992_v24 = vand.u32 4294901760, %v5991_v44 }
 0xca1   : > { %13761 = vmatprep.mubr.f32.mxu1 %v5944_v19  ;;  %v17577_v19 = vand.u32 4294901760, %v8516_v13  ;;  %v17595_v36 = vand.u32 4294901760, %v8526_v18  ;;  %v17614_v18 = vsub.f32 %v5852_v48, %v5878_v14 }
 0xca3   : > { %19113 = vst [vmem:[#allocation20_spill] sm:$0xff] %v17577_v19  ;;  %19114 = vst [vmem:[#allocation21_spill] sm:$0xff] %v17595_v36  ;;  %14097 = vmatprep.mubr.f32.mxu0 %v17577_v19  ;;  %v19019_v2 = vand.u32 4294901760, %v17614_v18 }
 0xca4   : > { %14098 = vmatmul.mubr.f32.vlgmr.msra.gmra.mrb[24].mxu0 %v17595_v36 }
 0xca5   : > { %15108 = vmatpush3.bf16.msra.mxu0 %v17413_v37  ;;  %14100 = vmatprep.mubr.f32.mxu0 %v17601_v4  ;;  %v5998_v44 = vsub.f32 %v17614_v18, %v19019_v2 }
 0xca6   : > { %15110 = vmatprep.subr.bf16.mxu0 %v17429_v1 }
 0xca8   : > { %14101 = vmatmul.mubr.f32.gmra.mrb[26].mxu0 %v17610_v21  ;;  %v19117_v21 = vand.u32 4294901760, %v17607_v25 }
 0xca9   : > { %15112 = vmatpush3.bf16.msra.mxu0 %v17429_v1  ;;  %14111 = vmatprep.mubr.f32.mxu0 %v17516_v27 }
 0xcaa   : > { %15114 = vmatprep.subr.bf16.mxu0 %v17440_v3  ;;  %v5953_v4 = vsub.f32 %v17607_v25, %v19117_v21 }
 0xcac   : > { %14112 = vmatmul.mubr.f32.vlgmr.msra.gmra.mrb[24].mxu0 %v17525_v62  ;;  %v5954_v6 = vand.u32 4294901760, %v5953_v4 }
 0xcad   : > { %15116 = vmatpush3.bf16.msra.mxu0 %v17440_v3  ;;  %14114 = vmatprep.mubr.f32.mxu0 %v17532_v12 }
 0xcae   : > { %15118 = vmatprep.subr.bf16.mxu0 %v17450_v61 }
 0xcb0   : > { %14115 = vmatmul.mubr.f32.gmra.mrb[26].mxu0 %v17540_v59 }
 0xcb1   : > { %15120 = vmatpush3.bf16.msra.mxu0 %v17450_v61  ;;  %14125 = vmatprep.mubr.f32.mxu0 %v17530_v17  ;;  %v14921_v61 = vpack.c.bf16 %v17584_v30, %v17590_v8 }
 0xcb2   : > { %15122 = vmatprep.subr.bf16.mxu0 %v17262_v5 }
 0xcb4   : > { %14126 = vmatmul.mubr.f32.vlgmr.msra.gmra.mrb[24].mxu0 %v17538_v39 }
 0xcb5   : > { %15124 = vmatpush3.bf16.msra.mxu0 %v17262_v5  ;;  %14128 = vmatprep.mubr.f32.mxu0 %v17548_v20 }
 0xcb6   : > { %15126 = vmatprep.subr.bf16.mxu0 %v17278_v54 }
 0xcb8   : > { %14129 = vmatmul.mubr.f32.gmra.mrb[26].mxu0 %v17556_v49 }
 0xcb9   : > { %15128 = vmatpush3.bf16.msra.mxu0 %v17278_v54  ;;  %14139 = vmatprep.mubr.f32.mxu0 %v17545_v42 }
 0xcba   : > { %15130 = vmatprep.subr.bf16.mxu0 %v17491_v10 }
 0xcbc   : > { %14140 = vmatmul.mubr.f32.vlgmr.msra.gmra.mrb[24].mxu0 %v17553_v9 }
 0xcbd   : > { %v5835_v13 = vpop.xlane.xlu1 %5834  ;;  %15132 = vmatpush3.bf16.msra.mxu0 %v17491_v10  ;;  %14142 = vmatprep.mubr.f32.mxu0 %v17565_v41 }
 0xcbe   : > { %16079 = vrcp.f32 %v5835_v13  ;;  %v5869_v13 = vsel %vm537_vm0, %v5846_v58, 0  ;;  %v14913_v58 = vpack.c.bf16 %v5992_v24, %v5985_v33  ;;  %v5999_v33 = vand.u32 4294901760, %v5998_v44  ;;  %15134 = vmatprep.subr.bf16.mxu0 %v17504_v11 }
 0xcbf   : > { %v17639_v1 = vand.u32 4294901760, %v5869_v13 }
 0xcc0   : > { %14143 = vmatmul.mubr.f32.gmra.mrb[26].mxu0 %v17572_v51 }
 0xcc1   : > { %v5854_v37 = vpop.permute.xlu1 %5853  ;;  %15136 = vmatpush3.bf16.msra.mxu0 %v17504_v11  ;;  %14153 = vmatprep.mubr.f32.mxu0 %v17516_v27  ;;  %v19119_v11 = vand.u32 4294901760, %v17584_v30 }
 0xcc2   : > { %v5881_v48 = vand.u32 4294901760, %v5854_v37  ;;  %15138 = vmatprep.subr.bf16.mxu0 %v17262_v5 }
 0xcc4   : > { %v17631_v56 = vpack.c.bf16 %v5881_v48, %v5878_v14  ;;  %v17633_v16 = vsub.f32 %v5854_v37, %v5881_v48  ;;  %v17656_v48 = vsub.f32 %v5869_v13, %v17639_v1  ;;  %14154 = vmatmul.mubr.f32.vlgmr.msra.gmra.mrb[24].mxu0 %v17525_v62 }
 0xcc5   : > { %15140 = vmatpush3.bf16.msra.mxu0 %v17262_v5  ;;  %14156 = vmatprep.mubr.f32.mxu0 %v17532_v12  ;;  %v19118_v5 = vand.u32 4294901760, %v17590_v8 }
 0xcc6   : > { %v19018_v14 = vand.u32 4294901760, %v17633_v16  ;;  %14910 = vmatprep.subr.bf16.mxu1 %v17631_v56  ;;  %v14925_v10 = vpack.c.bf16 %v17633_v16, %v17614_v18  ;;  %15142 = vmatprep.subr.bf16.mxu0 %v17278_v54 }
 0xcc7   : > { %14912 = vmatpush3.bf16.msra.mxu1 %v17631_v56 }
 0xcc8   : > { %v16080_v21 = vpop.eup %16079  ;;  %v6005_v3 = vsub.f32 %v17633_v16, %v19018_v14  ;;  %14914 = vmatprep.subr.bf16.mxu1 %v14913_v58  ;;  %14157 = vmatmul.mubr.f32.gmra.mrb[26].mxu0 %v17540_v59 }
 0xcc9   : > { %v5844_v37 = vmul.f32 %v16080_v21, %v17316_v29  ;;  %v5972_v29 = vand.u32 4294901760, %v17656_v48  ;;  %15144 = vmatpush3.bf16.msra.mxu0 %v17278_v54  ;;  %14167 = vmatprep.mubr.f32.mxu0 %v17516_v27  ;;  %v14937_v54 = vpack.c.bf16 %v19119_v11, %v19118_v5 }
 0xcca   : > { %13762 = vmatmul.mubr.f32.vlgmr.msra.gmra.mrb[20].mxu1 %v5954_v6  ;;  %v6006_v24 = vand.u32 4294901760, %v6005_v3  ;;  %v19120_v6 = vand.u32 4294901760, %v17473_v43 }
 0xccb   : > { %14916 = vmatpush3.bf16.msra.mxu1 %v14913_v58  ;;  %v5866_v14 = vsel %vm537_vm0, %v5844_v37, 0  ;;  %v5973_v58 = vsub.f32 %v17656_v48, %v5972_v29  ;;  %v19121_v37 = vand.u32 4294901760, %v17607_v25 }
 0xccc   : > { %v14917_v4 = vpack.c.bf16 %v6006_v24, %v5999_v33  ;;  %v17662_v2 = vand.u32 4294901760, %v5866_v14  ;;  %14168 = vmatmul.mubr.f32.vlgmr.msra.gmra.mrb[24].mxu0 %v17525_v62  ;;  %v19122_v33 = vand.u32 4294901760, %v17614_v18  ;;  %v6549_v18 = vld [vmem:[%s18995_s7 + $0x10] sm:$0xff] }
 0xccd   : > { %14170 = vmatprep.mubr.f32.mxu0 %v17532_v12 }
 0xcce   : > { %14918 = vmatprep.subr.bf16.mxu1 %v14917_v4  ;;  %v5961_v13 = vsub.f32 %v5866_v14, %v17662_v2  ;;  %v5974_v14 = vand.u32 4294901760, %v5973_v58 }
 0xccf   : > { %14920 = vmatpush3.bf16.msra.mxu1 %v14917_v4 }
 0xcd0   : > { %14922 = vmatprep.subr.bf16.mxu1 %v14921_v61  ;;  %v5962_v44 = vand.u32 4294901760, %v5961_v13  ;;  %14171 = vmatmul.mubr.f32.gmra.mrb[26].mxu0 %v17540_v59 }
 0xcd2   : > { %v5963_v21 = vsub.f32 %v5961_v13, %v5962_v44 }
 0xcd4   : > { %v5964_v3 = vand.u32 4294901760, %v5963_v21 }
 0xcd6   : > { %13764 = vmatprep.mubr.f32.mxu1 %v5964_v3 }
 0xcd7   : > { %13765 = vmatmul.mubr.f32.gmra.mrb[22].mxu1 %v5974_v14 }
 0xcd8   : > { %13775 = vmatprep.mubr.f32.mxu1 %v17468_v63 }
 0xcdb   : > { %13776 = vmatmul.mubr.f32.vlgmr.msra.gmra.mrb[20].mxu1 %v17592_v40 }
 0xcdc   : > { %14924 = vmatpush3.bf16.msra.mxu1 %v14921_v61  ;;  %13778 = vmatprep.mubr.f32.mxu1 %v17662_v2 }
 0xcdd   : > { %14926 = vmatprep.subr.bf16.mxu1 %v14925_v10 }
 0xcdf   : > { %13779 = vmatmul.mubr.f32.gmra.mrb[22].mxu1 %v17639_v1 }
 0xce0   : > { %14928 = vmatpush3.bf16.msra.mxu1 %v14925_v10  ;;  %13789 = vmatprep.mubr.f32.mxu1 %v17473_v43  ;;  %v6548_v43 = vld [vmem:[%s18995_s7 + $0x8] sm:$0xff] }
 0xce1   : > { %14930 = vmatprep.subr.bf16.mxu1 %v17466_v57  ;;  %v6574_v8 = vand.u32 4294901760, %v6548_v43 }
 0xce3   : > { %13790 = vmatmul.mubr.f32.vlgmr.msra.gmra.mrb[20].mxu1 %v17607_v25 }
 0xce4   : > { %14932 = vmatpush3.bf16.msra.mxu1 %v17466_v57  ;;  %13792 = vmatprep.mubr.f32.mxu1 %v5961_v13 }
 0xce5   : > { %14934 = vmatprep.subr.bf16.mxu1 %v17631_v56 }
 0xce7   : > { %13793 = vmatmul.mubr.f32.gmra.mrb[22].mxu1 %v17656_v48  ;;  %v19123_v48 = vand.u32 4294901760, %v17633_v16 }
 0xce8   : > { %14936 = vmatpush3.bf16.msra.mxu1 %v17631_v56  ;;  %13803 = vmatprep.mubr.f32.mxu1 %v19120_v6 }
 0xce9   : > { %14938 = vmatprep.subr.bf16.mxu1 %v14937_v54  ;;  %v14941_v24 = vpack.c.bf16 %v19123_v48, %v19122_v33 }
 0xceb   : > { %13804 = vmatmul.mubr.f32.vlgmr.msra.gmra.mrb[20].mxu1 %v19121_v37 }
 0xcec   : > { %14940 = vmatpush3.bf16.msra.mxu1 %v14937_v54  ;;  %13806 = vmatprep.mubr.f32.mxu1 %v5962_v44 }
 0xced   : > { %14942 = vmatprep.subr.bf16.mxu1 %v14941_v24 }
 0xcef   : > { %13807 = vmatmul.mubr.f32.gmra.mrb[22].mxu1 %v5972_v29  ;;  %v6577_v29 = vand.u32 4294901760, %v6549_v18 }
 0xcf0   : > { %14944 = vmatpush3.bf16.msra.mxu1 %v14941_v24  ;;  %13817 = vmatprep.mubr.f32.mxu1 %v17468_v63 }
 0xcf1   : > { %14946 = vmatprep.subr.bf16.mxu1 %v17466_v57  ;;  %v6695_v10 = vsub.f32 %v6549_v18, %v6577_v29 }
 0xcf3   : > { %13818 = vmatmul.mubr.f32.vlgmr.msra.gmra.mrb[20].mxu1 %v17592_v40 }
 0xcf4   : > { %14948 = vmatpush3.bf16.msra.mxu1 %v17466_v57  ;;  %13820 = vmatprep.mubr.f32.mxu1 %v17662_v2  ;;  %v6547_v57 = vld [vmem:[%s18995_s7] sm:$0xff] }
 0xcf5   : > { %14950 = vmatprep.subr.bf16.mxu1 %v17631_v56  ;;  %v6571_v30 = vand.u32 4294901760, %v6547_v57 }
 0xcf7   : > { %13821 = vmatmul.mubr.f32.gmra.mrb[22].mxu1 %v17639_v1 }
 0xcf8   : > { %14952 = vmatpush3.bf16.msra.mxu1 %v17631_v56  ;;  %13831 = vmatprep.mubr.f32.mxu1 %v17468_v63  ;;  %v17740_v56 = vpack.c.bf16 %v6574_v8, %v6571_v30  ;;  %v17742_v63 = vsub.f32 %v6547_v57, %v6571_v30 }
 0xcfa   : > { %14954 = vmatprep.subr.bf16.mxu1 %v17740_v56  ;;  %v6682_v13 = vand.u32 4294901760, %v17742_v63 }
 0xcfb   : > { %13832 = vmatmul.mubr.f32.vlgmr.msra.gmra.mrb[20].mxu1 %v17592_v40  ;;  %v17744_v40 = vsub.f32 %v6548_v43, %v6574_v8  ;;  %v6696_v8 = vand.u32 4294901760, %v6695_v10 }
 0xcfc   : > { %13834 = vmatprep.mubr.f32.mxu1 %v17662_v2  ;;  %v6550_v2 = vld [vmem:[%s18995_s7 + $0x18] sm:$0xff]  ;;  %14956 = vmatpush3.bf16.msra.mxu1 %v17740_v56  ;;  %v6683_v11 = vsub.f32 %v17742_v63, %v6682_v13 }
 0xcfd   : > { %v6580_v61 = vand.u32 4294901760, %v6550_v2  ;;  %v6689_v44 = vand.u32 4294901760, %v17744_v40  ;;  %v6697_v9 = vsub.f32 %v6695_v10, %v6696_v8 }
 0xcfe   : > { %v6684_v43 = vand.u32 4294901760, %v6683_v11 }
 0xcff   : > { %13835 = vmatmul.mubr.f32.gmra.mrb[22].mxu1 %v17639_v1  ;;  %v17764_v14 = vpack.c.bf16 %v6580_v61, %v6577_v29  ;;  %v6690_v54 = vsub.f32 %v17744_v40, %v6689_v44  ;;  %v6702_v6 = vsub.f32 %v6550_v2, %v6580_v61 }
 0xd01   : > { %14958 = vmatprep.subr.bf16.mxu1 %v17764_v14  ;;  %v6691_v30 = vand.u32 4294901760, %v6690_v54 }
 0xd02   : > { %14960 = vmatpush3.bf16.msra.mxu1 %v17764_v14 }
 0xd03   : > { %v17780_v41 = vpack.c.bf16 %v6691_v30, %v6684_v43 }
 0xd05   : > { %14962 = vmatprep.subr.bf16.mxu1 %v17780_v41 }
 0xd51   : > { %v17738_v16 = vpop.f32.mrb[20].mxu0 }
 0xd52   : > { %19124 = vst [vmem:[#allocation24_spill] sm:$0xff] %v17738_v16  ;;  %v17746_v25 = vpop.f32.mrb[21].mxu0  ;;  %v7822_v1 = vand.u32 4294901760, %v17738_v16 }
 0xd53   : > { %v7819_v4 = vand.u32 4294901760, %v17746_v25 }
 0xd54   : > { %v7936_v58 = vsub.f32 %v17738_v16, %v7822_v1  ;;  %v6703_v16 = vand.u32 4294901760, %v6702_v6 }
 0xd55   : > { %v7929_v21 = vsub.f32 %v17746_v25, %v7819_v4  ;;  %v17762_v3 = vpop.f32.mrb[22].mxu0  ;;  %v17770_v33 = vpack.c.bf16 %v7822_v1, %v7819_v4 }
 0xd56   : > { %19125 = vst [vmem:[#allocation25_spill] sm:$0xff] %v17762_v3  ;;  %v17766_v5 = vpop.f32.mrb[23].mxu0  ;;  %v7937_v37 = vand.u32 4294901760, %v7936_v58  ;;  %v7828_v24 = vand.u32 4294901760, %v17762_v3  ;;  %v6704_v54 = vsub.f32 %v6702_v6, %v6703_v16 }
 0xd57   : > { %19126 = vst [vmem:[#allocation26_spill] sm:$0xff] %v17766_v5  ;;  %v7930_v48 = vand.u32 4294901760, %v7929_v21  ;;  %v7825_v57 = vand.u32 4294901760, %v17766_v5  ;;  %v17783_v39 = vpack.c.bf16 %v7936_v58, %v7929_v21 }
 0xd58   : > { %v7950_v29 = vsub.f32 %v17762_v3, %v7828_v24  ;;  %v7938_v61 = vsub.f32 %v7936_v58, %v7937_v37  ;;  %v6698_v3 = vand.u32 4294901760, %v6697_v9  ;;  %v6705_v17 = vand.u32 4294901760, %v6704_v54 }
 0xd59   : > { %v7931_v2 = vsub.f32 %v7929_v21, %v7930_v48  ;;  %v17777_v4 = vpack.c.bf16 %v7828_v24, %v7825_v57  ;;  %v7943_v51 = vsub.f32 %v17766_v5, %v7825_v57  ;;  %v17797_v9 = vpack.c.bf16 %v17744_v40, %v17742_v63 }
 0xd5a   : > { %v7951_v11 = vand.u32 4294901760, %v7950_v29  ;;  %v7939_v49 = vand.u32 4294901760, %v7938_v61 }
 0xd5b   : > { %v7932_v42 = vand.u32 4294901760, %v7931_v2  ;;  %v7944_v20 = vand.u32 4294901760, %v7943_v51  ;;  %v17789_v43 = vpack.c.bf16 %v7950_v29, %v7943_v51  ;;  %v17791_v2 = vpack.c.bf16 %v6705_v17, %v6698_v3 }
 0xd5c   : > { %v7952_v57 = vsub.f32 %v7950_v29, %v7951_v11  ;;  %v17807_v17 = vpack.c.bf16 %v6703_v16, %v6696_v8 }
 0xd5d   : > { %v17787_v59 = vpack.c.bf16 %v7939_v49, %v7932_v42  ;;  %v17793_v5 = vpack.c.bf16 %v7951_v11, %v7944_v20  ;;  %v17803_v42 = vpack.c.bf16 %v6702_v6, %v6695_v10  ;;  %v17805_v49 = vpack.c.bf16 %v6689_v44, %v6682_v13 }
 0xd5e   : > { %v7953_v61 = vand.u32 4294901760, %v7952_v57 }
 0xdce   : > { %v13833_v18 = vpop.f32.mrb[20].mxu1 }
 0xdcf   : > { %6523 = vrot.lane.b32.xlu1 %v13833_v18, %s16202_s25  ;;  %v6463_v1 = vpop.f32.mrb[21].mxu1  ;;  %v17785_v18 = vpack.c.bf16 %v7937_v37, %v7930_v48 }
 0xdd0   : > { %6521 = vrot.lane.b32.xlu0 %v6463_v1, %s16202_s25  ;;  %v7945_v1 = vsub.f32 %v7943_v51, %v7944_v20  ;;  %v17809_v51 = vpop.f32.mrb[24].mxu0 }
 0xdd1   : > { %19127 = vst [vmem:[#allocation27_spill] sm:$0xff] %v17809_v51  ;;  %v9062_v20 = vand.u32 4294901760, %v17809_v51  ;;  %v9036_v3 = vpop.f32.mrb[25].mxu0 }
 0xdd2   : > { %v13836_v24 = vpop.f32.mrb[22].mxu1  ;;  %v7946_v58 = vand.u32 4294901760, %v7945_v1  ;;  %v9059_v63 = vand.u32 4294901760, %v9036_v3  ;;  %v17814_v37 = vpop.f32.mrb[26].mxu0 }
 0xdd3   : > { %6527 = vrot.lane.b32.xlu1 %v13836_v24, %s16202_s25  ;;  %v6475_v30 = vpop.f32.mrb[23].mxu1  ;;  %v9176_v40 = vsub.f32 %v17809_v51, %v9062_v20  ;;  %19129 = vst [vmem:[#allocation28_spill] sm:$0xff] %v17814_v37  ;;  %v9068_v13 = vand.u32 4294901760, %v17814_v37  ;;  %v17819_v44 = vpop.f32.mrb[27].mxu0 }
 0xdd4   : > { %6525 = vrot.lane.b32.xlu0 %v6475_v30, %s16202_s25  ;;  %v17799_v21 = vpack.c.bf16 %v7953_v61, %v7946_v58  ;;  %v17816_v48 = vpack.c.bf16 %v9062_v20, %v9059_v63  ;;  %19131 = vst [vmem:[#allocation30_spill] sm:$0xff] %v17819_v44  ;;  %v9065_v10 = vand.u32 4294901760, %v17819_v44  ;;  %v6492_v30 = vpop.permute.xlu1 %6491  ;;  %v6490_v61 = vpop.permute.xlu0 %6489  ;;  %s19156_s25 = smov 32  }
 0xdd5   : > { %v9177_v16 = vand.u32 4294901760, %v9176_v40  ;;  %v9190_v8 = vsub.f32 %v17814_v37, %v9068_v13 }
 0xdd6   : > { %19130 = vst [vmem:[#allocation29_spill] sm:$0xff] %v17816_v48  ;;  %v17823_v29 = vpack.c.bf16 %v9068_v13, %v9065_v10  ;;  %v9183_v11 = vsub.f32 %v17819_v44, %v9065_v10 }
 0xdd7   : > { %v9191_v54 = vand.u32 4294901760, %v9190_v8  ;;  %v9178_v57 = vsub.f32 %v9176_v40, %v9177_v16 }
 0xdd8   : > { %9676 = vrot.lane.b32.xlu0 %v17746_v25, %s19047_s20  ;;  %v9169_v25 = vsub.f32 %v9036_v3, %v9059_v63  ;;  %19132 = vst [vmem:[#allocation31_spill] sm:$0xff] %v17823_v29  ;;  %v9184_v1 = vand.u32 4294901760, %v9183_v11  ;;  %v6508_v27 = vpop.permute.xlu1 %6507  ;;  %v6506_v37 = vpop.permute.xlu0 %6505  ;;  %v17832_v19 = vpack.c.bf16 %v9190_v8, %v9183_v11 }
 0xdd9   : > { %v9179_v20 = vand.u32 4294901760, %v9178_v57  ;;  %v9192_v51 = vsub.f32 %v9190_v8, %v9191_v54 }
 0xdda   : > { %v9170_v6 = vand.u32 4294901760, %v9169_v25  ;;  %v9185_v63 = vsub.f32 %v9183_v11, %v9184_v1  ;;  %v17830_v36 = vpack.c.bf16 %v9176_v40, %v9169_v25 }
 0xddb   : > { %v9193_v62 = vand.u32 4294901760, %v9192_v51  ;;  %v6533_v51 = vsel %vm1184_vm1, %v16828_v28, %v6490_v61 }
 0xddc   : > { %9708 = vrot.lane.b32.xlu0 %v9036_v3, %s19128_s24  ;;  %v9171_v24 = vsub.f32 %v9169_v25, %v9170_v6  ;;  %v9186_v12 = vand.u32 4294901760, %v9185_v63  ;;  %v6496_v10 = vpop.permute.xlu1 %6495  ;;  %v6494_v44 = vpop.permute.xlu0 %6493 }
 0xdde   : > { %v9172_v58 = vand.u32 4294901760, %v9171_v24  ;;  %v17828_v13 = vpack.c.bf16 %v9193_v62, %v9186_v12  ;;  %v6534_v24 = vsel %vm1184_vm1, %v16826_v55, %v6492_v30  ;;  %v6538_v12 = vsel %vm6537_vm2, %v6533_v51, %v6506_v37 }
 0xddf   : > { %v6539_v57 = vsel %vm6537_vm2, %v6534_v24, %v6508_v27  ;;  %v6536_v55 = vsel %vm1184_vm1, %v16830_v46, %v6496_v10  ;;  %v6535_v27 = vsel %vm1184_vm1, %v16832_v52, %v6494_v44 }
 0xde0   : > { %v17826_v3 = vpack.c.bf16 %v9179_v20, %v9172_v58  ;;  %v6512_v29 = vpop.permute.xlu1 %6511  ;;  %v6510_v48 = vpop.permute.xlu0 %6509  ;;  %v17843_v58 = vpack.c.bf16 %v9177_v16, %v9170_v6 }
 0xde1   : > { %v6541_v37 = vsel %vm6537_vm2, %v6536_v55, %v6512_v29  ;;  %v6540_v63 = vsel %vm6537_vm2, %v6535_v27, %v6510_v48 }
 0xe41   : > { %v6524_v62 = vpop.permute.xlu1 %6523 }
 0xe42   : > { %v6544_v40 = vsel %vm6542_vm3, %v6539_v57, %v6524_v62  ;;  %v6522_v25 = vpop.permute.xlu0 %6521  ;;  %v17861_v57 = vpack.c.bf16 %v9191_v54, %v9184_v1 }
 0xe43   : > { %v6562_v8 = vsel %vm537_vm0, %v6544_v40, 0  ;;  %v6543_v11 = vsel %vm6542_vm3, %v6538_v12, %v6522_v25 }
 0xe44   : > { %v17847_v30 = vand.u32 4294901760, %v6562_v8  ;;  %v6559_v28 = vsel %vm537_vm0, %v6543_v11, 0 }
 0xe45   : > { %v17853_v61 = vand.u32 4294901760, %v6559_v28  ;;  %v6528_v20 = vpop.permute.xlu1 %6527 }
 0xe46   : > { %v6650_v16 = vsub.f32 %v6562_v8, %v17847_v30  ;;  %v6546_v6 = vsel %vm6542_vm3, %v6541_v37, %v6528_v20  ;;  %v6526_v24 = vpop.permute.xlu0 %6525 }
 0xe47   : > { %v6640_v46 = vsub.f32 %v6559_v28, %v17853_v61  ;;  %v6568_v10 = vsel %vm537_vm0, %v6546_v6, 0  ;;  %v6545_v51 = vsel %vm6542_vm3, %v6540_v63, %v6526_v24  ;;  %v9744_v63 = vld [vmem:[%s18997_s9 + $0x50] sm:$0xff] }
 0xe48   : > { %v6651_v52 = vand.u32 4294901760, %v6650_v16  ;;  %v6669_v44 = vand.u32 4294901760, %v6568_v10  ;;  %v6565_v29 = vsel %vm537_vm0, %v6545_v51, 0 }
 0xe49   : > { %v6659_v62 = vand.u32 4294901760, %v6565_v29  ;;  %v6641_v12 = vand.u32 4294901760, %v6640_v46 }
 0xe4a   : > { %v6652_v48 = vsub.f32 %v6650_v16, %v6651_v52  ;;  %v6670_v40 = vsub.f32 %v6568_v10, %v6669_v44  ;;  %v9746_v10 = vld [vmem:[%s18997_s9 + $0x60] sm:$0xff] }
 0xe4b   : > { %v6660_v25 = vsub.f32 %v6565_v29, %v6659_v62  ;;  %v6642_v8 = vsub.f32 %v6640_v46, %v6641_v12 }
 0xe4c   : > { %v6671_v11 = vand.u32 4294901760, %v6670_v40  ;;  %v6653_v28 = vand.u32 4294901760, %v6652_v48  ;;  %v9747_v48 = vld [vmem:[%s18997_s9 + $0x68] sm:$0xff] }
 0xe4d   : > { %v6643_v55 = vand.u32 4294901760, %v6642_v8  ;;  %v6661_v27 = vand.u32 4294901760, %v6660_v25 }
 0xe4e   : > { %v6672_v37 = vsub.f32 %v6670_v40, %v6671_v11 }
 0xe4f   : > { %13845 = vmatprep.mubr.f32.mxu1 %v6643_v55  ;;  %v6662_v20 = vsub.f32 %v6660_v25, %v6661_v27 }
 0xe50   : > { %13846 = vmatmul.mubr.f32.vlgmr.msra.gmra.mrb[24].mxu1 %v6653_v28  ;;  %v6673_v1 = vand.u32 4294901760, %v6672_v37 }
 0xe51   : > { %14964 = vmatpush3.bf16.msra.mxu1 %v17780_v41  ;;  %v6663_v54 = vand.u32 4294901760, %v6662_v20  ;;  %v9734_v41 = vld [vmem:[%s18997_s9] sm:$0xff]  ;;  %v9813_v20 = vand.u32 4294901760, %v9747_v48 }
 0xe52   : > { %14966 = vmatprep.subr.bf16.mxu1 %v17791_v2 }
 0xe53   : > { %13848 = vmatprep.mubr.f32.mxu1 %v6663_v54 }
 0xe54   : > { %13849 = vmatmul.mubr.f32.gmra.mrb[26].mxu1 %v6673_v1  ;;  %v18064_v1 = vsub.f32 %v9747_v48, %v9813_v20 }
 0xe55   : > { %14968 = vmatpush3.bf16.msra.mxu1 %v17791_v2  ;;  %13859 = vmatprep.mubr.f32.mxu1 %v17853_v61 }
 0xe56   : > { %14970 = vmatprep.subr.bf16.mxu1 %v17797_v9 }
 0xe58   : > { %13860 = vmatmul.mubr.f32.vlgmr.msra.gmra.mrb[24].mxu1 %v17847_v30 }
 0xe59   : > { %14972 = vmatpush3.bf16.msra.mxu1 %v17797_v9  ;;  %13862 = vmatprep.mubr.f32.mxu1 %v6659_v62 }
 0xe5a   : > { %14974 = vmatprep.subr.bf16.mxu1 %v17803_v42 }
 0xe5c   : > { %13863 = vmatmul.mubr.f32.gmra.mrb[26].mxu1 %v6669_v44 }
 0xe5d   : > { %14976 = vmatpush3.bf16.msra.mxu1 %v17803_v42  ;;  %13873 = vmatprep.mubr.f32.mxu1 %v6640_v46  ;;  %v9740_v42 = vld [vmem:[%s18997_s9 + $0x30] sm:$0xff] }
 0xe5e   : > { %14978 = vmatprep.subr.bf16.mxu1 %v17740_v56 }
 0xe60   : > { %13874 = vmatmul.mubr.f32.vlgmr.msra.gmra.mrb[24].mxu1 %v6650_v16  ;;  %v9745_v16 = vld [vmem:[%s18997_s9 + $0x58] sm:$0xff] }
 0xe61   : > { %14980 = vmatpush3.bf16.msra.mxu1 %v17740_v56  ;;  %13876 = vmatprep.mubr.f32.mxu1 %v6660_v25 }
 0xe62   : > { %14982 = vmatprep.subr.bf16.mxu1 %v17764_v14 }
 0xe64   : > { %13877 = vmatmul.mubr.f32.gmra.mrb[26].mxu1 %v6670_v40 }
 0xe65   : > { %14984 = vmatpush3.bf16.msra.mxu1 %v17764_v14  ;;  %13887 = vmatprep.mubr.f32.mxu1 %v6641_v12  ;;  %v9807_v12 = vand.u32 4294901760, %v9745_v16 }
 0xe66   : > { %14986 = vmatprep.subr.bf16.mxu1 %v17805_v49 }
 0xe67   : > { %v18059_v37 = vsub.f32 %v9745_v16, %v9807_v12 }
 0xe68   : > { %13888 = vmatmul.mubr.f32.vlgmr.msra.gmra.mrb[24].mxu1 %v6651_v52 }
 0xe69   : > { %14988 = vmatpush3.bf16.msra.mxu1 %v17805_v49  ;;  %13890 = vmatprep.mubr.f32.mxu1 %v6661_v27  ;;  %v9741_v49 = vld [vmem:[%s18997_s9 + $0x38] sm:$0xff] }
 0xe6a   : > { %14990 = vmatprep.subr.bf16.mxu1 %v17807_v17  ;;  %v9795_v52 = vand.u32 4294901760, %v9741_v49 }
 0xe6c   : > { %13891 = vmatmul.mubr.f32.gmra.mrb[26].mxu1 %v6671_v11  ;;  %v18048_v25 = vsub.f32 %v9741_v49, %v9795_v52  ;;  %v9810_v11 = vand.u32 4294901760, %v9746_v10 }
 0xe6d   : > { %14992 = vmatpush3.bf16.msra.mxu1 %v17807_v17  ;;  %13901 = vmatprep.mubr.f32.mxu1 %v17853_v61  ;;  %v9742_v17 = vld [vmem:[%s18997_s9 + $0x40] sm:$0xff] }
 0xe6e   : > { %14994 = vmatprep.subr.bf16.mxu1 %v17740_v56  ;;  %v18061_v54 = vsub.f32 %v9746_v10, %v9810_v11 }
 0xe70   : > { %13902 = vmatmul.mubr.f32.vlgmr.msra.gmra.mrb[24].mxu1 %v17847_v30 }
 0xe71   : > { %14996 = vmatpush3.bf16.msra.mxu1 %v17740_v56  ;;  %13904 = vmatprep.mubr.f32.mxu1 %v6659_v62  ;;  %v19070_v56 = vmov 0.0|0.0  }
 0xe72   : > { %14998 = vmatprep.subr.bf16.mxu1 %v17764_v14  ;;  %15193 = vmatprep.subr.bf16.mxu0 %v19070_v56 }
 0xe74   : > { %13905 = vmatmul.mubr.f32.gmra.mrb[26].mxu1 %v6669_v44 }
 0xe75   : > { %15000 = vmatpush3.bf16.msra.mxu1 %v17764_v14  ;;  %13915 = vmatprep.mubr.f32.mxu1 %v17853_v61  ;;  %v9774_v14 = vand.u32 4294901760, %v9734_v41  ;;  %v9743_v61 = vld [vmem:[%s18997_s9 + $0x48] sm:$0xff] }
 0xe76   : > { %15050 = vmatprep.subr.bf16.mxu1 %v17770_v33  ;;  %v9801_v29 = vand.u32 4294901760, %v9743_v61 }
 0xe78   : > { %13916 = vmatmul.mubr.f32.vlgmr.msra.gmra.mrb[24].mxu1 %v17847_v30  ;;  %v18052_v55 = vsub.f32 %v9743_v61, %v9801_v29 }
 0xe79   : > { %15052 = vmatpush3.bf16.msra.mxu1 %v17770_v33  ;;  %13918 = vmatprep.mubr.f32.mxu1 %v6659_v62  ;;  %v9804_v62 = vand.u32 4294901760, %v9744_v63 }
 0xe7a   : > { %15054 = vmatprep.subr.bf16.mxu1 %v17777_v4 }
 0xe7b   : > { %v18054_v27 = vsub.f32 %v9744_v63, %v9804_v62 }
 0xe7c   : > { %13919 = vmatmul.mubr.f32.gmra.mrb[26].mxu1 %v6669_v44  ;;  %v9798_v44 = vand.u32 4294901760, %v9742_v17 }
 0xe7d   : > { %15056 = vmatpush3.bf16.msra.mxu1 %v17777_v4  ;;  %14013 = vmatprep.mubr.f32.mxu1 %v17420_v0  ;;  %v19145_v0 = vld [vmem:[#allocation15_spill] sm:$0xff] }
 0xe7e   : > { %15058 = vmatprep.subr.bf16.mxu1 %v17787_v59  ;;  %v18050_v8 = vsub.f32 %v9742_v17, %v9798_v44 }
 0xe80   : > { %14014 = vmatmul.mubr.f32.vlgmr.msra.gmra.mrb[28].mxu1 %v17422_v38  ;;  %v19146_v38 = vld [vmem:[#allocation17_spill] sm:$0xff] }
 0xe81   : > { %15060 = vmatpush3.bf16.msra.mxu1 %v17787_v59  ;;  %14016 = vmatprep.mubr.f32.mxu1 %v17425_v34  ;;  %v19147_v34 = vld [vmem:[#allocation14_spill] sm:$0xff]  ;;  %v19150_v59 = vld [vmem:[#allocation19_spill] sm:$0xff] }
 0xe82   : > { %15062 = vmatprep.subr.bf16.mxu1 %v17799_v21 }
 0xe84   : > { %14017 = vmatmul.mubr.f32.gmra.mrb[30].mxu1 %v17433_v7  ;;  %v19148_v7 = vld [vmem:[#allocation16_spill] sm:$0xff] }
 0xe85   : > { %15064 = vmatpush3.bf16.msra.mxu1 %v17799_v21  ;;  %14027 = vmatprep.mubr.f32.mxu1 %v17361_v32 }
 0xe86   : > { %15066 = vmatprep.subr.bf16.mxu1 %v17783_v39 }
 0xe88   : > { %14028 = vmatmul.mubr.f32.vlgmr.msra.gmra.mrb[28].mxu1 %v17363_v22 }
 0xe89   : > { %15068 = vmatpush3.bf16.msra.mxu1 %v17783_v39  ;;  %14030 = vmatprep.mubr.f32.mxu1 %v17367_v47  ;;  %v19149_v39 = vld [vmem:[#allocation18_spill] sm:$0xff] }
 0xe8a   : > { %15070 = vmatprep.subr.bf16.mxu1 %v17789_v43 }
 0xe8c   : > { %14031 = vmatmul.mubr.f32.gmra.mrb[30].mxu1 %v17389_v53 }
 0xe8d   : > { %15072 = vmatpush3.bf16.msra.mxu1 %v17789_v43  ;;  %14041 = vmatprep.mubr.f32.mxu1 %v17373_v45  ;;  %v19133_v45 = vld [vmem:[#allocation29_spill] sm:$0xff] }
 0xe8e   : > { %15074 = vmatprep.subr.bf16.mxu1 %v17770_v33  ;;  %v9739_v43 = vld [vmem:[%s18997_s9 + $0x28] sm:$0xff] }
 0xe8f   : > { %v9789_v21 = vand.u32 4294901760, %v9739_v43 }
 0xe90   : > { %14042 = vmatmul.mubr.f32.vlgmr.msra.gmra.mrb[28].mxu1 %v17376_v60  ;;  %v19134_v60 = vld [vmem:[#allocation31_spill] sm:$0xff] }
 0xe91   : > { %15076 = vmatpush3.bf16.msra.mxu1 %v17770_v33  ;;  %14044 = vmatprep.mubr.f32.mxu1 %v17387_v50  ;;  %v19135_v50 = vld [vmem:[#allocation20_spill] sm:$0xff]  ;;  %v18040_v51 = vsub.f32 %v9739_v43, %v9789_v21 }
 0xe92   : > { %15078 = vmatprep.subr.bf16.mxu1 %v17777_v4 }
 0xe94   : > { %14045 = vmatmul.mubr.f32.gmra.mrb[30].mxu1 %v17407_v26  ;;  %v19143_v26 = vld [vmem:[#allocation10_spill] sm:$0xff] }
 0xe95   : > { %15080 = vmatpush3.bf16.msra.mxu1 %v17777_v4  ;;  %14055 = vmatprep.mubr.f32.mxu1 %v17398_v15  ;;  %v19136_v15 = vld [vmem:[#allocation21_spill] sm:$0xff] }
 0xe96   : > { %15082 = vmatprep.subr.bf16.mxu1 %v17785_v18 }
 0xe98   : > { %14056 = vmatmul.mubr.f32.vlgmr.msra.gmra.mrb[28].mxu1 %v17401_v35  ;;  %v19141_v35 = vld [vmem:[#allocation11_spill] sm:$0xff] }
 0xe99   : > { %15084 = vmatpush3.bf16.msra.mxu1 %v17785_v18  ;;  %14058 = vmatprep.mubr.f32.mxu1 %v17404_v31  ;;  %v19142_v31 = vld [vmem:[#allocation13_spill] sm:$0xff]  ;;  %v9738_v18 = vld [vmem:[%s18997_s9 + $0x20] sm:$0xff] }
 0xe9a   : > { %15086 = vmatprep.subr.bf16.mxu1 %v17793_v5  ;;  %v9786_v9 = vand.u32 4294901760, %v9738_v18 }
 0xe9c   : > { %14059 = vmatmul.mubr.f32.gmra.mrb[30].mxu1 %v17418_v23  ;;  %v19144_v23 = vld [vmem:[#allocation12_spill] sm:$0xff]  ;;  %v18034_v46 = vsub.f32 %v9738_v18, %v9786_v9  ;;  %v18057_v28 = vpack.c.bf16 %v9789_v21, %v9786_v9 }
 0xe9d   : > { %15088 = vmatpush3.bf16.msra.mxu1 %v17793_v5  ;;  %14069 = vmatprep.mubr.f32.mxu1 %v17361_v32 }
 0xe9e   : > { %15090 = vmatprep.subr.bf16.mxu1 %v17770_v33  ;;  %v19064_v48 = vand.u32 4294901760, %v18034_v46 }
 0xea0   : > { %14070 = vmatmul.mubr.f32.vlgmr.msra.gmra.mrb[28].mxu1 %v17363_v22 }
 0xea1   : > { %15092 = vmatpush3.bf16.msra.mxu1 %v17770_v33  ;;  %14072 = vmatprep.mubr.f32.mxu1 %v17367_v47  ;;  %v9737_v33 = vld [vmem:[%s18997_s9 + $0x18] sm:$0xff] }
 0xea2   : > { %15094 = vmatprep.subr.bf16.mxu1 %v17777_v4  ;;  %v9783_v2 = vand.u32 4294901760, %v9737_v33 }
 0xea4   : > { %14073 = vmatmul.mubr.f32.gmra.mrb[30].mxu1 %v17389_v53  ;;  %v18032_v24 = vsub.f32 %v9737_v33, %v9783_v2 }
 0xea5   : > { %15096 = vmatpush3.bf16.msra.mxu1 %v17777_v4  ;;  %14083 = vmatprep.mubr.f32.mxu1 %v17361_v32  ;;  %v19137_v32 = vld [vmem:[#allocation22_spill] sm:$0xff] }
 0xea6   : > { %15146 = vmatprep.subr.bf16.mxu1 %v19133_v45 }
 0xea8   : > { %14084 = vmatmul.mubr.f32.vlgmr.msra.gmra.mrb[28].mxu1 %v17363_v22  ;;  %v19138_v22 = vld [vmem:[#allocation23_spill] sm:$0xff] }
 0xea9   : > { %15148 = vmatpush3.bf16.msra.mxu1 %v19133_v45  ;;  %14086 = vmatprep.mubr.f32.mxu1 %v17367_v47  ;;  %v19139_v47 = vld [vmem:[#allocation8_spill] sm:$0xff] }
 0xeaa   : > { %15150 = vmatprep.subr.bf16.mxu1 %v19134_v60 }
 0xeac   : > { %14087 = vmatmul.mubr.f32.gmra.mrb[30].mxu1 %v17389_v53  ;;  %v19140_v53 = vld [vmem:[#allocation9_spill] sm:$0xff] }
 0xead   : > { %15152 = vmatpush3.bf16.msra.mxu1 %v19134_v60  ;;  %14181 = vmatprep.mubr.f32.mxu1 %v19135_v50 }
 0xeae   : > { %15154 = vmatprep.subr.bf16.mxu1 %v17826_v3 }
 0xeb0   : > { %14182 = vmatmul.mubr.f32.vlgmr.msra.gmra.mrb[32].mxu1 %v19136_v15 }
 0xeb1   : > { %15156 = vmatpush3.bf16.msra.mxu1 %v17826_v3  ;;  %14184 = vmatprep.mubr.f32.mxu1 %v19137_v32  ;;  %v18079_v32 = vpack.c.bf16 %v9807_v12, %v9804_v62 }
 0xeb2   : > { %15158 = vmatprep.subr.bf16.mxu1 %v17828_v13 }
 0xeb4   : > { %14185 = vmatmul.mubr.f32.gmra.mrb[34].mxu1 %v19138_v22 }
 0xeb5   : > { %15160 = vmatpush3.bf16.msra.mxu1 %v17828_v13  ;;  %14195 = vmatprep.mubr.f32.mxu1 %v19139_v47  ;;  %v18015_v13 = vsub.f32 %v9734_v41, %v9774_v14  ;;  %v9752_v41 = vld [vmem:[%s18997_s9 + $0x90] sm:$0xff] }
 0xeb6   : > { %15162 = vmatprep.subr.bf16.mxu1 %v17830_v36 }
 0xeb8   : > { %14196 = vmatmul.mubr.f32.vlgmr.msra.gmra.mrb[32].mxu1 %v19140_v53 }
 0xeb9   : > { %15164 = vmatpush3.bf16.msra.mxu1 %v17830_v36  ;;  %14198 = vmatprep.mubr.f32.mxu1 %v19141_v35  ;;  %v9736_v36 = vld [vmem:[%s18997_s9 + $0x10] sm:$0xff] }
 0xeba   : > { %15166 = vmatprep.subr.bf16.mxu1 %v17832_v19  ;;  %v9780_v4 = vand.u32 4294901760, %v9736_v36 }
 0xebc   : > { %14199 = vmatmul.mubr.f32.gmra.mrb[34].mxu1 %v19142_v31  ;;  %v18019_v30 = vsub.f32 %v9736_v36, %v9780_v4  ;;  %v18030_v6 = vpack.c.bf16 %v9783_v2, %v9780_v4  ;;  %v9828_v36 = vand.u32 4294901760, %v9752_v41 }
 0xebd   : > { %15168 = vmatpush3.bf16.msra.mxu1 %v17832_v19  ;;  %14209 = vmatprep.mubr.f32.mxu1 %v19143_v26  ;;  %v9735_v19 = vld [vmem:[%s18997_s9 + $0x8] sm:$0xff] }
 0xebe   : > { %15170 = vmatprep.subr.bf16.mxu1 %v19133_v45  ;;  %v9777_v5 = vand.u32 4294901760, %v9735_v19  ;;  %v19066_v21 = vand.u32 4294901760, %v18019_v30  ;;  %v18140_v10 = vsub.f32 %v9752_v41, %v9828_v36 }
 0xec0   : > { %14210 = vmatmul.mubr.f32.vlgmr.msra.gmra.mrb[32].mxu1 %v19144_v23  ;;  %v18013_v3 = vpack.c.bf16 %v9777_v5, %v9774_v14 }
 0xec1   : > { %15172 = vmatpush3.bf16.msra.mxu1 %v19133_v45  ;;  %14212 = vmatprep.mubr.f32.mxu1 %v19145_v0 }
 0xec2   : > { %15174 = vmatprep.subr.bf16.mxu1 %v19134_v60  ;;  %15195 = vmatpush1.bf16.msra.mxu0 %v18013_v3 }
 0xec3   : > { %15196 = vmatprep.subr.bf16.mxu0 %v19070_v56 }
 0xec4   : > { %14213 = vmatmul.mubr.f32.gmra.mrb[34].mxu1 %v19146_v38  ;;  %v9750_v38 = vld [vmem:[%s18997_s9 + $0x80] sm:$0xff] }
 0xec5   : > { %15176 = vmatpush3.bf16.msra.mxu1 %v19134_v60  ;;  %14223 = vmatprep.mubr.f32.mxu1 %v19147_v34  ;;  %v9751_v34 = vld [vmem:[%s18997_s9 + $0x88] sm:$0xff] }
 0xec6   : > { %15178 = vmatprep.subr.bf16.mxu1 %v17843_v58  ;;  %15198 = vmatpush1.bf16.msra.mxu0 %v18030_v6 }
 0xec7   : > { %15199 = vmatprep.subr.bf16.mxu0 %v19070_v56 }
 0xec8   : > { %14224 = vmatmul.mubr.f32.vlgmr.msra.gmra.mrb[32].mxu1 %v19148_v7  ;;  %v9822_v7 = vand.u32 4294901760, %v9750_v38 }
 0xec9   : > { %15180 = vmatpush3.bf16.msra.mxu1 %v17843_v58  ;;  %14226 = vmatprep.mubr.f32.mxu1 %v19149_v39  ;;  %v18017_v58 = vsub.f32 %v9735_v19, %v9777_v5  ;;  %v9825_v39 = vand.u32 4294901760, %v9751_v34  ;;  %v9753_v19 = vld [vmem:[%s18997_s9 + $0x98] sm:$0xff]  ;;  %v19068_v5 = vand.u32 4294901760, %v18015_v13 }
 0xeca   : > { %15182 = vmatprep.subr.bf16.mxu1 %v17861_v57  ;;  %15201 = vmatpush1.bf16.msra.mxu0 %v18057_v28  ;;  %v9831_v14 = vand.u32 4294901760, %v9753_v19  ;;  %v18135_v61 = vsub.f32 %v9750_v38, %v9822_v7 }
 0xecb   : > { %15202 = vmatprep.subr.bf16.mxu0 %v19070_v56  ;;  %v19067_v33 = vand.u32 4294901760, %v18017_v58  ;;  %v9922_v18 = vsub.f32 %v18015_v13, %v19068_v5  ;;  %v18137_v63 = vsub.f32 %v9751_v34, %v9825_v39  ;;  %v9677_v5 = vpop.permute.xlu0 %9676 }
 0xecc   : > { %14227 = vmatmul.mubr.f32.gmra.mrb[34].mxu1 %v19150_v59  ;;  %v18108_v59 = vpack.c.bf16 %v9825_v39, %v9822_v7  ;;  %v18120_v4 = vpack.c.bf16 %v9831_v14, %v9828_v36  ;;  %v19158_v7 = vld [vmem:[#allocation24_spill] sm:$0xff]  ;;  %v19060_v36 = vand.u32 4294901760, %v18048_v25 }
 0xecd   : > { %15184 = vmatpush3.bf16.msra.mxu1 %v17861_v57  ;;  %14237 = vmatprep.mubr.f32.mxu1 %v19139_v47  ;;  %v9792_v57 = vand.u32 4294901760, %v9740_v42  ;;  %v9929_v43 = vsub.f32 %v18017_v58, %v19067_v33  ;;  %v9923_v2 = vand.u32 4294901760, %v9922_v18 }
 0xece   : > { %15186 = vmatprep.subr.bf16.mxu1 %v19133_v45  ;;  %19153 = vst [vmem:[#allocation20_spill] sm:$0xff] %v18108_v59  ;;  %19154 = vst [vmem:[#allocation21_spill] sm:$0xff] %v18120_v4 }
 0xecf   : > { %v18046_v40 = vsub.f32 %v9740_v42, %v9792_v57  ;;  %v9930_v9 = vand.u32 4294901760, %v9929_v43  ;;  %v19065_v42 = vand.u32 4294901760, %v18032_v24  ;;  %v9971_v43 = vsub.f32 %v18048_v25, %v19060_v36 }
 0xed0   : > { %14238 = vmatmul.mubr.f32.vlgmr.msra.gmra.mrb[32].mxu1 %v19140_v53 }
 0xed1   : > { %15188 = vmatpush3.bf16.msra.mxu1 %v19133_v45  ;;  %14240 = vmatprep.mubr.f32.mxu1 %v19141_v35  ;;  %v18067_v45 = vpack.c.bf16 %v9795_v52, %v9792_v57  ;;  %v18142_v57 = vsub.f32 %v9753_v19, %v9831_v14  ;;  %v18144_v52 = vpack.c.bf16 %v9930_v9, %v9923_v2  ;;  %v19062_v19 = vand.u32 4294901760, %v18046_v40  ;;  %v19159_v2 = vld [vmem:[#allocation30_spill] sm:$0xff]  ;;  %v19160_v9 = vld [vmem:[#allocation27_spill] sm:$0xff] }
 0xed2   : > { %15190 = vmatprep.subr.bf16.mxu1 %v19134_v60  ;;  %v9943_v62 = vsub.f32 %v18032_v24, %v19065_v42 }
 0xed3   : > { %15204 = vmatpush1.bf16.msra.mxu0 %v18067_v45  ;;  %v9964_v18 = vsub.f32 %v18046_v40, %v19062_v19  ;;  %v9709_v19 = vpop.permute.xlu0 %9708 }
 0xed4   : > { %14241 = vmatmul.mubr.f32.gmra.mrb[34].mxu1 %v19142_v31  ;;  %15205 = vmatprep.subr.bf16.mxu0 %v19070_v56 }
 0xed5   : > { %15192 = vmatpush3.bf16.msra.mxu1 %v19134_v60  ;;  %14251 = vmatprep.mubr.f32.mxu1 %v19139_v47  ;;  %v18071_v60 = vpack.c.bf16 %v9801_v29, %v9798_v44  ;;  %v9936_v44 = vsub.f32 %v18019_v30, %v19066_v21 }
 0xed7   : > { %15207 = vmatpush1.bf16.msra.mxu0 %v18071_v60  ;;  %v9937_v12 = vand.u32 4294901760, %v9936_v44  ;;  %v9972_v44 = vand.u32 4294901760, %v9971_v43 }
 0xed8   : > { %14252 = vmatmul.mubr.f32.vlgmr.msra.gmra.mrb[32].mxu1 %v19140_v53  ;;  %15208 = vmatprep.subr.bf16.mxu0 %v19070_v56  ;;  %v18087_v53 = vpack.c.bf16 %v9813_v20, %v9810_v11  ;;  %v19063_v11 = vand.u32 4294901760, %v18040_v51  ;;  %v9944_v20 = vand.u32 4294901760, %v9943_v62  ;;  %v19057_v62 = vand.u32 4294901760, %v18052_v55 }
 0xed9   : > { %14254 = vmatprep.mubr.f32.mxu1 %v19141_v35  ;;  %v9748_v35 = vld [vmem:[%s18997_s9 + $0x70] sm:$0xff] }
 0xeda   : > { %19151 = vst [vmem:[#allocation29_spill] sm:$0xff] %v18087_v53  ;;  %v9816_v26 = vand.u32 4294901760, %v9748_v35  ;;  %v18164_v34 = vpack.c.bf16 %v9944_v20, %v9937_v12  ;;  %v12255_v12 = vld [vmem:[%s18996_s8] ss:$0 sm:$0xff] }
 0xedb   : > { %15210 = vmatpush1.bf16.msra.mxu0 %v18079_v32 }
 0xedc   : > { %14255 = vmatmul.mubr.f32.gmra.mrb[34].mxu1 %v19142_v31  ;;  %15211 = vmatprep.subr.bf16.mxu0 %v19070_v56  ;;  %v9749_v31 = vld [vmem:[%s18997_s9 + $0x78] sm:$0xff]  ;;  %v18131_v49 = vsub.f32 %v9748_v35, %v9816_v26 }
 0xedd   : > { %v9819_v23 = vand.u32 4294901760, %v9749_v31 }
 0xedf   : > { %15213 = vmatpush1.bf16.msra.mxu0 %v18087_v53  ;;  %v18098_v0 = vpack.c.bf16 %v9819_v23, %v9816_v26  ;;  %v18133_v17 = vsub.f32 %v9749_v31, %v9819_v23  ;;  %v9950_v31 = vsub.f32 %v18034_v46, %v19064_v48  ;;  %v9957_v26 = vsub.f32 %v18040_v51, %v19063_v11  ;;  %v19157_v23 = vld [vmem:[#allocation26_spill] sm:$0xff] }
 0xee0   : > { %15214 = vmatprep.subr.bf16.mxu0 %v19070_v56 }
 0xee1   : > { %19152 = vst [vmem:[#allocation31_spill] sm:$0xff] %v18098_v0  ;;  %v9951_v39 = vand.u32 4294901760, %v9950_v31  ;;  %v9958_v41 = vand.u32 4294901760, %v9957_v26  ;;  %v9985_v26 = vsub.f32 %v18052_v55, %v19057_v62 }
 0xee3   : > { %15216 = vmatpush1.bf16.msra.mxu0 %v18098_v0  ;;  %v18170_v14 = vpack.c.bf16 %v9958_v41, %v9951_v39  ;;  %v19054_v39 = vand.u32 4294901760, %v18054_v27  ;;  %v19051_v41 = vand.u32 4294901760, %v18059_v37 }
 0xee4   : > { %15217 = vmatprep.subr.bf16.mxu0 %v19070_v56 }
 0xee7   : > { %15219 = vmatpush1.bf16.msra.mxu0 %v18108_v59 }
 0xee8   : > { %15220 = vmatprep.subr.bf16.mxu0 %v19070_v56 }
 0xeeb   : > { %15222 = vmatpush1.bf16.msra.mxu0 %v18120_v4  ;;  %v16123_v4 = vld [vmem:[%s16373_s16 + $0x10] sm:$0xff] }
 0xeec   : > { %15223 = vmatprep.subr.bf16.mxu0 %v19070_v56 }
 0xf4b   : > { %v18074_v50 = vpop.f32.mrb[24].mxu1 }
 0xf4c   : > { %v18076_v15 = vpop.f32.mrb[25].mxu1 }
 0xf4f   : > { %v18082_v22 = vpop.f32.mrb[26].mxu1 }
 0xf50   : > { %v18084_v47 = vpop.f32.mrb[27].mxu1 }
 0xf7b   : > { %v14085_v16 = vpop.f32.mrb[28].mxu1 }
 0xf7c   : > { %9694 = vrot.lane.b32.xlu0 %v14085_v16, %s19155_s26  ;;  %v8410_v29 = vpop.f32.mrb[29].mxu1  ;;  %v9965_v16 = vand.u32 4294901760, %v9964_v18  ;;  %v18200_v18 = vadd.f32 %v12255_v12, %v18076_v15  ;;  %v19049_v15 = vand.u32 4294901760, %v18061_v54 }
 0xf7d   : > { %9692 = vrot.lane.b32.xlu1 %v8410_v29, %s19155_s26  ;;  %v19058_v29 = vand.u32 4294901760, %v18050_v8 }
 0xf7e   : > { %v18187_v20 = vpack.c.bf16 %v9972_v44, %v9965_v16  ;;  %19161 = vst [vmem:[#allocation22_spill] sm:$0xff] %v18200_v18  ;;  %v19050_v44 = vand.u32 4294901760, %v18064_v1 }
 0xf7f   : > { %v14088_v35 = vpop.f32.mrb[30].mxu1  ;;  %v9978_v31 = vsub.f32 %v18050_v8, %v19058_v29 }
 0xf80   : > { %9680 = vrot.lane.b32.xlu0 %v19157_v23, %s19156_s25  ;;  %v8422_v38 = vpop.f32.mrb[31].mxu1 }
 0xf81   : > { %9678 = vrot.lane.b32.xlu1 %v19158_v7, %s19156_s25  ;;  %v9979_v23 = vand.u32 4294901760, %v9978_v31  ;;  %v9986_v7 = vand.u32 4294901760, %v9985_v26  ;;  %v18217_v31 = vadd.f32 %v12255_v12, %v18084_v47  ;;  %v19052_v47 = vand.u32 4294901760, %v18131_v49 }
 0xf83   : > { %v18202_v43 = vpack.c.bf16 %v9986_v7, %v9979_v23  ;;  %19163 = vst [vmem:[#allocation23_spill] sm:$0xff] %v18217_v31  ;;  %v10006_v23 = vsub.f32 %v18061_v54, %v19049_v15  ;;  %v10013_v7 = vsub.f32 %v18064_v1, %v19050_v44  ;;  %v10020_v44 = vsub.f32 %v18131_v49, %v19052_v47 }
 0xf84   : > { %9712 = vrot.lane.b32.xlu0 %v19159_v2, %s19128_s24  ;;  %v9992_v2 = vsub.f32 %v18054_v27, %v19054_v39  ;;  %v19059_v39 = vand.u32 4294901760, %v18140_v10 }
 0xf85   : > { %9710 = vrot.lane.b32.xlu1 %v19160_v9, %s19128_s24 }
 0xf86   : > { %v9993_v9 = vand.u32 4294901760, %v9992_v2  ;;  %v19164_v2 = vld [vmem:[#allocation28_spill] sm:$0xff] }
 0xf88   : > { %9698 = vrot.lane.b32.xlu0 %v14088_v35, %s19155_s26  ;;  %v9999_v35 = vsub.f32 %v18059_v37, %v19051_v41 }
 0xf89   : > { %9696 = vrot.lane.b32.xlu1 %v8422_v38, %s19155_s26  ;;  %v19162_v38 = vld [vmem:[#allocation25_spill] sm:$0xff]  ;;  %s515_s26 = scalar_lea.vmem %s18989_s1, %s19210_s2  ;;  %s502_s2 = sand.u32 1, %s16179_s19  }
 0xf8a   : > { %v10000_v16 = vand.u32 4294901760, %v9999_v35  ;;  %v10007_v35 = vand.u32 4294901760, %v10006_v23  ;;  %v10021_v23 = vand.u32 4294901760, %v10020_v44  ;;  %s12249_s30 = sshll.u32 %s502_s2, 5  ;;  %s18946_s4 = scalar_lea.sflag [#allocation3], %s502_s2 }
 0xf8c   : > { %10651 = vrot.lane.b32.xlu0 %v18200_v18, %s19156_s25  ;;  %v18219_v26 = vpack.c.bf16 %v10000_v16, %v9993_v9  ;;  %v19053_v9 = vand.u32 4294901760, %v18133_v17  ;;  %v18234_v16 = vadd.f32 %v18074_v50, %v12255_v12  ;;  %v19055_v50 = vand.u32 4294901760, %v18137_v63 }
 0xf8d   : > { %9682 = vrot.lane.b32.xlu1 %v19162_v38, %s19156_s25  ;;  %v10014_v38 = vand.u32 4294901760, %v10013_v7 }
 0xf8e   : > { %19165 = vst [vmem:[#allocation8_spill] sm:$0xff] %v18234_v16  ;;  %v10027_v41 = vsub.f32 %v18133_v17, %v19053_v9  ;;  %v10041_v9 = vsub.f32 %v18137_v63, %v19055_v50 }
 0xf8f   : > { %v18236_v15 = vpack.c.bf16 %v10014_v38, %v10007_v35  ;;  %v18249_v35 = vadd.f32 %v18082_v22, %v12255_v12  ;;  %v19061_v22 = vand.u32 4294901760, %v18142_v57 }
 0xf90   : > { %10655 = vrot.lane.b32.xlu0 %v18217_v31, %s19156_s25  ;;  %v10028_v7 = vand.u32 4294901760, %v10027_v41  ;;  %v10042_v44 = vand.u32 4294901760, %v10041_v9 }
 0xf91   : > { %9714 = vrot.lane.b32.xlu1 %v19164_v2, %s19128_s24  ;;  %v19056_v2 = vand.u32 4294901760, %v18135_v61  ;;  %19166 = vst [vmem:[#allocation9_spill] sm:$0xff] %v18249_v35  ;;  %s16205_s24 = smov [#allocation2]  }
 0xf92   : > { %v18251_v38 = vpack.c.bf16 %v10028_v7, %v10021_v23  ;;  %v10048_v23 = vsub.f32 %v18140_v10, %v19059_v39  ;;  %v10055_v7 = vsub.f32 %v18142_v57, %v19061_v22  ;;  %s16129_s23 = sshll.u32 %s16205_s24, 4  ;;  %s16130_s23 = int_to_ptr.vmem [resolvable:$false] %s16129_s23 }
 0xf93   : > { %v10034_v47 = vsub.f32 %v18135_v61, %v19056_v2  ;;  %s16131_s20 = scalar_lea.vmem %s16130_s23, 1024 }
 0xf94   : > { %v10049_v50 = vand.u32 4294901760, %v10048_v23  ;;  %v10056_v2 = vand.u32 4294901760, %v10055_v7 }
 0xf95   : > { %10653 = vrot.lane.b32.xlu1 %v18234_v16, %s19156_s25  ;;  %v10035_v41 = vand.u32 4294901760, %v10034_v47 }
 0xf96   : > { %v18271_v62 = vpack.c.bf16 %v10056_v2, %v10049_v50 }
 0xf97   : > { %v18263_v12 = vpack.c.bf16 %v10042_v44, %v10035_v41 }
 0xf99   : > { %10657 = vrot.lane.b32.xlu1 %v18249_v35, %s19156_s25 }
 0xfab   : > { %v14253_v41 = vpop.f32.mrb[32].mxu1 }
 0xfac   : > { %v9650_v29 = vpop.f32.mrb[33].mxu1 }
 0xfad   : > { %v9762_v39 = vsel %vm537_vm0, %v9650_v29, 0 }
 0xfae   : > { %v18280_v36 = vand.u32 4294901760, %v9762_v39 }
 0xfaf   : > { %v14256_v22 = vpop.f32.mrb[34].mxu1 }
 0xfb0   : > { %v18285_v50 = vsub.f32 %v9762_v39, %v18280_v36  ;;  %v9662_v23 = vpop.f32.mrb[35].mxu1 }
 0xfb1   : > { %v9768_v21 = vsel %vm537_vm0, %v9662_v23, 0  ;;  %v16122_v23 = vld [vmem:[%s16373_s16 + $0x8] sm:$0xff] }
 0xfb2   : > { %v19069_v7 = vand.u32 4294901760, %v18285_v50  ;;  %v18314_v44 = vand.u32 4294901760, %v9768_v21 }
 0xfb4   : > { %v9860_v29 = vsub.f32 %v18285_v50, %v19069_v7  ;;  %v9765_v7 = vsel %vm537_vm0, %v14253_v41, 0 }
 0xfb6   : > { %v9861_v11 = vand.u32 4294901760, %v9860_v29  ;;  %v18304_v29 = vand.u32 4294901760, %v9765_v7 }
 0xfb8   : > { %9862 = vmatprep.mubr.f32.mxu0 %v9861_v11  ;;  %v16121_v11 = vld [vmem:[%s16373_s16] sm:$0xff]  ;;  %v18309_v42 = vsub.f32 %v9765_v7, %v18304_v29 }
 0xfb9   : > { %v9720_v39 = vsel %vm537_vm0, %v16121_v11, %v9677_v5  ;;  %v9771_v5 = vsel %vm537_vm0, %v14256_v22, 0 }
 0xfba   : > { %v19167_v22 = vand.u32 4294901760, %v18309_v42 }
 0xfee   : > { %v9695_v2 = vpop.permute.xlu0 %9694 }
 0xfef   : > { %v9693_v48 = vpop.permute.xlu1 %9692 }
 0xff0   : > { %v9725_v33 = vsel %vm9724_vm4, %v9720_v39, %v9693_v48  ;;  %v18326_v48 = vsub.f32 %v9768_v21, %v18314_v44  ;;  %v18329_v39 = vand.u32 4294901760, %v9771_v5 }
 0xff1   : > { %v9730_v41 = vsel %vm9729_vm5, %v9725_v33, %v9709_v19 }
 0xff2   : > { %v18316_v9 = vand.u32 4294901760, %v9730_v41  ;;  %v9681_v19 = vpop.permute.xlu0 %9680  ;;  %v18343_v16 = vsub.f32 %v9771_v5, %v18329_v39 }
 0xff3   : > { %v9679_v56 = vpop.permute.xlu1 %9678 }
 0xff4   : > { %v18321_v7 = vsub.f32 %v9730_v41, %v18316_v9  ;;  %v9721_v11 = vsel %vm537_vm0, %v16122_v23, %v9679_v56  ;;  %v9875_v41 = vsub.f32 %v18309_v42, %v19167_v22  ;;  %v19081_v23 = vand.u32 4294901760, %v18326_v48 }
 0xff5   : > { %v9726_v47 = vsel %vm9724_vm4, %v9721_v11, %v9695_v2  ;;  %v9722_v2 = vsel %vm537_vm0, %v16123_v4, %v9681_v19  ;;  %v19168_v4 = vmov 0.0|0.0  }
 0xff6   : > { %v19080_v33 = vand.u32 4294901760, %v18321_v7  ;;  %v9876_v59 = vand.u32 4294901760, %v9875_v41  ;;  %v9890_v19 = vsub.f32 %v18326_v48, %v19081_v23 }
 0xff7   : > { %v9711_v31 = vpop.permute.xlu1 %9710 }
 0xff8   : > { %v9866_v35 = vsub.f32 %v18321_v7, %v19080_v33  ;;  %v9731_v56 = vsel %vm9729_vm5, %v9726_v47, %v9711_v31  ;;  %v9713_v33 = vpop.permute.xlu0 %9712 }
 0xff9   : > { %v18339_v21 = vand.u32 4294901760, %v9731_v56 }
 0xffa   : > { %v9867_v18 = vand.u32 4294901760, %v9866_v35 }
 0xffb   : > { %v18348_v11 = vsub.f32 %v9731_v56, %v18339_v21  ;;  %v9697_v22 = vpop.permute.xlu1 %9696 }
 0xffc   : > { %v9727_v31 = vsel %vm9724_vm4, %v9722_v2, %v9697_v22  ;;  %9868 = vmatmul.mubr.f32.vlgmr.msra.gmra.mrb[28].mxu0 %v9867_v18  ;;  %v9699_v22 = vpop.permute.xlu0 %9698 }
 0xffd   : > { %v9732_v47 = vsel %vm9729_vm5, %v9727_v31, %v9713_v33  ;;  %15225 = vmatpush1.bf16.msra.mxu0 %v18144_v52  ;;  %9877 = vmatprep.mubr.f32.mxu0 %v9876_v59  ;;  %v19084_v35 = vand.u32 4294901760, %v18348_v11  ;;  %v16124_v59 = vld [vmem:[%s16373_s16 + $0x18] sm:$0xff]  ;;  %v9891_v31 = vand.u32 4294901760, %v9890_v19 }
 0xffe   : > { %v18354_v5 = vand.u32 4294901760, %v9732_v47  ;;  %15226 = vmatprep.subr.bf16.mxu0 %v19168_v4 }
 0xfff   : > { %v9683_v56 = vpop.permute.xlu1 %9682  ;;  %v9881_v18 = vsub.f32 %v18348_v11, %v19084_v35  ;;  %v19169_v35 = vand.u32 4294901760, %v18343_v16 }
0x1000   : > { %v18365_v52 = vsub.f32 %v9732_v47, %v18354_v5  ;;  %v9723_v33 = vsel %vm537_vm0, %v16124_v59, %v9683_v56 }
0x1001   : > { %15228 = vmatpush1.bf16.msra.mxu0 %v18164_v34  ;;  %v9882_v2 = vand.u32 4294901760, %v9881_v18  ;;  %v9728_v0 = vsel %vm9724_vm4, %v9723_v33, %v9699_v22  ;;  %v9905_v47 = vsub.f32 %v18343_v16, %v19169_v35  ;;  %v19179_v33 = vpack.c.bf16 %v18142_v57, %v18140_v10  ;;  %v19181_v22 = vld [vmem:[#allocation29_spill] sm:$0xff] }
0x1002   : > { %15229 = vmatprep.subr.bf16.mxu0 %v19168_v4  ;;  %v9895_v23 = vand.u32 4294901760, %v18365_v52 }
0x1003   : > { %v9715_v41 = vpop.permute.xlu1 %9714  ;;  %9883 = vmatmul.mubr.f32.gmra.mrb[30].mxu0 %v9882_v2  ;;  %v9906_v59 = vand.u32 4294901760, %v9905_v47  ;;  %v19180_v2 = vand.u32 4294901760, %v18285_v50  ;;  %v19184_v47 = vld [vmem:[#allocation21_spill] sm:$0xff] }
0x1004   : > { %v9733_v53 = vsel %vm9729_vm5, %v9728_v0, %v9715_v41  ;;  %9892 = vmatprep.mubr.f32.mxu0 %v9891_v31  ;;  %v9896_v34 = vsub.f32 %v18365_v52, %v9895_v23  ;;  %v19178_v41 = vpack.c.bf16 %v18137_v63, %v18135_v61  ;;  %v19182_v31 = vld [vmem:[#allocation31_spill] sm:$0xff] }
0x1005   : > { %v18380_v56 = vand.u32 4294901760, %v9733_v53  ;;  %15231 = vmatpush1.bf16.msra.mxu0 %v18170_v14 }
0x1006   : > { %15232 = vmatprep.subr.bf16.mxu0 %v19168_v4  ;;  %v9897_v19 = vand.u32 4294901760, %v9896_v34  ;;  %v19185_v34 = vand.u32 4294901760, %v18015_v13 }
0x1007   : > { %v18385_v18 = vsub.f32 %v9733_v53, %v18380_v56  ;;  %v19170_v53 = vpack.c.bf16 %v18017_v58, %v18015_v13  ;;  %v19191_v13 = vand.u32 4294901760, %v18348_v11 }
0x1008   : > { %9898 = vmatmul.mubr.f32.gmra.mrb[32].mxu0 %v9897_v19  ;;  %v19186_v19 = vand.u32 4294901760, %v18017_v58  ;;  %v19192_v58 = vand.u32 4294901760, %v18326_v48 }
0x1009   : > { %15234 = vmatpush1.bf16.msra.mxu0 %v18187_v20  ;;  %9907 = vmatprep.mubr.f32.mxu0 %v9906_v59  ;;  %v9910_v0 = vand.u32 4294901760, %v18385_v18  ;;  %v19171_v20 = vpack.c.bf16 %v18032_v24, %v18019_v30 }
0x100a   : > { %15235 = vmatprep.subr.bf16.mxu0 %v19168_v4  ;;  %v15314_v59 = vpack.c.bf16 %v19186_v19, %v19185_v34 }
0x100b   : > { %v9911_v35 = vsub.f32 %v18385_v18, %v9910_v0 }
0x100d   : > { %15237 = vmatpush1.bf16.msra.mxu0 %v18202_v43  ;;  %v9912_v14 = vand.u32 4294901760, %v9911_v35  ;;  %v19173_v43 = vpack.c.bf16 %v18048_v25, %v18046_v40  ;;  %v19187_v35 = vand.u32 4294901760, %v18321_v7 }
0x100e   : > { %15238 = vmatprep.subr.bf16.mxu0 %v19168_v4 }
0x100f   : > { %9913 = vmatmul.mubr.f32.gmra.mrb[34].mxu0 %v9912_v14  ;;  %v19188_v14 = vand.u32 4294901760, %v18309_v42 }
0x1010   : > { %10083 = vmatprep.mubr.f32.mxu0 %v18280_v36 }
0x1011   : > { %15240 = vmatpush1.bf16.msra.mxu0 %v18219_v26  ;;  %v19175_v26 = vpack.c.bf16 %v18059_v37, %v18054_v27 }
0x1012   : > { %15241 = vmatprep.subr.bf16.mxu0 %v19168_v4 }
0x1015   : > { %15243 = vmatpush1.bf16.msra.mxu0 %v18236_v15  ;;  %v19174_v15 = vpack.c.bf16 %v18052_v55, %v18050_v8 }
0x1016   : > { %15244 = vmatprep.subr.bf16.mxu0 %v19168_v4 }
0x1019   : > { %15246 = vmatpush1.bf16.msra.mxu0 %v18251_v38  ;;  %v19176_v38 = vpack.c.bf16 %v18064_v1, %v18061_v54 }
0x101a   : > { %15247 = vmatprep.subr.bf16.mxu0 %v19168_v4 }
0x101d   : > { %15249 = vmatpush1.bf16.msra.mxu0 %v18263_v12  ;;  %v19177_v12 = vpack.c.bf16 %v18133_v17, %v18131_v49 }
0x101e   : > { %15250 = vmatprep.subr.bf16.mxu0 %v19168_v4 }
0x1021   : > { %15252 = vmatpush1.bf16.msra.mxu0 %v18271_v62  ;;  %v19172_v62 = vpack.c.bf16 %v18040_v51, %v18034_v46 }
0x1022   : > { %15253 = vmatprep.subr.bf16.mxu0 %v19168_v4 }
0x1024   : > { %10085 = vmatmul.mubr.f32.vlgmr.msra.gmra.mrb[28].mxu0 %v18316_v9 }
0x1025   : > { %10090 = vmatprep.mubr.f32.mxu0 %v18304_v29  ;;  %15255 = vmatpush1.bf16.msra.mxu0 %v19170_v53  ;;  %v19189_v53 = vand.u32 4294901760, %v18019_v30  ;;  %v19195_v30 = vand.u32 4294901760, %v18343_v16 }
0x1026   : > { %15256 = vmatprep.subr.bf16.mxu0 %v19168_v4 }
0x1028   : > { %10092 = vmatmul.mubr.f32.gmra.mrb[30].mxu0 %v18339_v21 }
0x1029   : > { %10097 = vmatprep.mubr.f32.mxu0 %v18314_v44  ;;  %15258 = vmatpush1.bf16.msra.mxu0 %v19171_v20  ;;  %v19190_v20 = vand.u32 4294901760, %v18032_v24  ;;  %v19196_v24 = vand.u32 4294901760, %v18046_v40  ;;  %v19200_v40 = vand.u32 4294901760, %v18054_v27  ;;  %v19206_v27 = vand.u32 4294901760, %v18135_v61 }
0x102a   : > { %15259 = vmatprep.subr.bf16.mxu0 %v19168_v4 }
0x102c   : > { %10099 = vmatmul.mubr.f32.gmra.mrb[32].mxu0 %v18354_v5 }
0x102d   : > { %10104 = vmatprep.mubr.f32.mxu0 %v18329_v39  ;;  %15261 = vmatpush1.bf16.msra.mxu0 %v19172_v62  ;;  %v15317_v62 = vpack.c.bf16 %v19190_v20, %v19189_v53 }
0x102e   : > { %15262 = vmatprep.subr.bf16.mxu0 %v19168_v4 }
0x1030   : > { %10106 = vmatmul.mubr.f32.gmra.mrb[34].mxu0 %v18380_v56 }
0x1031   : > { %15264 = vmatpush1.bf16.msra.mxu0 %v19173_v43  ;;  %10217 = vmatprep.mubr.f32.mxu0 %v18285_v50  ;;  %v19183_v50 = vld [vmem:[#allocation20_spill] sm:$0xff] }
0x1032   : > { %15265 = vmatprep.subr.bf16.mxu0 %v19168_v4 }
0x1035   : > { %15267 = vmatpush1.bf16.msra.mxu0 %v19174_v15 }
0x1036   : > { %15268 = vmatprep.subr.bf16.mxu0 %v19168_v4 }
0x1039   : > { %15270 = vmatpush1.bf16.msra.mxu0 %v19175_v26 }
0x103a   : > { %15271 = vmatprep.subr.bf16.mxu0 %v19168_v4 }
0x103d   : > { %15273 = vmatpush1.bf16.msra.mxu0 %v19176_v38 }
0x103e   : > { %15274 = vmatprep.subr.bf16.mxu0 %v19168_v4 }
0x1041   : > { %15276 = vmatpush1.bf16.msra.mxu0 %v19177_v12 }
0x1042   : > { %15277 = vmatprep.subr.bf16.mxu0 %v19168_v4 }
0x1045   : > { %15279 = vmatpush1.bf16.msra.mxu0 %v19178_v41 }
0x1046   : > { %15280 = vmatprep.subr.bf16.mxu0 %v19168_v4 }
0x1049   : > { %15282 = vmatpush1.bf16.msra.mxu0 %v19179_v33 }
0x104a   : > { %15283 = vmatprep.subr.bf16.mxu0 %v19168_v4 }
0x104c   : > { %10220 = vmatmul.mubr.f32.vlgmr.msra.gmra.mrb[28].mxu0 %v18321_v7  ;;  %v19193_v7 = vand.u32 4294901760, %v18034_v46  ;;  %v19198_v46 = vand.u32 4294901760, %v18050_v8  ;;  %v19204_v8 = vand.u32 4294901760, %v18131_v49  ;;  %v10670_v49 = vld [vmem:[%s18999_s11 + $0x18] sm:$0xff] }
0x104d   : > { %10226 = vmatprep.mubr.f32.mxu0 %v18309_v42  ;;  %15285 = vmatpush1.bf16.msra.mxu0 %v18013_v3  ;;  %v19194_v42 = vand.u32 4294901760, %v18040_v51  ;;  %v19199_v51 = vand.u32 4294901760, %v18052_v55  ;;  %v19205_v55 = vand.u32 4294901760, %v18133_v17  ;;  %v10704_v61 = vand.u32 4294901760, %v10670_v49 }
0x104e   : > { %15286 = vmatprep.subr.bf16.mxu0 %v19168_v4 }
0x104f   : > { %v15320_v43 = vpack.c.bf16 %v19194_v42, %v19193_v7  ;;  %v15335_v15 = vpack.c.bf16 %v19205_v55, %v19204_v8 }
0x1050   : > { %10229 = vmatmul.mubr.f32.gmra.mrb[30].mxu0 %v18348_v11 }
0x1051   : > { %10235 = vmatprep.mubr.f32.mxu0 %v18326_v48  ;;  %15288 = vmatpush1.bf16.msra.mxu0 %v18030_v6  ;;  %v19197_v48 = vand.u32 4294901760, %v18048_v25  ;;  %v19201_v25 = vand.u32 4294901760, %v18059_v37  ;;  %v19207_v37 = vand.u32 4294901760, %v18137_v63 }
0x1052   : > { %15289 = vmatprep.subr.bf16.mxu0 %v19168_v4 }
0x1053   : > { %v15323_v11 = vpack.c.bf16 %v19197_v48, %v19196_v24  ;;  %v15338_v26 = vpack.c.bf16 %v19207_v37, %v19206_v27 }
0x1054   : > { %10238 = vmatmul.mubr.f32.gmra.mrb[32].mxu0 %v18365_v52  ;;  %v19202_v52 = vand.u32 4294901760, %v18061_v54  ;;  %v19208_v54 = vand.u32 4294901760, %v18140_v10  ;;  %v10671_v10 = vld [vmem:[%s18999_s11 + $0x20] sm:$0xff] }
0x1055   : > { %10244 = vmatprep.mubr.f32.mxu0 %v18343_v16  ;;  %15291 = vmatpush1.bf16.msra.mxu0 %v18057_v28  ;;  %v15326_v16 = vpack.c.bf16 %v19199_v51, %v19198_v46 }
0x1056   : > { %15292 = vmatprep.subr.bf16.mxu0 %v19168_v4 }
0x1058   : > { %10247 = vmatmul.mubr.f32.gmra.mrb[34].mxu0 %v18385_v18  ;;  %v19203_v18 = vand.u32 4294901760, %v18064_v1  ;;  %v19209_v1 = vand.u32 4294901760, %v18142_v57  ;;  %v10672_v57 = vld [vmem:[%s18999_s11 + $0x28] sm:$0xff] }
0x1059   : > { %15294 = vmatpush1.bf16.msra.mxu0 %v18067_v45  ;;  %10339 = vmatprep.mubr.f32.mxu0 %v19180_v2 }
0x105a   : > { %15295 = vmatprep.subr.bf16.mxu0 %v19168_v4  ;;  %v15341_v38 = vpack.c.bf16 %v19209_v1, %v19208_v54 }
0x105d   : > { %15297 = vmatpush1.bf16.msra.mxu0 %v18071_v60 }
0x105e   : > { %15298 = vmatprep.subr.bf16.mxu0 %v19168_v4 }
0x1061   : > { %15300 = vmatpush1.bf16.msra.mxu0 %v18079_v32 }
0x1062   : > { %15301 = vmatprep.subr.bf16.mxu0 %v19168_v4 }
0x1065   : > { %15303 = vmatpush1.bf16.msra.mxu0 %v19181_v22 }
0x1066   : > { %15304 = vmatprep.subr.bf16.mxu0 %v19168_v4 }
0x1069   : > { %15306 = vmatpush1.bf16.msra.mxu0 %v19182_v31 }
0x106a   : > { %15307 = vmatprep.subr.bf16.mxu0 %v19168_v4 }
0x106d   : > { %15309 = vmatpush1.bf16.msra.mxu0 %v19183_v50 }
0x106e   : > { %15310 = vmatprep.subr.bf16.mxu0 %v19168_v4 }
0x1071   : > { %15312 = vmatpush1.bf16.msra.mxu0 %v19184_v47 }
0x1072   : > { %15313 = vmatprep.subr.bf16.mxu0 %v19168_v4 }
0x1074   : > { %10343 = vmatmul.mubr.f32.vlgmr.msra.gmra.mrb[28].mxu0 %v19187_v35 }
0x1075   : > { %10350 = vmatprep.mubr.f32.mxu0 %v19188_v14  ;;  %15315 = vmatpush1.bf16.msra.mxu0 %v15314_v59 }
0x1076   : > { %15316 = vmatprep.subr.bf16.mxu0 %v19168_v4 }
0x1078   : > { %10354 = vmatmul.mubr.f32.gmra.mrb[30].mxu0 %v19191_v13 }
0x1079   : > { %10361 = vmatprep.mubr.f32.mxu0 %v19192_v58  ;;  %15318 = vmatpush1.bf16.msra.mxu0 %v15317_v62 }
0x107a   : > { %15319 = vmatprep.subr.bf16.mxu0 %v19168_v4 }
0x107c   : > { %10365 = vmatmul.mubr.f32.gmra.mrb[32].mxu0 %v9895_v23  ;;  %v15329_v23 = vpack.c.bf16 %v19201_v25, %v19200_v40 }
0x107d   : > { %10372 = vmatprep.mubr.f32.mxu0 %v19195_v30  ;;  %15321 = vmatpush1.bf16.msra.mxu0 %v15320_v43 }
0x107e   : > { %15322 = vmatprep.subr.bf16.mxu0 %v19168_v4 }
0x1080   : > { %10376 = vmatmul.mubr.f32.gmra.mrb[34].mxu0 %v9910_v0  ;;  %v15332_v0 = vpack.c.bf16 %v19203_v18, %v19202_v52 }
0x1081   : > { %15324 = vmatpush1.bf16.msra.mxu0 %v15323_v11  ;;  %10506 = vmatprep.mubr.f32.mxu0 %v18280_v36 }
0x1082   : > { %15325 = vmatprep.subr.bf16.mxu0 %v19168_v4 }
0x1085   : > { %15327 = vmatpush1.bf16.msra.mxu0 %v15326_v16 }
0x1086   : > { %15328 = vmatprep.subr.bf16.mxu0 %v19168_v4 }
0x1089   : > { %15330 = vmatpush1.bf16.msra.mxu0 %v15329_v23 }
0x108a   : > { %15331 = vmatprep.subr.bf16.mxu0 %v19168_v4 }
0x108d   : > { %15333 = vmatpush1.bf16.msra.mxu0 %v15332_v0 }
0x108e   : > { %15334 = vmatprep.subr.bf16.mxu0 %v19168_v4 }
0x1091   : > { %15336 = vmatpush1.bf16.msra.mxu0 %v15335_v15 }
0x1092   : > { %15337 = vmatprep.subr.bf16.mxu0 %v19168_v4 }
0x1095   : > { %15339 = vmatpush1.bf16.msra.mxu0 %v15338_v26 }
0x1096   : > { %15340 = vmatprep.subr.bf16.mxu0 %v19168_v4 }
0x1099   : > { %15342 = vmatpush1.bf16.msra.mxu0 %v15341_v38 }
0x109a   : > { %15343 = vmatprep.subr.bf16.mxu0 %v19168_v4 }
0x109c   : > { %10508 = vmatmul.mubr.f32.vlgmr.msra.gmra.mrb[28].mxu0 %v18316_v9 }
0x109d   : > { %10513 = vmatprep.mubr.f32.mxu0 %v18304_v29  ;;  %15345 = vmatpush1.bf16.msra.mxu0 %v18013_v3  ;;  %v10667_v3 = vld [vmem:[%s18999_s11] sm:$0xff] }
0x109e   : > { %15346 = vmatprep.subr.bf16.mxu0 %v19168_v4 }
0x10a0   : > { %10515 = vmatmul.mubr.f32.gmra.mrb[30].mxu0 %v18339_v21 }
0x10a1   : > { %10520 = vmatprep.mubr.f32.mxu0 %v18314_v44  ;;  %15348 = vmatpush1.bf16.msra.mxu0 %v18030_v6  ;;  %v10668_v6 = vld [vmem:[%s18999_s11 + $0x8] sm:$0xff] }
0x10a2   : > { %15349 = vmatprep.subr.bf16.mxu0 %v19168_v4 }
0x10a4   : > { %10522 = vmatmul.mubr.f32.gmra.mrb[32].mxu0 %v18354_v5 }
0x10a5   : > { %10527 = vmatprep.mubr.f32.mxu0 %v18329_v39  ;;  %15351 = vmatpush1.bf16.msra.mxu0 %v18057_v28  ;;  %v10695_v28 = vand.u32 4294901760, %v10667_v3 }
0x10a6   : > { %15352 = vmatprep.subr.bf16.mxu0 %v19168_v4 }
0x10a8   : > { %10529 = vmatmul.mubr.f32.gmra.mrb[34].mxu0 %v18380_v56 }
0x10a9   : > { %15354 = vmatpush1.bf16.msra.mxu0 %v18067_v45  ;;  %10619 = vmatprep.mubr.f32.mxu0 %v18280_v36  ;;  %v10698_v45 = vand.u32 4294901760, %v10668_v6  ;;  %v10707_v36 = vand.u32 4294901760, %v10671_v10 }
0x10aa   : > { %15355 = vmatprep.subr.bf16.mxu0 %v19168_v4 }
0x10ab   : > { %v10837_v20 = vsub.f32 %v10671_v10, %v10707_v36  ;;  %v10652_v10 = vpop.permute.xlu0 %10651 }
0x10ad   : > { %15357 = vmatpush1.bf16.msra.mxu0 %v18071_v60  ;;  %v18588_v60 = vpack.c.bf16 %v10698_v45, %v10695_v28  ;;  %v10838_v7 = vand.u32 4294901760, %v10837_v20 }
0x10ae   : > { %15358 = vmatprep.subr.bf16.mxu0 %v19168_v4 }
0x10af   : > { %15374 = vmatprep.subr.bf16.mxu1 %v18588_v60  ;;  %v10839_v30 = vsub.f32 %v10837_v20, %v10838_v7 }
0x10b0   : > { %15376 = vmatpush3.bf16.msra.mxu1 %v18588_v60 }
0x10b1   : > { %15360 = vmatpush1.bf16.msra.mxu0 %v18079_v32  ;;  %v10669_v32 = vld [vmem:[%s18999_s11 + $0x10] sm:$0xff]  ;;  %v10840_v46 = vand.u32 4294901760, %v10839_v30 }
0x10b2   : > { %15361 = vmatprep.subr.bf16.mxu0 %v19168_v4  ;;  %v10701_v17 = vand.u32 4294901760, %v10669_v32 }
0x10b4   : > { %v18598_v63 = vpack.c.bf16 %v10704_v61, %v10701_v17 }
0x10b5   : > { %15363 = vmatpush1.bf16.msra.mxu0 %v19181_v22 }
0x10b6   : > { %15364 = vmatprep.subr.bf16.mxu0 %v19168_v4  ;;  %15378 = vmatprep.subr.bf16.mxu1 %v18598_v63 }
0x10b7   : > { %15380 = vmatpush3.bf16.msra.mxu1 %v18598_v63 }
0x10b9   : > { %15366 = vmatpush1.bf16.msra.mxu0 %v19182_v31  ;;  %v10823_v31 = vsub.f32 %v10669_v32, %v10701_v17  ;;  %v12256_v32 = vld [vmem:[%s18998_s10] ss:$0 sm:$0xff] }
0x10ba   : > { %15367 = vmatprep.subr.bf16.mxu0 %v19168_v4 }
0x10bb   : > { %v10824_v19 = vand.u32 4294901760, %v10823_v31 }
0x10bd   : > { %15369 = vmatpush1.bf16.msra.mxu0 %v19183_v50  ;;  %v10830_v50 = vsub.f32 %v10670_v49, %v10704_v61  ;;  %v10825_v14 = vsub.f32 %v10823_v31, %v10824_v19 }
0x10be   : > { %15370 = vmatprep.subr.bf16.mxu0 %v19168_v4 }
0x10bf   : > { %v10831_v59 = vand.u32 4294901760, %v10830_v50  ;;  %v10826_v13 = vand.u32 4294901760, %v10825_v14  ;;  %v18633_v15 = vpack.c.bf16 %v10830_v50, %v10823_v31 }
0x10c1   : > { %15372 = vmatpush1.bf16.msra.mxu0 %v19184_v47  ;;  %v10832_v53 = vsub.f32 %v10830_v50, %v10831_v59  ;;  %v18641_v54 = vpack.c.bf16 %v10831_v59, %v10824_v19 }
0x10c3   : > { %v10833_v58 = vand.u32 4294901760, %v10832_v53 }
0x10c4   : > { %10621 = vmatmul.mubr.f32.vlgmr.msra.gmra.mrb[28].mxu0 %v18316_v9  ;;  %v10710_v9 = vand.u32 4294901760, %v10672_v57 }
0x10c5   : > { %10626 = vmatprep.mubr.f32.mxu0 %v18304_v29  ;;  %v10809_v29 = vsub.f32 %v10667_v3, %v10695_v28  ;;  %v18625_v43 = vpack.c.bf16 %v10833_v58, %v10826_v13  ;;  %v18652_v3 = vld [vmem:[%s515_s26 + $0x8] sm:$0xff]  ;;  %v18660_v28 = vld [vmem:[%s515_s26 + $0x18] sm:$0xff] }
0x10c6   : > { %v10844_v62 = vsub.f32 %v10672_v57, %v10710_v9  ;;  %11406 = vrot.lane.b32.xlu1 %v18652_v3, %s19156_s25 }
0x10c7   : > { %v10810_v12 = vand.u32 4294901760, %v10809_v29 }
0x10c8   : > { %10628 = vmatmul.mubr.f32.gmra.mrb[30].mxu0 %v18339_v21  ;;  %v10673_v21 = vld [vmem:[%s18999_s11 + $0x30] sm:$0xff]  ;;  %v10845_v42 = vand.u32 4294901760, %v10844_v62  ;;  %v18635_v27 = vpack.c.bf16 %v10844_v62, %v10837_v20 }
0x10c9   : > { %10633 = vmatprep.mubr.f32.mxu0 %v18314_v44  ;;  %v18608_v44 = vpack.c.bf16 %v10710_v9, %v10707_v36  ;;  %v10713_v4 = vand.u32 4294901760, %v10673_v21  ;;  %v10811_v2 = vsub.f32 %v10809_v29, %v10810_v12 }
0x10ca   : > { %v10846_v24 = vsub.f32 %v10844_v62, %v10845_v42  ;;  %v18643_v1 = vpack.c.bf16 %v10845_v42, %v10838_v7  ;;  %11410 = vrot.lane.b32.xlu1 %v18660_v28, %s19156_s25 }
0x10cb   : > { %15382 = vmatprep.subr.bf16.mxu1 %v18608_v44  ;;  %v10812_v47 = vand.u32 4294901760, %v10811_v2  ;;  %v10851_v48 = vsub.f32 %v10673_v21, %v10713_v4 }
0x10cc   : > { %10635 = vmatmul.mubr.f32.gmra.mrb[32].mxu0 %v18354_v5  ;;  %v10674_v5 = vld [vmem:[%s18999_s11 + $0x38] sm:$0xff]  ;;  %15384 = vmatpush3.bf16.msra.mxu1 %v18608_v44  ;;  %v10847_v51 = vand.u32 4294901760, %v10846_v24 }
0x10cd   : > { %10640 = vmatprep.mubr.f32.mxu0 %v18329_v39  ;;  %v10816_v39 = vsub.f32 %v10668_v6, %v10698_v45  ;;  %v10852_v16 = vand.u32 4294901760, %v10851_v48  ;;  %v18654_v6 = vld [vmem:[%s515_s26] sm:$0xff]  ;;  %v18662_v45 = vld [vmem:[%s515_s26 + $0x10] sm:$0xff]  ;;  %s504_s26 = scalar_lea.vmem [#allocation2], %s12249_s30 }
0x10ce   : > { %v18627_v25 = vpack.c.bf16 %v10847_v51, %v10840_v46  ;;  %11404 = vrot.lane.b32.xlu0 %v18654_v6, %s19156_s25  ;;  %s12171_s27 = sshll.u32 %s504_s26, 4  ;;  %s18940_s27 = int_to_ptr.vmem [resolvable:$true] %s12171_s27 }
0x10cf   : > { %v10817_v41 = vand.u32 4294901760, %v10816_v39  ;;  %v10853_v23 = vsub.f32 %v10851_v48, %v10852_v16  ;;  %v18631_v55 = vpack.c.bf16 %v10816_v39, %v10809_v29  ;;  %s16125_s16 = scalar_lea.vmem %s18940_s27, 512  ;;  %p16132_p0 = scmp.lt.s32.totalorder %s18940_s27, %s16130_s23 }
0x10d0   : > { %10642 = vmatmul.mubr.f32.gmra.mrb[34].mxu0 %v18380_v56  ;;  %v10716_v56 = vand.u32 4294901760, %v10674_v5  ;;  %p16126_p11 = scmp.ne.s32.totalorder %s18940_s27, %s16125_s16  ;;  %p16133_p1 = scmp.lt.s32.totalorder %s16131_s20, %s16125_s16 }
0x10d1   : > { %v10818_v22 = vsub.f32 %v10816_v39, %v10817_v41  ;;  %v10854_v18 = vand.u32 4294901760, %v10853_v23  ;;  %v18639_v26 = vpack.c.bf16 %v10817_v41, %v10810_v12 }
0x10d2   : > { %v18618_v33 = vpack.c.bf16 %v10716_v56, %v10713_v4  ;;  %v10858_v11 = vsub.f32 %v10674_v5, %v10716_v56  ;;  %11408 = vrot.lane.b32.xlu0 %v18662_v45, %s19156_s25  ;;  %v10654_v5 = vpop.permute.xlu1 %10653  ;;  %p16127_p12 = pnand %p16126_p11, %p16325_p5  ;;  %p16134_p2 = por %p16133_p1, %p16132_p0 }
0x10d3   : > { %v10819_v34 = vand.u32 4294901760, %v10818_v22 }
0x10d4   : > { %15386 = vmatprep.subr.bf16.mxu1 %v18618_v33  ;;  %v10859_v40 = vand.u32 4294901760, %v10858_v11  ;;  %v18637_v37 = vpack.c.bf16 %v10858_v11, %v10851_v48  ;;  %p16128_p13 = pneg %p16127_p12 }
0x10d5   : > { %15388 = vmatpush3.bf16.msra.mxu1 %v18618_v33  ;;  %v18622_v35 = vpack.c.bf16 %v10819_v34, %v10812_v47  ;;  %v10656_v47 = vpop.permute.xlu0 %10655 }
0x10d6   : > { %v10860_v52 = vsub.f32 %v10858_v11, %v10859_v40  ;;  %v18645_v38 = vpack.c.bf16 %v10859_v40, %v10852_v16  ;;  %v10658_v42 = vpop.permute.xlu1 %10657  ;;  %p16135_p3 = pnand %p16134_p2, %p16128_p13 }
0x10d7   : > { %15390 = vmatprep.subr.bf16.mxu1 %v18622_v35 }
0x10d8   : > { %v10861_v0 = vand.u32 4294901760, %v10860_v52 }
0x10da   : > { %v18629_v8 = vpack.c.bf16 %v10861_v0, %v10854_v18 }
0x1197   : > { %v10622_v49 = vpop.f32.mrb[28].mxu0 }
0x1198   : > { %v18671_v17 = vadd.f32 %v12256_v32, %v10622_v49  ;;  %v10624_v61 = vpop.f32.mrb[29].mxu0 }
0x1199   : > { %v11426_v61 = vld [vmem:[%s19001_s13 + $0x30] sm:$0xff] }
0x119a   : > { %v10663_v57 = vsel %vm537_vm0, %v18671_v17, %v10652_v10  ;;  %v11427_v10 = vld [vmem:[%s19001_s13 + $0x38] sm:$0xff] }
0x119b   : > { %v10683_v36 = vsel %vm9724_vm4, %v10663_v57, 0  ;;  %v10629_v9 = vpop.f32.mrb[30].mxu0  ;;  %v11466_v57 = vand.u32 4294901760, %v11426_v61 }
0x119c   : > { %v18676_v29 = vand.u32 4294901760, %v10683_v36  ;;  %v18678_v39 = vadd.f32 %v12256_v32, %v10629_v9  ;;  %v10631_v21 = vpop.f32.mrb[31].mxu0 }
0x119e   : > { %v18681_v4 = vsub.f32 %v10683_v36, %v18676_v29  ;;  %v10664_v56 = vsel %vm537_vm0, %v18678_v39, %v10654_v5  ;;  %v11469_v36 = vand.u32 4294901760, %v11427_v10 }
0x119f   : > { %v10686_v12 = vsel %vm9724_vm4, %v10664_v56, 0  ;;  %v10636_v41 = vpop.f32.mrb[32].mxu0 }
0x11a0   : > { %v18686_v2 = vand.u32 4294901760, %v10686_v12  ;;  %v18688_v22 = vadd.f32 %v12256_v32, %v10636_v41  ;;  %v10638_v31 = vpop.f32.mrb[33].mxu0  ;;  %v10769_v50 = vand.u32 4294901760, %v18681_v4  ;;  %v18795_v21 = vpack.c.bf16 %v11469_v36, %v11466_v57 }
0x11a2   : > { %v10778_v34 = vsub.f32 %v10686_v12, %v18686_v2  ;;  %v10665_v19 = vsel %vm537_vm0, %v18688_v22, %v10656_v47  ;;  %v10770_v59 = vsub.f32 %v18681_v4, %v10769_v50 }
0x11a3   : > { %v10689_v14 = vsel %vm9724_vm4, %v10665_v19, 0  ;;  %v10643_v53 = vpop.f32.mrb[34].mxu0 }
0x11a4   : > { %v10779_v20 = vand.u32 4294901760, %v10778_v34  ;;  %v18696_v62 = vand.u32 4294901760, %v10689_v14  ;;  %v18698_v13 = vadd.f32 %v12256_v32, %v10643_v53  ;;  %v10645_v58 = vpop.f32.mrb[35].mxu0  ;;  %v10771_v7 = vand.u32 4294901760, %v10770_v59 }
0x11a6   : > { %v10780_v30 = vsub.f32 %v10778_v34, %v10779_v20  ;;  %v10788_v24 = vsub.f32 %v10689_v14, %v18696_v62  ;;  %v10666_v48 = vsel %vm537_vm0, %v18698_v13, %v10658_v42  ;;  %14273 = vmatprep.mubr.f32.mxu1 %v10771_v7 }
0x11a7   : > { %v10692_v11 = vsel %vm9724_vm4, %v10666_v48, 0  ;;  %v11611_v48 = vsub.f32 %v11427_v10, %v11469_v36 }
0x11a8   : > { %v18704_v46 = vand.u32 4294901760, %v10692_v11  ;;  %v10781_v51 = vand.u32 4294901760, %v10780_v30  ;;  %v10789_v16 = vand.u32 4294901760, %v10788_v24 }
0x11aa   : > { %v10798_v40 = vsub.f32 %v10692_v11, %v18704_v46  ;;  %14274 = vmatmul.mubr.f32.vlgmr.msra.gmra.mrb[36].mxu1 %v10781_v51  ;;  %v10790_v23 = vsub.f32 %v10788_v24, %v10789_v16 }
0x11ab   : > { %15392 = vmatpush3.bf16.msra.mxu1 %v18622_v35 }
0x11ac   : > { %15394 = vmatprep.subr.bf16.mxu1 %v18625_v43  ;;  %v10791_v52 = vand.u32 4294901760, %v10790_v23  ;;  %v10799_v18 = vand.u32 4294901760, %v10798_v40 }
0x11ae   : > { %14276 = vmatprep.mubr.f32.mxu1 %v10791_v52  ;;  %v10800_v0 = vsub.f32 %v10798_v40, %v10799_v18 }
0x11af   : > { %15396 = vmatpush3.bf16.msra.mxu1 %v18625_v43 }
0x11b0   : > { %15398 = vmatprep.subr.bf16.mxu1 %v18627_v25  ;;  %v10801_v32 = vand.u32 4294901760, %v10800_v0 }
0x11b2   : > { %14277 = vmatmul.mubr.f32.gmra.mrb[38].mxu1 %v10801_v32 }
0x11b3   : > { %15400 = vmatpush3.bf16.msra.mxu1 %v18627_v25  ;;  %14295 = vmatprep.mubr.f32.mxu1 %v18676_v29  ;;  %v11423_v25 = vld [vmem:[%s19001_s13 + $0x18] sm:$0xff] }
0x11b4   : > { %15402 = vmatprep.subr.bf16.mxu1 %v18629_v8 }
0x11b7   : > { %15404 = vmatpush3.bf16.msra.mxu1 %v18629_v8 }
0x11b8   : > { %15406 = vmatprep.subr.bf16.mxu1 %v18631_v55 }
0x11ba   : > { %14296 = vmatmul.mubr.f32.vlgmr.msra.gmra.mrb[36].mxu1 %v18686_v2 }
0x11bb   : > { %14298 = vmatprep.mubr.f32.mxu1 %v18696_v62  ;;  %15408 = vmatpush3.bf16.msra.mxu1 %v18631_v55  ;;  %v11457_v55 = vand.u32 4294901760, %v11423_v25 }
0x11bc   : > { %15410 = vmatprep.subr.bf16.mxu1 %v18633_v15 }
0x11bd   : > { %v11583_v12 = vsub.f32 %v11423_v25, %v11457_v55 }
0x11be   : > { %14299 = vmatmul.mubr.f32.gmra.mrb[38].mxu1 %v18704_v46 }
0x11bf   : > { %15412 = vmatpush3.bf16.msra.mxu1 %v18633_v15  ;;  %14317 = vmatprep.mubr.f32.mxu1 %v18681_v4 }
0x11c0   : > { %15414 = vmatprep.subr.bf16.mxu1 %v18635_v27 }
0x11c3   : > { %15416 = vmatpush3.bf16.msra.mxu1 %v18635_v27  ;;  %v11424_v27 = vld [vmem:[%s19001_s13 + $0x20] sm:$0xff] }
0x11c4   : > { %15418 = vmatprep.subr.bf16.mxu1 %v18637_v37 }
0x11c7   : > { %15420 = vmatpush3.bf16.msra.mxu1 %v18637_v37  ;;  %v11425_v37 = vld [vmem:[%s19001_s13 + $0x28] sm:$0xff] }
0x11c8   : > { %15422 = vmatprep.subr.bf16.mxu1 %v18588_v60 }
0x11ca   : > { %14318 = vmatmul.mubr.f32.vlgmr.msra.gmra.mrb[36].mxu1 %v10778_v34 }
0x11cb   : > { %14320 = vmatprep.mubr.f32.mxu1 %v10788_v24  ;;  %15424 = vmatpush3.bf16.msra.mxu1 %v18588_v60  ;;  %v11604_v24 = vsub.f32 %v11426_v61, %v11466_v57 }
0x11cc   : > { %15426 = vmatprep.subr.bf16.mxu1 %v18598_v63 }
0x11cd   : > { %v11605_v51 = vand.u32 4294901760, %v11604_v24 }
0x11ce   : > { %14321 = vmatmul.mubr.f32.gmra.mrb[38].mxu1 %v10798_v40 }
0x11cf   : > { %15428 = vmatpush3.bf16.msra.mxu1 %v18598_v63  ;;  %14339 = vmatprep.mubr.f32.mxu1 %v10769_v50  ;;  %v11584_v50 = vand.u32 4294901760, %v11583_v12  ;;  %v11606_v23 = vsub.f32 %v11604_v24, %v11605_v51 }
0x11d0   : > { %15430 = vmatprep.subr.bf16.mxu1 %v18608_v44 }
0x11d1   : > { %v11585_v19 = vsub.f32 %v11583_v12, %v11584_v50 }
0x11d3   : > { %15432 = vmatpush3.bf16.msra.mxu1 %v18608_v44 }
0x11d4   : > { %15434 = vmatprep.subr.bf16.mxu1 %v18618_v33 }
0x11d7   : > { %15436 = vmatpush3.bf16.msra.mxu1 %v18618_v33 }
0x11d8   : > { %15438 = vmatprep.subr.bf16.mxu1 %v18639_v26 }
0x11da   : > { %14340 = vmatmul.mubr.f32.vlgmr.msra.gmra.mrb[36].mxu1 %v10779_v20  ;;  %v11586_v20 = vand.u32 4294901760, %v11585_v19 }
0x11db   : > { %14342 = vmatprep.mubr.f32.mxu1 %v10789_v16  ;;  %15440 = vmatpush3.bf16.msra.mxu1 %v18639_v26  ;;  %v11460_v26 = vand.u32 4294901760, %v11424_v27  ;;  %v11612_v16 = vand.u32 4294901760, %v11611_v48 }
0x11dc   : > { %15442 = vmatprep.subr.bf16.mxu1 %v18641_v54 }
0x11dd   : > { %v11590_v59 = vsub.f32 %v11424_v27, %v11460_v26  ;;  %v11613_v52 = vsub.f32 %v11611_v48, %v11612_v16  ;;  %v12257_v27 = vld [vmem:[%s19000_s12] ss:$0 sm:$0xff] }
0x11de   : > { %14343 = vmatmul.mubr.f32.gmra.mrb[38].mxu1 %v10799_v18  ;;  %v11607_v18 = vand.u32 4294901760, %v11606_v23  ;;  %v19212_v23 = vld [vmem:[#allocation22_spill] sm:$0xff] }
0x11df   : > { %15444 = vmatpush3.bf16.msra.mxu1 %v18641_v54  ;;  %14361 = vmatprep.mubr.f32.mxu1 %v18676_v29  ;;  %v11463_v54 = vand.u32 4294901760, %v11425_v37  ;;  %v11614_v0 = vand.u32 4294901760, %v11613_v52 }
0x11e0   : > { %15446 = vmatprep.subr.bf16.mxu1 %v18643_v1 }
0x11e1   : > { %v11597_v14 = vsub.f32 %v11425_v37, %v11463_v54  ;;  %v18806_v32 = vpack.c.bf16 %v11614_v0, %v11607_v18 }
0x11e3   : > { %15448 = vmatpush3.bf16.msra.mxu1 %v18643_v1  ;;  %v18785_v1 = vpack.c.bf16 %v11463_v54, %v11460_v26  ;;  %v11598_v58 = vand.u32 4294901760, %v11597_v14 }
0x11e4   : > { %15450 = vmatprep.subr.bf16.mxu1 %v18645_v38 }
0x11e5   : > { %v11599_v30 = vsub.f32 %v11597_v14, %v11598_v58 }
0x11e7   : > { %15452 = vmatpush3.bf16.msra.mxu1 %v18645_v38 }
0x11e8   : > { %15454 = vmatprep.subr.bf16.mxu1 %v18588_v60 }
0x11ea   : > { %14362 = vmatmul.mubr.f32.vlgmr.msra.gmra.mrb[36].mxu1 %v18686_v2 }
0x11eb   : > { %14364 = vmatprep.mubr.f32.mxu1 %v18696_v62  ;;  %15456 = vmatpush3.bf16.msra.mxu1 %v18588_v60  ;;  %v11420_v60 = vld [vmem:[%s19001_s13] sm:$0xff] }
0x11ec   : > { %15458 = vmatprep.subr.bf16.mxu1 %v18598_v63  ;;  %v11448_v35 = vand.u32 4294901760, %v11420_v60 }
0x11ee   : > { %14365 = vmatmul.mubr.f32.gmra.mrb[38].mxu1 %v18704_v46  ;;  %v11562_v38 = vsub.f32 %v11420_v60, %v11448_v35 }
0x11ef   : > { %15460 = vmatpush3.bf16.msra.mxu1 %v18598_v63  ;;  %14383 = vmatprep.mubr.f32.mxu1 %v18676_v29  ;;  %v11421_v63 = vld [vmem:[%s19001_s13 + $0x8] sm:$0xff] }
0x11f0   : > { %15462 = vmatprep.subr.bf16.mxu1 %v18608_v44  ;;  %v11563_v9 = vand.u32 4294901760, %v11562_v38 }
0x11f2   : > { %v11564_v5 = vsub.f32 %v11562_v38, %v11563_v9 }
0x11f3   : > { %15464 = vmatpush3.bf16.msra.mxu1 %v18608_v44  ;;  %v11451_v44 = vand.u32 4294901760, %v11421_v63 }
0x11f4   : > { %15466 = vmatprep.subr.bf16.mxu1 %v18618_v33  ;;  %v11565_v41 = vand.u32 4294901760, %v11564_v5 }
0x11f5   : > { %v18765_v43 = vpack.c.bf16 %v11451_v44, %v11448_v35  ;;  %v11569_v49 = vsub.f32 %v11421_v63, %v11451_v44  ;;  %v18812_v35 = vpack.c.bf16 %v11597_v14, %v11590_v59  ;;  %v18814_v44 = vpack.c.bf16 %v11611_v48, %v11604_v24  ;;  %v19211_v48 = vld [vmem:[#allocation8_spill] sm:$0xff] }
0x11f7   : > { %15468 = vmatpush3.bf16.msra.mxu1 %v18618_v33  ;;  %v11422_v33 = vld [vmem:[%s19001_s13 + $0x10] sm:$0xff]  ;;  %v11570_v29 = vand.u32 4294901760, %v11569_v49  ;;  %v18808_v60 = vpack.c.bf16 %v11569_v49, %v11562_v38 }
0x11f8   : > { %15470 = vmatprep.subr.bf16.mxu1 %v18765_v43  ;;  %v11454_v8 = vand.u32 4294901760, %v11422_v33 }
0x11f9   : > { %v11571_v4 = vsub.f32 %v11569_v49, %v11570_v29 }
0x11fa   : > { %14384 = vmatmul.mubr.f32.vlgmr.msra.gmra.mrb[36].mxu1 %v18686_v2  ;;  %v18775_v15 = vpack.c.bf16 %v11457_v55, %v11454_v8  ;;  %v11576_v56 = vsub.f32 %v11422_v33, %v11454_v8  ;;  %v18816_v33 = vpack.c.bf16 %v11570_v29, %v11563_v9  ;;  %v18822_v55 = vpack.c.bf16 %v11612_v16, %v11605_v51 }
0x11fb   : > { %14386 = vmatprep.mubr.f32.mxu1 %v18696_v62  ;;  %15472 = vmatpush3.bf16.msra.mxu1 %v18765_v43  ;;  %v11572_v2 = vand.u32 4294901760, %v11571_v4  ;;  %v11591_v62 = vand.u32 4294901760, %v11590_v59 }
0x11fc   : > { %15474 = vmatprep.subr.bf16.mxu1 %v18775_v15  ;;  %v11577_v31 = vand.u32 4294901760, %v11576_v56  ;;  %v18810_v63 = vpack.c.bf16 %v11583_v12, %v11576_v56 }
0x11fd   : > { %v18799_v47 = vpack.c.bf16 %v11572_v2, %v11565_v41  ;;  %v11592_v42 = vsub.f32 %v11590_v59, %v11591_v62  ;;  %v18820_v8 = vpack.c.bf16 %v11598_v58, %v11591_v62 }
0x11fe   : > { %14387 = vmatmul.mubr.f32.gmra.mrb[38].mxu1 %v18704_v46  ;;  %v11578_v34 = vsub.f32 %v11576_v56, %v11577_v31  ;;  %v11600_v46 = vand.u32 4294901760, %v11599_v30  ;;  %v18818_v25 = vpack.c.bf16 %v11584_v50, %v11577_v31 }
0x11ff   : > { %15476 = vmatpush3.bf16.msra.mxu1 %v18775_v15  ;;  %v11593_v11 = vand.u32 4294901760, %v11592_v42  ;;  %v11407_v42 = vpop.permute.xlu1 %11406 }
0x1200   : > { %15478 = vmatprep.subr.bf16.mxu1 %v18785_v1  ;;  %v11579_v53 = vand.u32 4294901760, %v11578_v34 }
0x1201   : > { %v18804_v40 = vpack.c.bf16 %v11600_v46, %v11593_v11  ;;  %v11405_v46 = vpop.permute.xlu0 %11404 }
0x1202   : > { %v18802_v7 = vpack.c.bf16 %v11586_v20, %v11579_v53 }
0x1203   : > { %15480 = vmatpush3.bf16.msra.mxu1 %v18785_v1 }
0x1204   : > { %15482 = vmatprep.subr.bf16.mxu1 %v18795_v21 }
0x1207   : > { %15484 = vmatpush3.bf16.msra.mxu1 %v18795_v21 }
0x1208   : > { %15486 = vmatprep.subr.bf16.mxu1 %v18799_v47 }
0x12cd   : > { %v14385_v37 = vpop.f32.mrb[36].mxu1 }
0x12ce   : > { %v15601_v26 = vadd.f32 %v14385_v37, %v12257_v27  ;;  %v11338_v54 = vpop.f32.mrb[37].mxu1 }
0x12cf   : > { %v15602_v38 = vadd.f32 %v12257_v27, %v11338_v54 }
0x12d0   : > { %v11361_v49 = vsub.f32 0.0, %v15601_v26 }
0x12d1   : > { %v11360_v61 = vsub.f32 0.0, %v15602_v38  ;;  %v14388_v10 = vpop.f32.mrb[38].mxu1  ;;  %v19213_v38 = vld [vmem:[#allocation9_spill] sm:$0xff] }
0x12d2   : > { %v11366_v57 = vmul.f32 1.442695, %v11361_v49  ;;  %v15603_v36 = vadd.f32 %v14388_v10, %v12257_v27  ;;  %v11350_v9 = vpop.f32.mrb[39].mxu1  ;;  %v11411_v10 = vpop.permute.xlu1 %11410 }
0x12d3   : > { %v11364_v29 = vmul.f32 1.442695, %v11360_v61  ;;  %v15604_v5 = vadd.f32 %v12257_v27, %v11350_v9 }
0x12d4   : > { %16081 = vpow2.f32 %v11366_v57  ;;  %v11363_v4 = vsub.f32 0.0, %v15603_v36  ;;  %v19214_v36 = vld [vmem:[#allocation23_spill] sm:$0xff] }
0x12d5   : > { %16083 = vpow2.f32 %v11364_v29  ;;  %v11362_v56 = vsub.f32 0.0, %v15604_v5 }
0x12d6   : > { %v11370_v12 = vmul.f32 1.442695, %v11363_v4 }
0x12d7   : > { %v11368_v41 = vmul.f32 1.442695, %v11362_v56  ;;  %v11409_v56 = vpop.permute.xlu0 %11408 }
0x12d8   : > { %16085 = vpow2.f32 %v11370_v12 }
0x12d9   : > { %16087 = vpow2.f32 %v11368_v41 }
0x12de   : > { %v16082_v2 = vpop.eup %16081 }
0x12df   : > { %v16084_v31 = vpop.eup %16083  ;;  %v11373_v50 = vadd.f32 1.0, %v16082_v2 }
0x12e0   : > { %v11372_v34 = vadd.f32 1.0, %v16084_v31 }
0x12e1   : > { %16089 = vrcp.f32 %v11373_v50 }
0x12e2   : > { %v16086_v19 = vpop.eup %16085  ;;  %16091 = vrcp.f32 %v11372_v34 }
0x12e3   : > { %v16088_v59 = vpop.eup %16087  ;;  %v11375_v14 = vadd.f32 1.0, %v16086_v19 }
0x12e4   : > { %v11374_v53 = vadd.f32 1.0, %v16088_v59 }
0x12e5   : > { %16093 = vrcp.f32 %v11375_v14 }
0x12e6   : > { %16095 = vrcp.f32 %v11374_v53 }
0x12eb   : > { %v16090_v20 = vpop.eup %16089 }
0x12ec   : > { %v16092_v62 = vpop.eup %16091  ;;  %v11389_v58 = vsub.f32 1.0, %v16090_v20  ;;  %v11385_v24 = vmul.f32 %v16090_v20, %v18678_v39 }
0x12ed   : > { %v11388_v30 = vsub.f32 1.0, %v16092_v62  ;;  %v11384_v16 = vmul.f32 %v16092_v62, %v18671_v17 }
0x12ee   : > { %v11393_v11 = vmul.f32 %v19211_v48, %v11389_v58 }
0x12ef   : > { %v16094_v51 = vpop.eup %16093  ;;  %v11392_v52 = vmul.f32 %v19212_v23, %v11388_v30 }
0x12f0   : > { %v16096_v18 = vpop.eup %16095  ;;  %v18831_v0 = vadd.f32 %v11393_v11, %v11385_v24  ;;  %v11391_v27 = vsub.f32 1.0, %v16094_v51  ;;  %v11387_v39 = vmul.f32 %v16094_v51, %v18698_v13 }
0x12f1   : > { %v18833_v37 = vadd.f32 %v11392_v52, %v11384_v16  ;;  %v11390_v26 = vsub.f32 1.0, %v16096_v18  ;;  %v11386_v57 = vmul.f32 %v16096_v18, %v18688_v22 }
0x12f2   : > { %v11417_v54 = vsel %vm537_vm0, %v18831_v0, %v11407_v42  ;;  %v11395_v49 = vmul.f32 %v19213_v38, %v11391_v27 }
0x12f3   : > { %v11439_v61 = vsel %vm9724_vm4, %v11417_v54, 0  ;;  %v11416_v17 = vsel %vm537_vm0, %v18833_v37, %v11405_v46  ;;  %v11394_v9 = vmul.f32 %v19214_v36, %v11390_v26 }
0x12f4   : > { %v18844_v29 = vand.u32 4294901760, %v11439_v61  ;;  %v11436_v5 = vsel %vm9724_vm4, %v11416_v17, 0  ;;  %v18847_v4 = vadd.f32 %v11395_v49, %v11387_v39 }
0x12f5   : > { %v18849_v13 = vand.u32 4294901760, %v11436_v5  ;;  %v18851_v12 = vadd.f32 %v11394_v9, %v11386_v57 }
0x12f6   : > { %v11531_v41 = vsub.f32 %v11439_v61, %v18844_v29  ;;  %v11419_v2 = vsel %vm537_vm0, %v18847_v4, %v11411_v10 }
0x12f7   : > { %v11521_v22 = vsub.f32 %v11436_v5, %v18849_v13  ;;  %v11445_v31 = vsel %vm9724_vm4, %v11419_v2, 0  ;;  %v11418_v50 = vsel %vm537_vm0, %v18851_v12, %v11409_v56 }
0x12f8   : > { %v11532_v34 = vand.u32 4294901760, %v11531_v41  ;;  %v18860_v19 = vand.u32 4294901760, %v11445_v31  ;;  %v11442_v59 = vsel %vm9724_vm4, %v11418_v50, 0 }
0x12f9   : > { %v18863_v14 = vand.u32 4294901760, %v11442_v59  ;;  %v11522_v53 = vand.u32 4294901760, %v11521_v22 }
0x12fa   : > { %v11533_v20 = vsub.f32 %v11531_v41, %v11532_v34  ;;  %v11551_v62 = vsub.f32 %v11445_v31, %v18860_v19 }
0x12fb   : > { %v11541_v58 = vsub.f32 %v11442_v59, %v18863_v14  ;;  %v11523_v42 = vsub.f32 %v11521_v22, %v11522_v53 }
0x12fc   : > { %v11552_v30 = vand.u32 4294901760, %v11551_v62  ;;  %v11534_v11 = vand.u32 4294901760, %v11533_v20 }
0x12fd   : > { %v11524_v24 = vand.u32 4294901760, %v11523_v42  ;;  %v11542_v48 = vand.u32 4294901760, %v11541_v58 }
0x12fe   : > { %v11553_v46 = vsub.f32 %v11551_v62, %v11552_v30 }
0x12ff   : > { %14405 = vmatprep.mubr.f32.mxu1 %v11524_v24  ;;  %v11543_v51 = vsub.f32 %v11541_v58, %v11542_v48 }
0x1300   : > { %14406 = vmatmul.mubr.f32.vlgmr.msra.gmra.mrb[40].mxu1 %v11534_v11  ;;  %v11554_v23 = vand.u32 4294901760, %v11553_v46 }
0x1301   : > { %15488 = vmatpush3.bf16.msra.mxu1 %v18799_v47  ;;  %v11544_v16 = vand.u32 4294901760, %v11543_v51 }
0x1302   : > { %15490 = vmatprep.subr.bf16.mxu1 %v18802_v7 }
0x1303   : > { %14408 = vmatprep.mubr.f32.mxu1 %v11544_v16 }
0x1304   : > { %14409 = vmatmul.mubr.f32.gmra.mrb[42].mxu1 %v11554_v23 }
0x1305   : > { %15492 = vmatpush3.bf16.msra.mxu1 %v18802_v7  ;;  %14427 = vmatprep.mubr.f32.mxu1 %v18849_v13 }
0x1306   : > { %15494 = vmatprep.subr.bf16.mxu1 %v18804_v40 }
0x1309   : > { %15496 = vmatpush3.bf16.msra.mxu1 %v18804_v40 }
0x130a   : > { %15498 = vmatprep.subr.bf16.mxu1 %v18806_v32 }
0x130d   : > { %15500 = vmatpush3.bf16.msra.mxu1 %v18806_v32 }
0x130e   : > { %15502 = vmatprep.subr.bf16.mxu1 %v18808_v60 }
0x1310   : > { %14428 = vmatmul.mubr.f32.vlgmr.msra.gmra.mrb[40].mxu1 %v18844_v29 }
0x1311   : > { %14430 = vmatprep.mubr.f32.mxu1 %v18863_v14  ;;  %15504 = vmatpush3.bf16.msra.mxu1 %v18808_v60 }
0x1312   : > { %15506 = vmatprep.subr.bf16.mxu1 %v18810_v63 }
0x1314   : > { %14431 = vmatmul.mubr.f32.gmra.mrb[42].mxu1 %v18860_v19 }
0x1315   : > { %15508 = vmatpush3.bf16.msra.mxu1 %v18810_v63  ;;  %14449 = vmatprep.mubr.f32.mxu1 %v11521_v22 }
0x1316   : > { %15510 = vmatprep.subr.bf16.mxu1 %v18812_v35 }
0x1319   : > { %15512 = vmatpush3.bf16.msra.mxu1 %v18812_v35 }
0x131a   : > { %15514 = vmatprep.subr.bf16.mxu1 %v18814_v44 }
0x131d   : > { %15516 = vmatpush3.bf16.msra.mxu1 %v18814_v44 }
0x131e   : > { %15518 = vmatprep.subr.bf16.mxu1 %v18765_v43 }
0x1320   : > { %14450 = vmatmul.mubr.f32.vlgmr.msra.gmra.mrb[40].mxu1 %v11531_v41 }
0x1321   : > { %14452 = vmatprep.mubr.f32.mxu1 %v11541_v58  ;;  %15520 = vmatpush3.bf16.msra.mxu1 %v18765_v43 }
0x1322   : > { %15522 = vmatprep.subr.bf16.mxu1 %v18775_v15 }
0x1324   : > { %14453 = vmatmul.mubr.f32.gmra.mrb[42].mxu1 %v11551_v62 }
0x1325   : > { %15524 = vmatpush3.bf16.msra.mxu1 %v18775_v15  ;;  %14471 = vmatprep.mubr.f32.mxu1 %v11522_v53 }
0x1326   : > { %15526 = vmatprep.subr.bf16.mxu1 %v18785_v1 }
0x1329   : > { %15528 = vmatpush3.bf16.msra.mxu1 %v18785_v1 }
0x132a   : > { %15530 = vmatprep.subr.bf16.mxu1 %v18795_v21 }
0x132d   : > { %15532 = vmatpush3.bf16.msra.mxu1 %v18795_v21 }
0x132e   : > { %15534 = vmatprep.subr.bf16.mxu1 %v18816_v33 }
0x1330   : > { %14472 = vmatmul.mubr.f32.vlgmr.msra.gmra.mrb[40].mxu1 %v11532_v34 }
0x1331   : > { %14474 = vmatprep.mubr.f32.mxu1 %v11542_v48  ;;  %15536 = vmatpush3.bf16.msra.mxu1 %v18816_v33 }
0x1332   : > { %15538 = vmatprep.subr.bf16.mxu1 %v18818_v25 }
0x1334   : > { %14475 = vmatmul.mubr.f32.gmra.mrb[42].mxu1 %v11552_v30 }
0x1335   : > { %15540 = vmatpush3.bf16.msra.mxu1 %v18818_v25  ;;  %14493 = vmatprep.mubr.f32.mxu1 %v18849_v13 }
0x1336   : > { %15542 = vmatprep.subr.bf16.mxu1 %v18820_v8 }
0x1339   : > { %15544 = vmatpush3.bf16.msra.mxu1 %v18820_v8 }
0x133a   : > { %15546 = vmatprep.subr.bf16.mxu1 %v18822_v55 }
0x133d   : > { %15548 = vmatpush3.bf16.msra.mxu1 %v18822_v55 }
0x133e   : > { %15550 = vmatprep.subr.bf16.mxu1 %v18765_v43 }
0x1340   : > { %14494 = vmatmul.mubr.f32.vlgmr.msra.gmra.mrb[40].mxu1 %v18844_v29 }
0x1341   : > { %14496 = vmatprep.mubr.f32.mxu1 %v18863_v14  ;;  %15552 = vmatpush3.bf16.msra.mxu1 %v18765_v43  ;;  %v12258_v43 = vld [vmem:[%s19002_s14] ss:$0 sm:$0xff] }
0x1342   : > { %15554 = vmatprep.subr.bf16.mxu1 %v18775_v15 }
0x1344   : > { %14497 = vmatmul.mubr.f32.gmra.mrb[42].mxu1 %v18860_v19 }
0x1345   : > { %15556 = vmatpush3.bf16.msra.mxu1 %v18775_v15  ;;  %14515 = vmatprep.mubr.f32.mxu1 %v18849_v13 }
0x1346   : > { %15558 = vmatprep.subr.bf16.mxu1 %v18785_v1 }
0x1349   : > { %15560 = vmatpush3.bf16.msra.mxu1 %v18785_v1 }
0x134a   : > { %15562 = vmatprep.subr.bf16.mxu1 %v18795_v21 }
0x134d   : > { %15564 = vmatpush3.bf16.msra.mxu1 %v18795_v21 }
0x1350   : > { %14516 = vmatmul.mubr.f32.vlgmr.msra.gmra.mrb[40].mxu1 %v18844_v29 }
0x1351   : > { %14518 = vmatprep.mubr.f32.mxu1 %v18863_v14 }
0x1354   : > { %14519 = vmatmul.mubr.f32.gmra.mrb[42].mxu1 %v18860_v19 }
0x1423   : > { %v14517_v15 = vpop.f32.mrb[40].mxu1 }
0x1424   : > { %v15605_v47 = vadd.f32 %v14517_v15, %v12258_v43  ;;  %v12091_v7 = vpop.f32.mrb[41].mxu1 }
0x1425   : > { %v15606_v40 = vadd.f32 %v12258_v43, %v12091_v7 }
0x1426   : > { %v12114_v32 = vsub.f32 0.0, %v15605_v47 }
0x1427   : > { %v12113_v1 = vsub.f32 0.0, %v15606_v40  ;;  %v14520_v60 = vpop.f32.mrb[42].mxu1 }
0x1428   : > { %v12119_v63 = vmul.f32 1.442695, %v12114_v32  ;;  %v15607_v35 = vadd.f32 %v14520_v60, %v12258_v43  ;;  %v12103_v21 = vpop.f32.mrb[43].mxu1 }
0x1429   : > { %v12117_v44 = vmul.f32 1.442695, %v12113_v1  ;;  %v15608_v33 = vadd.f32 %v12258_v43, %v12103_v21 }
0x142a   : > { %16097 = vpow2.f32 %v12119_v63  ;;  %v12116_v25 = vsub.f32 0.0, %v15607_v35 }
0x142b   : > { %16099 = vpow2.f32 %v12117_v44  ;;  %v12115_v8 = vsub.f32 0.0, %v15608_v33 }
0x142c   : > { %v12123_v55 = vmul.f32 1.442695, %v12116_v25 }
0x142d   : > { %v12121_v52 = vmul.f32 1.442695, %v12115_v8 }
0x142e   : > { %16101 = vpow2.f32 %v12123_v55 }
0x142f   : > { %16103 = vpow2.f32 %v12121_v52 }
0x1434   : > { %v16098_v18 = vpop.eup %16097 }
0x1435   : > { %v16100_v27 = vpop.eup %16099  ;;  %v12126_v26 = vadd.f32 1.0, %v16098_v18 }
0x1436   : > { %v12125_v54 = vadd.f32 1.0, %v16100_v27 }
0x1437   : > { %16105 = vrcp.f32 %v12126_v26 }
0x1438   : > { %v16102_v39 = vpop.eup %16101  ;;  %16107 = vrcp.f32 %v12125_v54 }
0x1439   : > { %v16104_v38 = vpop.eup %16103  ;;  %v12128_v49 = vadd.f32 1.0, %v16102_v39 }
0x143a   : > { %v12127_v61 = vadd.f32 1.0, %v16104_v38 }
0x143b   : > { %16109 = vrcp.f32 %v12128_v49 }
0x143c   : > { %16111 = vrcp.f32 %v12127_v61 }
0x1441   : > { %v16106_v17 = vpop.eup %16105 }
0x1442   : > { %v16108_v10 = vpop.eup %16107  ;;  %v12142_v57 = vsub.f32 1.0, %v16106_v17  ;;  %v12138_v9 = vmul.f32 %v16106_v17, %v18831_v0 }
0x1443   : > { %v12141_v36 = vsub.f32 1.0, %v16108_v10  ;;  %v12137_v56 = vmul.f32 %v16108_v10, %v18833_v37 }
0x1444   : > { %v12146_v29 = vmul.f32 %v12142_v57, %v18652_v3 }
0x1445   : > { %v16110_v5 = vpop.eup %16109  ;;  %v12145_v13 = vmul.f32 %v12141_v36, %v18654_v6 }
0x1446   : > { %v16112_v41 = vpop.eup %16111  ;;  %v12150_v2 = vadd.f32 %v12146_v29, %v12138_v9  ;;  %v12144_v22 = vsub.f32 1.0, %v16110_v5  ;;  %v12140_v34 = vmul.f32 %v16110_v5, %v18847_v4 }
0x1447   : > { %v12149_v31 = vadd.f32 %v12145_v13, %v12137_v56  ;;  %v12143_v50 = vsub.f32 1.0, %v16112_v41  ;;  %v12139_v3 = vmul.f32 %v16112_v41, %v18851_v12 }
0x1448   : > { %v12148_v19 = vmul.f32 %v12144_v22, %v18660_v28  ;;  %12154 = vst.msk [vmem:[%s504_s26 + $0x8] sm:$0xff] %vm537_vm0, %v12150_v2 }
0x1449   : > { %v12147_v6 = vmul.f32 %v12143_v50, %v18662_v45  ;;  %12153 = vst.msk [vmem:[%s504_s26] sm:$0xff] %vm537_vm0, %v12149_v31 }
0x144a   : > { %v12152_v0 = vadd.f32 %v12148_v19, %v12140_v34 }
0x144b   : > { %v12151_v37 = vadd.f32 %v12147_v6, %v12139_v3 }
0x144c   : > { %12156 = vst.msk [vmem:[%s504_s26 + $0x18] sm:$0xff] %vm537_vm0, %v12152_v0 }
0x144d   : > { %12155 = vst.msk [vmem:[%s504_s26 + $0x10] sm:$0xff] %vm537_vm0, %v12151_v37 }
0x144e   : > { %16138 = shalt.err (!%p16135_p3)
}
0x144f   : > { %s16139_s0 = scalar_lea.hbm %s18938_s22, 512  ;;  %s16143_s17 = scalar_lea.hbm %s19003_s15, 1024 }
0x1450   : > { %p16140_p4 = scmp.ne.s32.totalorder %s18938_s22, %s16139_s0  ;;  %p16144_p9 = scmp.lt.u32.totalorder %s18938_s22, %s19003_s15 }
0x1451   : > { %p16145_p10 = scmp.lt.u32.totalorder %s16143_s17, %s16139_s0  ;;  %p16147_p12 = scmp.lt.u32.totalorder %s16139_s0, %s18938_s22 }
0x1452   : > { %p16141_p7 = pnand %p16140_p4, %p16325_p5 }
0x1453   : > { %p16146_p11 = por %p16145_p10, %p16144_p9 }
0x1454   : > { %p16142_p8 = pneg %p16141_p7 }
0x1455   : > { %p16148_p13 = por %p16147_p12, %p16146_p11 }
0x1457   : > { %p16149_p0 = pnand %p16148_p13, %p16142_p8 }
0x1459   : > { %16152 = shalt.err (!%p16149_p0)
}
0x145a   : > { %s16206_s25 = smov 128   ;;  %s19215_s16 = smov 8  }
0x145b   : > { %15961 = dma.vmem_to_hbm [thread:$0]  (%p16325_p5), %s18940_s27, 512, %s18938_s22, %s18946_s4, %s16206_s25, %s16206_s25, %s19215_s16  }
0x145c PF: > { %p15967_p1 = scmp.ge.s32.totalorder %s16187_s21, 2  ;;  %s12186_s24 = sand.u32 1, %s16175_s18  }
0x145d   : > { %s12187_s23 = scalar_lea.sflag [#allocation3], %s12186_s24 }
0x145e   : > { %p15964_p2 = pnand %p15967_p1, %p16329_p6 }
0x1460   : > { %16170 = dma.done.wait (!%p15964_p2), %s12187_s23, 512  }
0x1461   : > { %16172 = vsyncadd (!%p15964_p2), %s12187_s23, 4294966784  ;;  %s19216_s21 = sld [smem:[#allocation6_spill]]  ;;  %s19217_s20 = sld [smem:[#allocation5_spill]] }
0x1462   : > { %s19218_s28 = sld [smem:[#allocation7_spill]]  ;;  %s19219_s18 = smov %s16179_s19 }
0x1467   : > { %p25_p3 = scmp.ge.s32.totalorder %s19216_s21, 4   ;;  %s19220_s19 = smov %s19217_s20 }
0x1468   : > { %s19221_s20 = smov %s19218_s28 }
0x1469   :  { %27 = sbr.rel (!%p25_p3) target bundleno = 8 (0x8), region = 118 }
0x1470   :  { %12192 = vsyncpa [#allocation3], 1 }
0x1471   :  { %12194 = vsyncpa [#allocation3 + $0x1], 1 }

</bundles_post_ra>
